<compile_context>
chip_gen: v7x
topology: tpu7x:2x2x1
jax: 0.10.0
libtpu: 0.0.40
codegen_flags: <defaults>
</compile_context>

<pallas_src>
import jax
import jax.numpy as jnp
from jax.experimental import pallas as pl
from jax.experimental.pallas import tpu as pltpu


def _leaky_relu(v):
    # mul + max instead of compare + select: fewer VPU ops on the big stages.
    return jnp.maximum(v, 0.01 * v)


def _discriminator_kernel(x_ref,
                          w1_ref, b1_ref,
                          w2_ref, b2_ref,
                          w3_ref, b3_ref,
                          w4_ref, b4_ref,
                          o_ref):
    """One (TILE_B, in_features) batch tile through the whole MLP."""

    # Layer 1: Linear + folded BN -> (eval-mode Dropout = identity) -> LeakyReLU
    # x is already bf16; MXU accumulates in f32.
    h = jnp.dot(x_ref[...], w1_ref[...],
                preferred_element_type=jnp.float32) + b1_ref[...]
    h = _leaky_relu(h)

    # Layer 2
    h = jnp.dot(h.astype(jnp.bfloat16), w2_ref[...],
                preferred_element_type=jnp.float32) + b2_ref[...]
    h = _leaky_relu(h)

    # Layer 3
    h = jnp.dot(h.astype(jnp.bfloat16), w3_ref[...],
                preferred_element_type=jnp.float32) + b3_ref[...]
    h = _leaky_relu(h)

    # Layer 4: Linear(128, 1) -> Sigmoid.
    # VPU multiply + lane-reduce (no N=1 matmul); one XLU transpose turns the
    # (TILE_B, 1) column into a lane-dense (1, TILE_B) row so the output store
    # is an unmasked full-lane vst and the sigmoid runs on 1/32 of the vregs.
    logits = jnp.sum(h * w4_ref[...], axis=-1, keepdims=True) + b4_ref[0]
    row = logits.T                                        # (1, TILE_B)
    # sigmoid(z) = 1 / (1 + exp(-z)); divide goes to the EUP next to the exp.
    o_ref[...] = pl.reciprocal(1.0 + jnp.exp(-row), approx=True)


def init_params(key, in_features):
    """Deterministic params mimicking PyTorch defaults.

    Linear: weight (out,in), bias (out,) ~ U(-1/sqrt(fan_in), +1/sqrt(fan_in))
    BatchNorm1d: gamma=1, beta=0, running_mean=0, running_var=1, eps=1e-5
    """
    dims = [(in_features, 512), (512, 512), (512, 128), (128, 1)]
    params = {}
    for i, (fan_in, fan_out) in enumerate(dims, start=1):
        key, kw, kb = jax.random.split(key, 3)
        bound = 1.0 / jnp.sqrt(jnp.float32(fan_in))
        params[f"w{i}"] = jax.random.uniform(
            kw, (fan_out, fan_in), jnp.float32, -bound, bound)
        params[f"b{i}"] = jax.random.uniform(
            kb, (fan_out,), jnp.float32, -bound, bound)
    eps = 1e-5
    for i, n in zip((1, 2, 3), (512, 512, 128)):
        gamma = jnp.ones((n,), jnp.float32)
        beta = jnp.zeros((n,), jnp.float32)
        running_mean = jnp.zeros((n,), jnp.float32)
        running_var = jnp.ones((n,), jnp.float32)
        scale = gamma / jnp.sqrt(running_var + eps)
        shift = beta - running_mean * scale
        params[f"bn{i}_scale"] = scale
        params[f"bn{i}_shift"] = shift
    return params


def prepare_params(params):
    """One-time constant folding: BN affine -> weights/bias, bf16 MXU weights."""
    prep = {}
    for i in (1, 2, 3):
        scale = params[f"bn{i}_scale"]
        shift = params[f"bn{i}_shift"]
        w_eff = params[f"w{i}"].T * scale[None, :]          # (in, out), BN folded
        b_eff = params[f"b{i}"] * scale + shift             # (out,)
        prep[f"w{i}"] = w_eff.astype(jnp.bfloat16)          # bf16 MXU operand
        prep[f"b{i}"] = b_eff.reshape(1, -1).astype(jnp.float32)
    prep["w4"] = params["w4"].reshape(1, -1).astype(jnp.float32)   # (1, 128) row
    prep["b4"] = params["b4"].reshape(-1).astype(jnp.float32)      # (1,) scalar
    return prep


def _choose_tile_b(batch):
    """Batch tile: as large as is useful (amortize ~0.35us/step overhead and
    MXU weight re-staging) while keeping >= 2 grid steps so v7x megacore can
    split the grid; multiples of 256 suit the v6e/v7x MXU (and of 128 for v5e)."""
    if batch <= 512:
        return 256
    half = (batch + 1) // 2
    return min(1024, ((half + 255) // 256) * 256)


@jax.jit
def discriminator_forward(x, prep):
    B, F = x.shape
    tile_b = _choose_tile_b(B)
    n_tiles = pl.cdiv(B, tile_b)

    # bf16 input halves the only per-step HBM stream; MXU accumulation stays f32.
    x = x.astype(jnp.bfloat16)
    if B < tile_b:
        # Tiny-batch corner only. Large ragged batches skip the full-array pad
        # copy: Pallas clips the last block's reads; garbage rows are
        # row-independent and sliced off below.
        x = jnp.pad(x, ((0, tile_b - B), (0, 0)))

    h1, h2, h3 = 512, 512, 128
    const2 = lambda i: (0, 0)   # weights: same block every step -> stay VMEM resident

    in_specs = [
        pl.BlockSpec((tile_b, F), lambda i: (i, 0)),         # x: tiled over batch (bf16)
        pl.BlockSpec((F, h1), const2),                       # w1 (bf16, BN folded)
        pl.BlockSpec((1, h1), const2),                       # b1 (f32, BN folded)
        pl.BlockSpec((h1, h2), const2),                      # w2
        pl.BlockSpec((1, h2), const2),                       # b2
        pl.BlockSpec((h2, h3), const2),                      # w3
        pl.BlockSpec((1, h3), const2),                       # b3
        pl.BlockSpec((1, h3), const2),                       # w4 row (f32)
        pl.BlockSpec(memory_space=pltpu.MemorySpace.SMEM),   # b4 scalar in SMEM
    ]
    # Lane-dense output: one (1, tile_b) row of probabilities per grid step.
    out_spec = pl.BlockSpec((None, 1, tile_b), lambda i: (i, 0, 0))

    out = pl.pallas_call(
        _discriminator_kernel,
        out_shape=jax.ShapeDtypeStruct((n_tiles, 1, tile_b), jnp.float32),
        grid=(n_tiles,),
        in_specs=in_specs,
        out_specs=out_spec,
        compiler_params=pltpu.CompilerParams(
            dimension_semantics=("parallel",),   # megacore split on v7x
            vmem_limit_bytes=32 * 1024 * 1024,   # safe on v5e/v6e/v7x at tile_b<=1024
        ),
    )(x,
      prep["w1"], prep["b1"],
      prep["w2"], prep["b2"],
      prep["w3"], prep["b3"],
      prep["w4"], prep["b4"])

    # (n_tiles, 1, tile_b) row-major -> (n_tiles*tile_b, 1), drop padded/garbage rows.
    return out.reshape(-1, 1)[:B]


def reference_forward(x, params):
    """Pure-JAX f32 reference (eval-mode semantics) for correctness checking."""
    def leaky(v):
        return jnp.where(v > 0, v, 0.01 * v)
    h = x @ params["w1"].T + params["b1"]
    h = leaky(h * params["bn1_scale"] + params["bn1_shift"])
    h = h @ params["w2"].T + params["b2"]
    h = leaky(h * params["bn2_scale"] + params["bn2_shift"])
    h = h @ params["w3"].T + params["b3"]
    h = leaky(h * params["bn3_scale"] + params["bn3_shift"])
    logits = h @ params["w4"].T + params["b4"]
    return jax.nn.sigmoid(logits)


if __name__ == "__main__":
    key = jax.random.PRNGKey(0)
    k_param, k_x = jax.random.split(key)

    # B not a multiple of the batch tile -> exercises the ragged-last-block path.
    B, in_features = 500, 64
    params = init_params(k_param, in_features)
    prep = prepare_params(params)
    x = jax.random.normal(k_x, (B, in_features), jnp.float32)

    out = jax.block_until_ready(discriminator_forward(x, prep))
    ref = reference_forward(x, params)

    assert out.shape == (B, 1), out.shape
    assert bool(jnp.all(jnp.isfinite(out))), "non-finite values in valid rows"
    max_err = float(jnp.max(jnp.abs(out - ref)))
    # bf16 MXU inputs/weights with f32 accumulation + approx EUP reciprocal.
    assert max_err < 3e-2, max_err
    print("KERNEL_OK")
</pallas_src>

<mosaic_0001>
module attributes {stable_mosaic.version = 11 : i64} {
  func.func @_discriminator_kernel(%arg0: i32, %arg1: memref<256x64xbf16, #tpu.memory_space<vmem>>, %arg2: memref<64x512xbf16, #tpu.memory_space<vmem>>, %arg3: memref<1x512xf32, #tpu.memory_space<vmem>>, %arg4: memref<512x512xbf16, #tpu.memory_space<vmem>>, %arg5: memref<1x512xf32, #tpu.memory_space<vmem>>, %arg6: memref<512x128xbf16, #tpu.memory_space<vmem>>, %arg7: memref<1x128xf32, #tpu.memory_space<vmem>>, %arg8: memref<1x128xf32, #tpu.memory_space<vmem>>, %arg9: memref<1xf32, #tpu.memory_space<smem>>, %arg10: memref<1x1x256xf32, #tpu.memory_space<vmem>>) attributes {dimension_semantics = [#tpu.dimension_semantics<parallel>], iteration_bounds = array<i64: 2>, scalar_prefetch = 0 : i64, scratch_operands = 0 : i64, tpu.core_type = #tpu.core_type<tc>, window_params = [{transform_indices = @transform_0, window_bounds = array<i64: 256, 64>}, {pipeline_mode = #tpu.pipeline_mode<synchronous>, transform_indices = @transform_1, window_bounds = array<i64: 64, 512>}, {pipeline_mode = #tpu.pipeline_mode<synchronous>, transform_indices = @transform_2, window_bounds = array<i64: 1, 512>}, {pipeline_mode = #tpu.pipeline_mode<synchronous>, transform_indices = @transform_3, window_bounds = array<i64: 512, 512>}, {pipeline_mode = #tpu.pipeline_mode<synchronous>, transform_indices = @transform_4, window_bounds = array<i64: 1, 512>}, {pipeline_mode = #tpu.pipeline_mode<synchronous>, transform_indices = @transform_5, window_bounds = array<i64: 512, 128>}, {pipeline_mode = #tpu.pipeline_mode<synchronous>, transform_indices = @transform_6, window_bounds = array<i64: 1, 128>}, {pipeline_mode = #tpu.pipeline_mode<synchronous>, transform_indices = @transform_7, window_bounds = array<i64: 1, 128>}, {transform_indices = @transform_8, window_bounds = array<i64: 1>}, {transform_indices = @transform_9, window_bounds = array<i64: 1, 1, 256>}]} {
    %c0 = arith.constant 0 : index
    %c0_0 = arith.constant 0 : index
    %0 = vector.load %arg1[%c0, %c0_0] : memref<256x64xbf16, #tpu.memory_space<vmem>>, vector<256x64xbf16>
    %c0_1 = arith.constant 0 : index
    %c0_2 = arith.constant 0 : index
    %1 = vector.load %arg2[%c0_1, %c0_2] : memref<64x512xbf16, #tpu.memory_space<vmem>>, vector<64x512xbf16>
    %cst = arith.constant dense<0.000000e+00> : vector<256x512xf32>
    %2 = tpu.matmul %0, %1, %cst {dimension_numbers = #tpu.dot_dimension_numbers<[1], [0], [0], [1], [0, 0, 1, 1], [], []>} : vector<256x64xbf16>, vector<64x512xbf16>, vector<256x512xf32> -> vector<256x512xf32>
    %c0_3 = arith.constant 0 : index
    %c0_4 = arith.constant 0 : index
    %3 = vector.load %arg3[%c0_3, %c0_4] : memref<1x512xf32, #tpu.memory_space<vmem>>, vector<1x512xf32>
    %4 = vector.broadcast %3 : vector<1x512xf32> to vector<256x512xf32>
    %5 = arith.addf %2, %4 : vector<256x512xf32>
    %cst_5 = arith.constant 0.00999999977 : f32
    %6 = vector.broadcast %cst_5 : f32 to vector<256x512xf32>
    %7 = arith.mulf %6, %5 : vector<256x512xf32>
    %8 = arith.maximumf %5, %7 : vector<256x512xf32>
    %9 = arith.truncf %8 : vector<256x512xf32> to vector<256x512xbf16>
    %c0_6 = arith.constant 0 : index
    %c0_7 = arith.constant 0 : index
    %10 = vector.load %arg4[%c0_6, %c0_7] : memref<512x512xbf16, #tpu.memory_space<vmem>>, vector<512x512xbf16>
    %cst_8 = arith.constant dense<0.000000e+00> : vector<256x512xf32>
    %11 = tpu.matmul %9, %10, %cst_8 {dimension_numbers = #tpu.dot_dimension_numbers<[1], [0], [0], [1], [0, 0, 1, 1], [], []>} : vector<256x512xbf16>, vector<512x512xbf16>, vector<256x512xf32> -> vector<256x512xf32>
    %c0_9 = arith.constant 0 : index
    %c0_10 = arith.constant 0 : index
    %12 = vector.load %arg5[%c0_9, %c0_10] : memref<1x512xf32, #tpu.memory_space<vmem>>, vector<1x512xf32>
    %13 = vector.broadcast %12 : vector<1x512xf32> to vector<256x512xf32>
    %14 = arith.addf %11, %13 : vector<256x512xf32>
    %cst_11 = arith.constant 0.00999999977 : f32
    %15 = vector.broadcast %cst_11 : f32 to vector<256x512xf32>
    %16 = arith.mulf %15, %14 : vector<256x512xf32>
    %17 = arith.maximumf %14, %16 : vector<256x512xf32>
    %18 = arith.truncf %17 : vector<256x512xf32> to vector<256x512xbf16>
    %c0_12 = arith.constant 0 : index
    %c0_13 = arith.constant 0 : index
    %19 = vector.load %arg6[%c0_12, %c0_13] : memref<512x128xbf16, #tpu.memory_space<vmem>>, vector<512x128xbf16>
    %cst_14 = arith.constant dense<0.000000e+00> : vector<256x128xf32>
    %20 = tpu.matmul %18, %19, %cst_14 {dimension_numbers = #tpu.dot_dimension_numbers<[1], [0], [0], [1], [0, 0, 1, 1], [], []>} : vector<256x512xbf16>, vector<512x128xbf16>, vector<256x128xf32> -> vector<256x128xf32>
    %c0_15 = arith.constant 0 : index
    %c0_16 = arith.constant 0 : index
    %21 = vector.load %arg7[%c0_15, %c0_16] : memref<1x128xf32, #tpu.memory_space<vmem>>, vector<1x128xf32>
    %22 = vector.broadcast %21 : vector<1x128xf32> to vector<256x128xf32>
    %23 = arith.addf %20, %22 : vector<256x128xf32>
    %cst_17 = arith.constant 0.00999999977 : f32
    %24 = vector.broadcast %cst_17 : f32 to vector<256x128xf32>
    %25 = arith.mulf %24, %23 : vector<256x128xf32>
    %26 = arith.maximumf %23, %25 : vector<256x128xf32>
    %c0_18 = arith.constant 0 : index
    %c0_19 = arith.constant 0 : index
    %27 = vector.load %arg8[%c0_18, %c0_19] : memref<1x128xf32, #tpu.memory_space<vmem>>, vector<1x128xf32>
    %28 = vector.broadcast %27 : vector<1x128xf32> to vector<256x128xf32>
    %29 = arith.mulf %26, %28 : vector<256x128xf32>
    %cst_20 = arith.constant dense<0.000000e+00> : vector<256xf32>
    %30 = vector.multi_reduction <add>, %29, %cst_20 [1] : vector<256x128xf32> to vector<256xf32>
    %31 = vector.shape_cast %30 : vector<256xf32> to vector<256x1xf32>
    %c0_21 = arith.constant 0 : index
    %32 = memref.load %arg9[%c0_21] : memref<1xf32, #tpu.memory_space<smem>>
    %33 = vector.broadcast %32 : f32 to vector<256x1xf32>
    %34 = arith.addf %31, %33 : vector<256x1xf32>
    %35 = tpu.transpose %34, [1, 0] : vector<256x1xf32> -> vector<1x256xf32>
    %cst_22 = arith.constant 0.000000e+00 : f32
    %36 = vector.broadcast %cst_22 : f32 to vector<1x256xf32>
    %37 = arith.subf %36, %35 : vector<1x256xf32>
    %38 = math.exp %37 : vector<1x256xf32>
    %cst_23 = arith.constant 1.000000e+00 : f32
    %39 = vector.broadcast %cst_23 : f32 to vector<1x256xf32>
    %40 = arith.addf %39, %38 : vector<1x256xf32>
    %41 = tpu.reciprocal %40 {approx = true} : vector<1x256xf32> -> vector<1x256xf32>
    %c0_24 = arith.constant 0 : index
    %c0_25 = arith.constant 0 : index
    %c0_26 = arith.constant 0 : index
    %42 = vector.load %arg10[%c0_24, %c0_25, %c0_26] : memref<1x1x256xf32, #tpu.memory_space<vmem>>, vector<1x1x256xf32>
    %43 = vector.shape_cast %42 : vector<1x1x256xf32> to vector<1x256xf32>
    %44 = vector.shape_cast %41 : vector<1x256xf32> to vector<1x1x256xf32>
    tpu.vector_store %arg10[%c0_24, %c0_25, %c0_26], %44 {strides = array<i32>} : memref<1x1x256xf32, #tpu.memory_space<vmem>>, vector<1x1x256xf32>,
    return
  }
  func.func @transform_0(%arg0: i32) -> (i32, i32) {
    %c0_i32 = arith.constant 0 : i32
    %c0_i32_0 = arith.constant 0 : i32
    return %arg0, %c0_i32 : i32, i32
  }
  func.func @transform_1(%arg0: i32) -> (i32, i32) {
    %c0_i32 = arith.constant 0 : i32
    %c0_i32_0 = arith.constant 0 : i32
    %c0_i32_1 = arith.constant 0 : i32
    return %c0_i32, %c0_i32_0 : i32, i32
  }
  func.func @transform_2(%arg0: i32) -> (i32, i32) {
    %c0_i32 = arith.constant 0 : i32
    %c0_i32_0 = arith.constant 0 : i32
    %c0_i32_1 = arith.constant 0 : i32
    return %c0_i32, %c0_i32_0 : i32, i32
  }
  func.func @transform_3(%arg0: i32) -> (i32, i32) {
    %c0_i32 = arith.constant 0 : i32
    %c0_i32_0 = arith.constant 0 : i32
    %c0_i32_1 = arith.constant 0 : i32
    return %c0_i32, %c0_i32_0 : i32, i32
  }
  func.func @transform_4(%arg0: i32) -> (i32, i32) {
    %c0_i32 = arith.constant 0 : i32
    %c0_i32_0 = arith.constant 0 : i32
    %c0_i32_1 = arith.constant 0 : i32
    return %c0_i32, %c0_i32_0 : i32, i32
  }
  func.func @transform_5(%arg0: i32) -> (i32, i32) {
    %c0_i32 = arith.constant 0 : i32
    %c0_i32_0 = arith.constant 0 : i32
    %c0_i32_1 = arith.constant 0 : i32
    return %c0_i32, %c0_i32_0 : i32, i32
  }
  func.func @transform_6(%arg0: i32) -> (i32, i32) {
    %c0_i32 = arith.constant 0 : i32
    %c0_i32_0 = arith.constant 0 : i32
    %c0_i32_1 = arith.constant 0 : i32
    return %c0_i32, %c0_i32_0 : i32, i32
  }
  func.func @transform_7(%arg0: i32) -> (i32, i32) {
    %c0_i32 = arith.constant 0 : i32
    %c0_i32_0 = arith.constant 0 : i32
    %c0_i32_1 = arith.constant 0 : i32
    return %c0_i32, %c0_i32_0 : i32, i32
  }
  func.func @transform_8(%arg0: i32) -> i32 {
    %c0_i32 = arith.constant 0 : i32
    %c0_i32_0 = arith.constant 0 : i32
    return %c0_i32 : i32
  }
  func.func @transform_9(%arg0: i32) -> (i32, i32, i32) {
    %c0_i32 = arith.constant 0 : i32
    %c0_i32_0 = arith.constant 0 : i32
    %c0_i32_1 = arith.constant 0 : i32
    return %arg0, %c0_i32, %c0_i32_0 : i32, i32, i32
  }
}

</mosaic_0001>

<bundles_post_ra>
// kernel: discriminator_forward.1
= control target key start
LH: loop header
LB: loop body
LE: loop exit
PB: predicated region body
PF: predicated region fallthrough
CT: control target
= control target key end

     0   :  { %s6396_s0 = inlined_call_operand.vmem [shape: bf16[500,64], index: 0, kind: input, shape index: {}]   ;;  %s6397_s1 = inlined_call_operand.vmem [shape: bf16[64,512], index: 1, kind: input, shape index: {}]   ;;  %s6398_s2 = inlined_call_operand.vmem [shape: f32[1,512], index: 2, kind: input, shape index: {}]   ;;  %s6399_s3 = inlined_call_operand.hbm [shape: bf16[512,512], index: 3, kind: input, shape index: {}]   ;;  %s6400_s4 = inlined_call_operand.vmem [shape: f32[1,512], index: 4, kind: input, shape index: {}]   ;;  %s6401_s5 = inlined_call_operand.vmem [shape: bf16[512,128], index: 5, kind: input, shape index: {}]   ;;  %s6402_s6 = inlined_call_operand.vmem [shape: f32[1,128], index: 6, kind: input, shape index: {}]   ;;  %s6403_s7 = inlined_call_operand.vmem [shape: f32[1,128], index: 7, kind: input, shape index: {}]   ;;  %s6404_s8 = inlined_call_operand.<no memory space> [shape: f32[1], index: 8, kind: input, shape index: {}]   ;;  %s6405_s9 = inlined_call_operand.hbm [shape: f32[2,1,256], index: 9, kind: output, shape index: {}]  }
   0x1   :  { %14 = sst [smem:[#allocation2]] %s6404_s8 }
   0x2   :  { %15 = vsyncpa [#allocation4], 0 }
   0x3   :  { %16 = vsyncpa [#allocation5], 0 }
   0x4   :  { %18 = vsyncpa [#allocation5 + $0x1], 0  ;;  %s5408_s11 = smov 0   ;;  %s5410_s12 = smov 0  }
   0x5   :  { %s5412_s13 = smov 0   ;;  %s5414_s14 = smov 0  }
   0x6 LB: > { %s5429_s8 = sadd.s32 4294967295, %s5347_s14   ;;  %s4206_s15 = sadd.s32 4294967294, %s5347_s14   ;;  %s5347_s14 = sphi %s5414_s14, %s6423_s14   ;;  %s5343_s13 = sphi %s5412_s13, %s6422_s13   ;;  %s5339_s12 = sphi %s5410_s12, %s6421_s12   ;;  %s5335_s11 = sphi %s5408_s11, %s6420_s11  }
   0x7   : > { %s5433_s16 = sadd.s32 1, %s5347_s14   ;;  %s225_s17 = sadd.s32 1, %s5343_s13 }
   0x8   : > { %s222_s18 = ssub.s32 %s5347_s14, %s5433_s16  ;;  %p235_p0 = scmp.ne.s32.totalorder %s5343_s13, %s5339_s12 }
   0x9   : > { %p223_p1 = scmp.eq.s32.totalorder %s222_s18, 0  ;;  %p236_p2 = scmp.eq.s32.totalorder %s5429_s8, 1 }
   0xa   : > { %p241_p3 = scmp.ne.s32.totalorder %s5339_s12, %s5335_s11  ;;  %p242_p4 = scmp.eq.s32.totalorder %s4206_s15, 1 }
   0xb   : > { %s5444_s19 = scalar_select %p223_p1, %s5343_s13, %s225_s17  }
   0xc   : > { %p5446_p5 = por %p236_p2, %p235_p0  ;;  %p5450_p6 = por %p242_p4, %p241_p3 }
   0xd   : > { %p4207_p7 = scmp.ge.s32.totalorder %s5347_s14, 1  ;;  %p249_p8 = scmp.lt.s32.totalorder %s5347_s14, 3 }
   0xe   : > { %s6410_s20 = scalar_select %p5446_p5, 1, 0 }
   0xf   : > { %s6411_s21 = scalar_select %p5450_p6, 1, 0 }
  0x10   : > { %p6406_p9 = scmp.eq.s32.totalorder %s5429_s8, 0  ;;  %p5457_p10 = pnand %p4207_p7, %p249_p8 }
  0x11   : > { %s5349_s23 = smov [#allocation3]   ;;  %s5253_s28 = scalar_lea.hbm %s6399_s3, 16384 }
  0x12   : > { %s6412_s22 = scalar_select %p5457_p10, 1, 0 }
  0x13   : > { %s267_s24 = sshll.u32 %s5349_s23, 4  ;;  %p4933_p11 = pneg %p5457_p10  ;;  %s268_s24 = int_to_ptr.vmem [resolvable:$true] %s267_s24 }
  0x14   : > { %p5254_p13 = scmp.ne.s32.totalorder %s6399_s3, %s5253_s28  ;;  %p5260_p3 = scmp.lt.u32.totalorder %s5253_s28, %s6399_s3 }
  0x15   : > { %p5465_p12 = pnand %p6406_p9, %p4933_p11 }
  0x17   : > { %p5255_p0 = pneg %p5465_p12 }
  0x19   : > { %p5256_p1 = pnand %p5255_p0, %p5254_p13 }
  0x1b   : > { %p5257_p2 = pneg %p5256_p1 }
  0x1d   : > { %p5262_p4 = pnand %p5260_p3, %p5257_p2 }
  0x1f   : > { %5265 = shalt.err (!%p5262_p4)
}
  0x20   : > { %s5266_s17 = scalar_lea.vmem %s268_s24, 16384  ;;  %p5274_p9 = scmp.lt.s32.totalorder %s268_s24, %s268_s24 }
  0x21   : > { %p5267_p7 = scmp.ne.s32.totalorder %s268_s24, %s5266_s17  ;;  %p5275_p6 = scmp.lt.s32.totalorder %s5266_s17, %s5266_s17 }
  0x23   : > { %p5269_p8 = pnand %p5267_p7, %p5255_p0  ;;  %p5276_p5 = por %p5275_p6, %p5274_p9 }
  0x25   : > { %p5270_p11 = pneg %p5269_p8 }
  0x27   : > { %p5277_p10 = pnand %p5276_p5, %p5270_p11 }
  0x29   : > { %5280 = shalt.err (!%p5277_p10)
}
  0x2a   : > { %s5350_s18 = smov 256   ;;  %s5351_s23 = smov 16  }
  0x2b   : > { %4936 = dma.hbm_to_vmem [thread:$0]  (!%p5465_p12), %s6399_s3, 16384, %s268_s24, [#allocation4], %s5350_s18, %s5350_s18, %s5351_s23  }
  0x2c   : > { %p6414_p13 = scmp.ne.s32.totalorder %s6412_s22, 0 }
  0x2d   : > { %p6415_p1 = scmp.eq.s32.totalorder (!%p6414_p13), %s5429_s8, 0 }
  0x2e   : > { %315 = sbr.rel (%p6414_p13) target bundleno = 1258 (0x4ea), region = 56 }
  0x35   : > { %5326 = dma.done.wait (%p6415_p1), [#allocation4], 16384   ;;  %p6416_p0 = pmov %p6415_p1 }
  0x36   : > { %s5492_s28 = sshll.u32 %s5429_s8, 5  ;;  %v5352_v0 = vmov 0   ;;  %v4981_v1 = vld [vmem:[%s6397_s1 + $0x4] ss:$16 sps:$4 sm:$0xff]   ;;  %v4983_v2 = vld [vmem:[%s6397_s1] ss:$16 sps:$4 sm:$0xff]  }
  0x37   : > { %5328 = vsyncadd (%p6416_p0), [#allocation4], 4294950912  ;;  %681 = vmatprep.mubr.bf16.mxu0 %v5352_v0  ;;  %p360_p5 = scmp.lt.s32.totalorder %s5492_s28, 62  ;;  %874 = vmatprep.mubr.bf16.mxu1 %v5352_v0  ;;  %v4984_v3 = vld [vmem:[%s6397_s1 + $0x24] ss:$16 sps:$4 sm:$0xff]   ;;  %vm600_vm0 = vcmask 523264  }
  0x38   : > { %649 = vmatprep.subr.bf16.mxu0 %v4981_v1  ;;  %v4986_v4 = vld [vmem:[%s6397_s1 + $0x20] ss:$16 sps:$4 sm:$0xff]   ;;  %v4987_v5 = vld [vmem:[%s6397_s1 + $0x44] ss:$16 sps:$4 sm:$0xff]   ;;  %v5003_v10 = vld [vmem:[%s6397_s1 + $0xc] ss:$16 sps:$4 sm:$0xff]  }
  0x39   : > { %s361_s24 = scalar_select %p360_p5, %s5492_s28, 62  ;;  %650 = vmatpush1.bf16.msra.mxu0 %v4983_v2  ;;  %v4989_v6 = vld [vmem:[%s6397_s1 + $0x40] ss:$16 sps:$4 sm:$0xff]   ;;  %v4990_v7 = vld [vmem:[%s6397_s1 + $0x64] ss:$16 sps:$4 sm:$0xff]   ;;  %842 = vmatprep.subr.bf16.mxu1 %v5003_v10 }
  0x3a   : > { %651 = vmatprep.subr.bf16.mxu0 %v4984_v3  ;;  %v4992_v8 = vld [vmem:[%s6397_s1 + $0x60] ss:$16 sps:$4 sm:$0xff]   ;;  %v5005_v11 = vld [vmem:[%s6397_s1 + $0x8] ss:$16 sps:$4 sm:$0xff]   ;;  %v5007_v12 = vld [vmem:[%s6397_s1 + $0x2c] ss:$16 sps:$4 sm:$0xff]  }
  0x3b   : > { %s4214_s10 = sshll.u32 %s361_s24, 2  ;;  %843 = vmatpush1.bf16.msra.mxu1 %v5005_v11  ;;  %v5009_v13 = vld [vmem:[%s6397_s1 + $0x28] ss:$16 sps:$4 sm:$0xff]   ;;  %v5010_v14 = vld [vmem:[%s6397_s1 + $0x4c] ss:$16 sps:$4 sm:$0xff]   ;;  %s3989_s15 = sld [smem:[#allocation2]] }
  0x3c   : > { %s5516_s25 = scalar_lea.vmem %s6396_s0, %s4214_s10  ;;  %844 = vmatprep.subr.bf16.mxu1 %v5007_v12  ;;  %v5012_v16 = vld [vmem:[%s6397_s1 + $0x48] ss:$16 sps:$4 sm:$0xff]   ;;  %v5014_v17 = vld [vmem:[%s6397_s1 + $0x6c] ss:$16 sps:$4 sm:$0xff]   ;;  %v5019_v18 = vld [vmem:[#allocation3 + $0x4] ss:$16 sps:$4 sm:$0xff]  }
  0x3d   : > { %652 = vmatpush1.bf16.msra.mxu0 %v4986_v4  ;;  %v4993_v9 = vld [vmem:[%s5516_s25] sm:$0xff]   ;;  %v4994_v15 = vld [vmem:[%s5516_s25 + $0x8] sm:$0xff]   ;;  %v4995_v24 = vld [vmem:[%s5516_s25 + $0x10] sm:$0xff]   ;;  %s352_s17 = sand.u32 1, %s5339_s12   ;;  %p6418_p9 = scmp.ne.s32.totalorder %s6410_s20, 0 }
  0x3e   : > { %653 = vmatprep.subr.bf16.mxu0 %v4987_v5  ;;  %v5017_v19 = vld [vmem:[#allocation3] ss:$16 sps:$4 sm:$0xff]   ;;  %v5016_v20 = vld [vmem:[%s6397_s1 + $0x68] ss:$16 sps:$4 sm:$0xff]   ;;  %v5023_v21 = vld [vmem:[#allocation3 + $0xc] ss:$16 sps:$4 sm:$0xff]  }
  0x3f   : > { %845 = vmatpush1.bf16.msra.mxu1 %v5009_v13  ;;  %v5026_v22 = vld [vmem:[#allocation3 + $0x24] ss:$16 sps:$4 sm:$0xff]   ;;  %v5024_v23 = vld [vmem:[#allocation3 + $0x20] ss:$16 sps:$4 sm:$0xff]   ;;  %v5021_v25 = vld [vmem:[#allocation3 + $0x8] ss:$16 sps:$4 sm:$0xff]  }
  0x40   : > { %846 = vmatprep.subr.bf16.mxu1 %v5010_v14  ;;  %v5033_v26 = vld [vmem:[#allocation3 + $0x44] ss:$16 sps:$4 sm:$0xff]   ;;  %v5030_v27 = vld [vmem:[#allocation3 + $0x2c] ss:$16 sps:$4 sm:$0xff]   ;;  %v5031_v28 = vld [vmem:[#allocation3 + $0x40] ss:$16 sps:$4 sm:$0xff]  }
  0x41   : > { %654 = vmatpush1.bf16.msra.mxu0 %v4989_v6  ;;  %v5040_v29 = vld [vmem:[#allocation3 + $0x64] ss:$16 sps:$4 sm:$0xff]   ;;  %v5028_v30 = vld [vmem:[#allocation3 + $0x28] ss:$16 sps:$4 sm:$0xff]   ;;  %v5037_v31 = vld [vmem:[#allocation3 + $0x4c] ss:$16 sps:$4 sm:$0xff]  }
  0x42   : > { %655 = vmatprep.subr.bf16.mxu0 %v4990_v7  ;;  %v5038_v32 = vld [vmem:[#allocation3 + $0x60] ss:$16 sps:$4 sm:$0xff]   ;;  %v4996_v33 = vld [vmem:[%s5516_s25 + $0x18] sm:$0xff]   ;;  %v5047_v36 = vld [vmem:[#allocation3 + $0x84] ss:$16 sps:$4 sm:$0xff]   ;;  %s4212_s10 = sshll.u32 %s352_s17, 1 }
  0x43   : > { %847 = vmatpush1.bf16.msra.mxu1 %v5012_v16  ;;  %v5035_v34 = vld [vmem:[#allocation3 + $0x48] ss:$16 sps:$4 sm:$0xff]   ;;  %v5044_v35 = vld [vmem:[#allocation3 + $0x6c] ss:$16 sps:$4 sm:$0xff]   ;;  %v5045_v37 = vld [vmem:[#allocation3 + $0x80] ss:$16 sps:$4 sm:$0xff]  }
  0x44   : > { %848 = vmatprep.subr.bf16.mxu1 %v5014_v17  ;;  %v5053_v38 = vld [vmem:[#allocation3 + $0xa4] ss:$16 sps:$4 sm:$0xff]   ;;  %v5042_v39 = vld [vmem:[#allocation3 + $0x68] ss:$16 sps:$4 sm:$0xff]   ;;  %v5050_v40 = vld [vmem:[#allocation3 + $0x8c] ss:$16 sps:$4 sm:$0xff]  }
  0x45   : > { %656 = vmatpush1.bf16.msra.mxu0 %v4992_v8  ;;  %v5051_v41 = vld [vmem:[#allocation3 + $0xa0] ss:$16 sps:$4 sm:$0xff]   ;;  %v5048_v43 = vld [vmem:[#allocation3 + $0x88] ss:$16 sps:$4 sm:$0xff]   ;;  %v5056_v44 = vld [vmem:[#allocation3 + $0xac] ss:$16 sps:$4 sm:$0xff]  }
  0x46   : > { %2145 = vmatprep.subr.bf16.mxu0 %v5019_v18  ;;  %v4997_v42 = vld [vmem:[%s5516_s25 + $0x20] sm:$0xff]   ;;  %v5054_v48 = vld [vmem:[#allocation3 + $0xa8] ss:$16 sps:$4 sm:$0xff]   ;;  %v5062_v49 = vld [vmem:[#allocation3 + $0xcc] ss:$16 sps:$4 sm:$0xff]   ;;  %s354_s18 = scalar_lea.vmem [#allocation6], %s4212_s10 }
  0x47   : > { %849 = vmatpush1.bf16.msra.mxu1 %v5016_v20  ;;  %v5059_v45 = vld [vmem:[#allocation3 + $0xc4] ss:$16 sps:$4 sm:$0xff]   ;;  %v5057_v46 = vld [vmem:[#allocation3 + $0xc0] ss:$16 sps:$4 sm:$0xff]   ;;  %v4998_v51 = vld [vmem:[%s5516_s25 + $0x28] sm:$0xff]   ;;  %s4135_s23 = sshll.u32 %s354_s18, 4  ;;  %s6356_s23 = int_to_ptr.vmem [resolvable:$true] %s4135_s23 }
  0x48   : > { %4247 = vmatmul.mubr.msk.bf16.vlgmr.msra.gmra.mrb[0].mxu0 %vm600_vm0, %v4993_v9  ;;  %2531 = vmatprep.subr.bf16.mxu1 %v5023_v21  ;;  %v5065_v47 = vld [vmem:[#allocation3 + $0xe4] ss:$16 sps:$4 sm:$0xff]   ;;  %v5063_v50 = vld [vmem:[#allocation3 + $0xe0] ss:$16 sps:$4 sm:$0xff]   ;;  %v5060_v52 = vld [vmem:[#allocation3 + $0xc8] ss:$16 sps:$4 sm:$0xff]  }
  0x49   : > { %691 = vmatprep.mubr.bf16.mxu0 %v5352_v0  ;;  %2146 = vmatpush1.bf16.msra.mxu0 %v5017_v19  ;;  %v5068_v53 = vld [vmem:[#allocation3 + $0xec] ss:$16 sps:$4 sm:$0xff]   ;;  %v5071_v54 = vld [vmem:[#allocation3 + $0x104] ss:$16 sps:$4 sm:$0xff]   ;;  %v5069_v55 = vld [vmem:[#allocation3 + $0x100] ss:$16 sps:$4 sm:$0xff]  }
  0x4a   : > { %2147 = vmatprep.subr.bf16.mxu0 %v5026_v22  ;;  %4263 = vmatmul.mubr.msk.bf16.vlgmr.msra.gmra.mrb[0].mxu1 %vm600_vm0, %v4993_v9  ;;  %v5077_v56 = vld [vmem:[#allocation3 + $0x124] ss:$16 sps:$4 sm:$0xff]   ;;  %v5066_v57 = vld [vmem:[#allocation3 + $0xe8] ss:$16 sps:$4 sm:$0xff]   ;;  %v5074_v58 = vld [vmem:[#allocation3 + $0x10c] ss:$16 sps:$4 sm:$0xff]  }
  0x4b   : > { %2532 = vmatpush1.bf16.msra.mxu1 %v5021_v25  ;;  %884 = vmatprep.mubr.bf16.mxu1 %v5352_v0  ;;  %v5075_v59 = vld [vmem:[#allocation3 + $0x120] ss:$16 sps:$4 sm:$0xff]   ;;  %v5072_v61 = vld [vmem:[#allocation3 + $0x108] ss:$16 sps:$4 sm:$0xff]   ;;  %v5080_v62 = vld [vmem:[#allocation3 + $0x12c] ss:$16 sps:$4 sm:$0xff]  }
  0x4c   : > { %2533 = vmatprep.subr.bf16.mxu1 %v5030_v27  ;;  %v4999_v60 = vld [vmem:[%s5516_s25 + $0x30] sm:$0xff]   ;;  %v5078_v2 = vld [vmem:[#allocation3 + $0x128] ss:$16 sps:$4 sm:$0xff]   ;;  %v5086_v4 = vld [vmem:[#allocation3 + $0x14c] ss:$16 sps:$4 sm:$0xff]   ;;  %s4121_s22 = scalar_lea.sflag [#allocation5], %s352_s17 }
  0x4d   : > { %2148 = vmatpush1.bf16.msra.mxu0 %v5024_v23  ;;  %v5083_v63 = vld [vmem:[#allocation3 + $0x144] ss:$16 sps:$4 sm:$0xff]   ;;  %v5081_v1 = vld [vmem:[#allocation3 + $0x140] ss:$16 sps:$4 sm:$0xff]   ;;  %v5000_v6 = vld [vmem:[%s5516_s25 + $0x38] sm:$0xff]   ;;  %s5281_s24 = scalar_lea.vmem %s6356_s23, 32 }
  0x4e   : > { %2149 = vmatprep.subr.bf16.mxu0 %v5033_v26  ;;  %v5089_v3 = vld [vmem:[#allocation3 + $0x164] ss:$16 sps:$4 sm:$0xff]   ;;  %v5087_v5 = vld [vmem:[#allocation3 + $0x160] ss:$16 sps:$4 sm:$0xff]   ;;  %v5084_v7 = vld [vmem:[#allocation3 + $0x148] ss:$16 sps:$4 sm:$0xff]   ;;  %p5282_p6 = scmp.ne.s32.totalorder %s6356_s23, %s5281_s24 }
  0x4f   : > { %2534 = vmatpush1.bf16.msra.mxu1 %v5028_v30  ;;  %v5095_v8 = vld [vmem:[#allocation3 + $0x184] ss:$16 sps:$4 sm:$0xff]   ;;  %v5092_v9 = vld [vmem:[#allocation3 + $0x16c] ss:$16 sps:$4 sm:$0xff]   ;;  %v5093_v10 = vld [vmem:[#allocation3 + $0x180] ss:$16 sps:$4 sm:$0xff]  }
  0x50   : > { %4248 = vmatmul.mubr.msk.bf16.gmra.mrb[4].mxu0 %vm600_vm0, %v4994_v15  ;;  %2535 = vmatprep.subr.bf16.mxu1 %v5037_v31  ;;  %v5101_v11 = vld [vmem:[#allocation3 + $0x1a4] ss:$16 sps:$4 sm:$0xff]   ;;  %v5090_v12 = vld [vmem:[#allocation3 + $0x168] ss:$16 sps:$4 sm:$0xff]   ;;  %v5098_v13 = vld [vmem:[#allocation3 + $0x18c] ss:$16 sps:$4 sm:$0xff]   ;;  %p5283_p10 = pnand %p5282_p6, %p6418_p9 }
  0x51   : > { %701 = vmatprep.mubr.bf16.mxu0 %v5352_v0  ;;  %2150 = vmatpush1.bf16.msra.mxu0 %v5031_v28  ;;  %v5099_v14 = vld [vmem:[#allocation3 + $0x1a0] ss:$16 sps:$4 sm:$0xff]   ;;  %v5096_v16 = vld [vmem:[#allocation3 + $0x188] ss:$16 sps:$4 sm:$0xff]   ;;  %v5107_v17 = vld [vmem:[#allocation3 + $0x1c4] ss:$16 sps:$4 sm:$0xff]  }
  0x52   : > { %2151 = vmatprep.subr.bf16.mxu0 %v5040_v29  ;;  %4264 = vmatmul.mubr.msk.bf16.gmra.mrb[4].mxu1 %vm600_vm0, %v4994_v15  ;;  %v5001_v15 = vld [vmem:[%s5516_s25 + $0x40] sm:$0xff]   ;;  %v5104_v18 = vld [vmem:[#allocation3 + $0x1ac] ss:$16 sps:$4 sm:$0xff]   ;;  %v5102_v20 = vld [vmem:[#allocation3 + $0x1a8] ss:$16 sps:$4 sm:$0xff]   ;;  %p5284_p12 = pneg %p5283_p10  ;;  %s5354_s29 = smov [#allocation6]  }
  0x53   : > { %894 = vmatprep.mubr.bf16.mxu1 %v5352_v0  ;;  %2536 = vmatpush1.bf16.msra.mxu1 %v5035_v34  ;;  %v5105_v19 = vld [vmem:[#allocation3 + $0x1c0] ss:$16 sps:$4 sm:$0xff]   ;;  %v5110_v21 = vld [vmem:[#allocation3 + $0x1cc] ss:$16 sps:$4 sm:$0xff]   ;;  %v5108_v23 = vld [vmem:[#allocation3 + $0x1c8] ss:$16 sps:$4 sm:$0xff]  }
  0x54   : > { %2537 = vmatprep.subr.bf16.mxu1 %v5044_v35  ;;  %v5002_v22 = vld [vmem:[%s5516_s25 + $0x48] sm:$0xff]   ;;  %v5013_v25 = vld [vmem:[%s5516_s25 + $0x58] sm:$0xff]   ;;  %v5020_v26 = vld [vmem:[%s5516_s25 + $0x60] sm:$0xff]   ;;  %s5285_s30 = sshll.u32 %s5354_s29, 4  ;;  %s5286_s30 = int_to_ptr.vmem [resolvable:$false] %s5285_s30 }
  0x55   : > { %2152 = vmatpush1.bf16.msra.mxu0 %v5038_v32  ;;  %v5113_v27 = vld [vmem:[#allocation3 + $0x1e4] ss:$16 sps:$4 sm:$0xff]   ;;  %v5116_v28 = vld [vmem:[#allocation3 + $0x1ec] ss:$16 sps:$4 sm:$0xff]   ;;  %v5111_v29 = vld [vmem:[#allocation3 + $0x1e0] ss:$16 sps:$4 sm:$0xff]   ;;  %p5288_p2 = scmp.lt.s32.totalorder %s6356_s23, %s5286_s30 }
  0x56   : > { %2153 = vmatprep.subr.bf16.mxu0 %v5047_v36  ;;  %v5114_v30 = vld [vmem:[#allocation3 + $0x1e8] ss:$16 sps:$4 sm:$0xff]   ;;  %v5119_v31 = vld [vmem:[#allocation3 + $0x204] ss:$16 sps:$4 sm:$0xff]   ;;  %v6409_v36 = vlaneseq  ;;  %s5287_s8 = scalar_lea.vmem %s5286_s30, 64 }
  0x57   : > { %2538 = vmatpush1.bf16.msra.mxu1 %v5042_v39  ;;  %v5027_v32 = vld [vmem:[%s5516_s25 + $0x68] sm:$0xff]   ;;  %v5034_v34 = vld [vmem:[%s5516_s25 + $0x70] sm:$0xff]   ;;  %v5041_v35 = vld [vmem:[%s5516_s25 + $0x78] sm:$0xff]   ;;  %p5289_p3 = scmp.lt.s32.totalorder %s5287_s8, %s5281_s24 }
  0x58   : > { %4249 = vmatmul.mubr.msk.bf16.gmra.mrb[8].mxu0 %vm600_vm0, %v4995_v24  ;;  %2539 = vmatprep.subr.bf16.mxu1 %v5050_v40  ;;  %v418_v39 = vld [vmem:[%s6398_s2] sm:$0xf] }
  0x59   : > { %711 = vmatprep.mubr.bf16.mxu0 %v5352_v0  ;;  %2154 = vmatpush1.bf16.msra.mxu0 %v5045_v37  ;;  %v5630_v37 = vshrl.u32 %v6409_v36, 7  ;;  %p5290_p4 = por %p5289_p3, %p5288_p2 }
  0x5a   : > { %2155 = vmatprep.subr.bf16.mxu0 %v5053_v38  ;;  %4265 = vmatmul.mubr.msk.bf16.gmra.mrb[8].mxu1 %vm600_vm0, %v4995_v24  ;;  %v5006_v24 = vld [vmem:[%s5516_s25 + $0x50] sm:$0xff]   ;;  %s6354_s25 = scalar_lea.hbm %s6405_s9, %s5492_s28 }
  0x5b   : > { %904 = vmatprep.mubr.bf16.mxu1 %v5352_v0  ;;  %2540 = vmatpush1.bf16.msra.mxu1 %v5048_v43  ;;  %v422_v38 = vsub.s32 0, %v5630_v37  ;;  %v426_v40 = vsub.s32 1, %v5630_v37  ;;  %p5291_p7 = pnand %p5290_p4, %p5284_p12 }
  0x5c   : > { %2541 = vmatprep.subr.bf16.mxu1 %v5056_v44 }
  0x5d   : > { %2156 = vmatpush1.bf16.msra.mxu0 %v5051_v41  ;;  %v5639_v41 = vrot.slane %v418_v39, %v422_v38 }
  0x5e   : > { %2157 = vmatprep.subr.bf16.mxu0 %v5059_v45 }
  0x5f   : > { %2542 = vmatpush1.bf16.msra.mxu1 %v5054_v48 }
  0x60   : > { %4250 = vmatmul.mubr.msk.bf16.gmra.mrb[12].mxu0 %vm600_vm0, %v4996_v33  ;;  %2543 = vmatprep.subr.bf16.mxu1 %v5062_v49 }
  0x61   : > { %721 = vmatprep.mubr.bf16.mxu0 %v5352_v0  ;;  %2158 = vmatpush1.bf16.msra.mxu0 %v5057_v46 }
  0x62   : > { %2159 = vmatprep.subr.bf16.mxu0 %v5065_v47  ;;  %4266 = vmatmul.mubr.msk.bf16.gmra.mrb[12].mxu1 %vm600_vm0, %v4996_v33  ;;  %v5122_v33 = vld [vmem:[#allocation3 + $0x20c] ss:$16 sps:$4 sm:$0xff]  }
  0x63   : > { %914 = vmatprep.mubr.bf16.mxu1 %v5352_v0  ;;  %2544 = vmatpush1.bf16.msra.mxu1 %v5060_v52 }
  0x64   : > { %2545 = vmatprep.subr.bf16.mxu1 %v5068_v53 }
  0x65   : > { %2160 = vmatpush1.bf16.msra.mxu0 %v5063_v50 }
  0x66   : > { %2161 = vmatprep.subr.bf16.mxu0 %v5071_v54 }
  0x67   : > { %2546 = vmatpush1.bf16.msra.mxu1 %v5066_v57 }
  0x68   : > { %4251 = vmatmul.mubr.msk.bf16.gmra.mrb[16].mxu0 %vm600_vm0, %v4997_v42  ;;  %2547 = vmatprep.subr.bf16.mxu1 %v5074_v58 }
  0x69   : > { %731 = vmatprep.mubr.bf16.mxu0 %v5352_v0  ;;  %2162 = vmatpush1.bf16.msra.mxu0 %v5069_v55 }
  0x6a   : > { %2163 = vmatprep.subr.bf16.mxu0 %v5077_v56  ;;  %4267 = vmatmul.mubr.msk.bf16.gmra.mrb[16].mxu1 %vm600_vm0, %v4997_v42 }
  0x6b   : > { %924 = vmatprep.mubr.bf16.mxu1 %v5352_v0  ;;  %2548 = vmatpush1.bf16.msra.mxu1 %v5072_v61 }
  0x6c   : > { %2549 = vmatprep.subr.bf16.mxu1 %v5080_v62  ;;  %v5117_v62 = vld [vmem:[#allocation3 + $0x200] ss:$16 sps:$4 sm:$0xff]  }
  0x6d   : > { %2164 = vmatpush1.bf16.msra.mxu0 %v5075_v59 }
  0x6e   : > { %2165 = vmatprep.subr.bf16.mxu0 %v5083_v63  ;;  %v430_v63 = vsub.s32 2, %v5630_v37 }
  0x6f   : > { %2550 = vmatpush1.bf16.msra.mxu1 %v5078_v2 }
  0x70   : > { %4252 = vmatmul.mubr.msk.bf16.gmra.mrb[20].mxu0 %vm600_vm0, %v4998_v51  ;;  %2551 = vmatprep.subr.bf16.mxu1 %v5086_v4  ;;  %v5120_v4 = vld [vmem:[#allocation3 + $0x208] ss:$16 sps:$4 sm:$0xff]  }
  0x71   : > { %741 = vmatprep.mubr.bf16.mxu0 %v5352_v0  ;;  %2166 = vmatpush1.bf16.msra.mxu0 %v5081_v1 }
  0x72   : > { %2167 = vmatprep.subr.bf16.mxu0 %v5089_v3  ;;  %4268 = vmatmul.mubr.msk.bf16.gmra.mrb[20].mxu1 %vm600_vm0, %v4998_v51 }
  0x73   : > { %934 = vmatprep.mubr.bf16.mxu1 %v5352_v0  ;;  %2552 = vmatpush1.bf16.msra.mxu1 %v5084_v7 }
  0x74   : > { %2553 = vmatprep.subr.bf16.mxu1 %v5092_v9 }
  0x75   : > { %2168 = vmatpush1.bf16.msra.mxu0 %v5087_v5  ;;  %v5125_v5 = vld [vmem:[#allocation3 + $0x224] ss:$16 sps:$4 sm:$0xff]  }
  0x76   : > { %2169 = vmatprep.subr.bf16.mxu0 %v5095_v8 }
  0x77   : > { %2554 = vmatpush1.bf16.msra.mxu1 %v5090_v12 }
  0x78   : > { %4253 = vmatmul.mubr.msk.bf16.gmra.mrb[24].mxu0 %vm600_vm0, %v4999_v60  ;;  %2555 = vmatprep.subr.bf16.mxu1 %v5098_v13 }
  0x79   : > { %751 = vmatprep.mubr.bf16.mxu0 %v5352_v0  ;;  %2170 = vmatpush1.bf16.msra.mxu0 %v5093_v10  ;;  %v5128_v10 = vld [vmem:[#allocation3 + $0x22c] ss:$16 sps:$4 sm:$0xff]  }
  0x7a   : > { %2171 = vmatprep.subr.bf16.mxu0 %v5101_v11  ;;  %4269 = vmatmul.mubr.msk.bf16.gmra.mrb[24].mxu1 %vm600_vm0, %v4999_v60 }
  0x7b   : > { %944 = vmatprep.mubr.bf16.mxu1 %v5352_v0  ;;  %2556 = vmatpush1.bf16.msra.mxu1 %v5096_v16  ;;  %v5123_v16 = vld [vmem:[#allocation3 + $0x220] ss:$16 sps:$4 sm:$0xff]  }
  0x7c   : > { %2557 = vmatprep.subr.bf16.mxu1 %v5104_v18 }
  0x7d   : > { %2172 = vmatpush1.bf16.msra.mxu0 %v5099_v14  ;;  %v5657_v14 = vrot.slane %v418_v39, %v430_v63 }
  0x7e   : > { %2173 = vmatprep.subr.bf16.mxu0 %v5107_v17  ;;  %v5126_v17 = vld [vmem:[#allocation3 + $0x228] ss:$16 sps:$4 sm:$0xff]  }
  0x7f   : > { %2558 = vmatpush1.bf16.msra.mxu1 %v5102_v20 }
  0x80   : > { %4254 = vmatmul.mubr.msk.bf16.gmra.mrb[28].mxu0 %vm600_vm0, %v5000_v6  ;;  %2559 = vmatprep.subr.bf16.mxu1 %v5110_v21  ;;  %v5131_v21 = vld [vmem:[#allocation3 + $0x244] ss:$16 sps:$4 sm:$0xff]  }
  0x81   : > { %761 = vmatprep.mubr.bf16.mxu0 %v5352_v0  ;;  %2174 = vmatpush1.bf16.msra.mxu0 %v5105_v19 }
  0x82   : > { %4270 = vmatmul.mubr.msk.bf16.gmra.mrb[28].mxu1 %vm600_vm0, %v5000_v6  ;;  %2175 = vmatprep.subr.bf16.mxu0 %v5113_v27  ;;  %v434_v6 = vsub.s32 3, %v5630_v37 }
  0x83   : > { %954 = vmatprep.mubr.bf16.mxu1 %v5352_v0  ;;  %2560 = vmatpush1.bf16.msra.mxu1 %v5108_v23 }
  0x84   : > { %2561 = vmatprep.subr.bf16.mxu1 %v5116_v28  ;;  %v5661_v18 = vrot.slane %v418_v39, %v434_v6 }
  0x85   : > { %2176 = vmatpush1.bf16.msra.mxu0 %v5111_v29 }
  0x86   : > { %2338 = vmatprep.subr.bf16.mxu0 %v5119_v31  ;;  %v5132_v31 = vld [vmem:[#allocation3 + $0x248] ss:$16 sps:$4 sm:$0xff]  }
  0x87   : > { %2562 = vmatpush1.bf16.msra.mxu1 %v5114_v30  ;;  %v5129_v30 = vld [vmem:[#allocation3 + $0x240] ss:$16 sps:$4 sm:$0xff]  }
  0x88   : > { %4255 = vmatmul.mubr.msk.bf16.gmra.mrb[32].mxu0 %vm600_vm0, %v5001_v15  ;;  %2724 = vmatprep.subr.bf16.mxu1 %v5122_v33 }
  0x89   : > { %771 = vmatprep.mubr.bf16.mxu0 %v5352_v0 }
  0x8a   : > { %4271 = vmatmul.mubr.msk.bf16.gmra.mrb[32].mxu1 %vm600_vm0, %v5001_v15 }
  0x8b   : > { %964 = vmatprep.mubr.bf16.mxu1 %v5352_v0 }
  0x90   : > { %4256 = vmatmul.mubr.msk.bf16.gmra.mrb[36].mxu0 %vm600_vm0, %v5002_v22 }
  0x91   : > { %781 = vmatprep.mubr.bf16.mxu0 %v5352_v0 }
  0x92   : > { %4272 = vmatmul.mubr.msk.bf16.gmra.mrb[36].mxu1 %vm600_vm0, %v5002_v22  ;;  %v5134_v22 = vld [vmem:[#allocation3 + $0x24c] ss:$16 sps:$4 sm:$0xff]  }
  0x93   : > { %974 = vmatprep.mubr.bf16.mxu1 %v5352_v0 }
  0x98   : > { %4257 = vmatmul.mubr.msk.bf16.gmra.mrb[40].mxu0 %vm600_vm0, %v5006_v24 }
  0x99   : > { %791 = vmatprep.mubr.bf16.mxu0 %v5352_v0 }
  0x9a   : > { %4273 = vmatmul.mubr.msk.bf16.gmra.mrb[40].mxu1 %vm600_vm0, %v5006_v24 }
  0x9b   : > { %984 = vmatprep.mubr.bf16.mxu1 %v5352_v0 }
  0xa0   : > { %4258 = vmatmul.mubr.msk.bf16.gmra.mrb[44].mxu0 %vm600_vm0, %v5013_v25 }
  0xa1   : > { %801 = vmatprep.mubr.bf16.mxu0 %v5352_v0 }
  0xa2   : > { %4274 = vmatmul.mubr.msk.bf16.gmra.mrb[44].mxu1 %vm600_vm0, %v5013_v25 }
  0xa3   : > { %994 = vmatprep.mubr.bf16.mxu1 %v5352_v0 }
  0xa8   : > { %4259 = vmatmul.mubr.msk.bf16.gmra.mrb[48].mxu0 %vm600_vm0, %v5020_v26 }
  0xa9   : > { %811 = vmatprep.mubr.bf16.mxu0 %v5352_v0 }
  0xaa   : > { %4275 = vmatmul.mubr.msk.bf16.gmra.mrb[48].mxu1 %vm600_vm0, %v5020_v26 }
  0xab   : > { %1004 = vmatprep.mubr.bf16.mxu1 %v5352_v0 }
  0xb0   : > { %4260 = vmatmul.mubr.msk.bf16.gmra.mrb[52].mxu0 %vm600_vm0, %v5027_v32 }
  0xb1   : > { %821 = vmatprep.mubr.bf16.mxu0 %v5352_v0 }
  0xb2   : > { %4276 = vmatmul.mubr.msk.bf16.gmra.mrb[52].mxu1 %vm600_vm0, %v5027_v32 }
  0xb3   : > { %1014 = vmatprep.mubr.bf16.mxu1 %v5352_v0 }
  0xb8   : > { %4261 = vmatmul.mubr.msk.bf16.gmra.mrb[56].mxu0 %vm600_vm0, %v5034_v34 }
  0xb9   : > { %831 = vmatprep.mubr.bf16.mxu0 %v5352_v0 }
  0xba   : > { %4277 = vmatmul.mubr.msk.bf16.gmra.mrb[56].mxu1 %vm600_vm0, %v5034_v34 }
  0xbb   : > { %1024 = vmatprep.mubr.bf16.mxu1 %v5352_v0  ;;  %v5643_v0 = vrot.slane %v418_v39, %v426_v40 }
  0xc0   : > { %4262 = vmatmul.mubr.msk.bf16.gmra.mrb[60].mxu0 %vm600_vm0, %v5041_v35 }
  0xc2   : > { %4278 = vmatmul.mubr.msk.bf16.gmra.mrb[60].mxu1 %vm600_vm0, %v5041_v35 }
 0x11b   : > { %v683_v42 = vpop.f32.mrb[0].mxu0 }
 0x11c   : > { %v684_v43 = vadd.f32 %v683_v42, %v5639_v41  ;;  %v685_v44 = vpop.f32.mrb[1].mxu0  ;;  %v5137_v42 = vld [vmem:[#allocation3 + $0x264] ss:$16 sps:$4 sm:$0xff]  }
 0x11d   : > { %v686_v45 = vadd.f32 %v685_v44, %v5643_v0  ;;  %v687_v46 = vpop.f32.mrb[2].mxu0  ;;  %v876_v26 = vpop.f32.mrb[0].mxu1 }
 0x11e   : > { %v1035_v47 = vmul.f32 0.01, %v684_v43  ;;  %v688_v48 = vadd.f32 %v687_v46, %v5639_v41  ;;  %v689_v49 = vpop.f32.mrb[3].mxu0  ;;  %v877_v32 = vadd.f32 %v876_v26, %v5657_v14  ;;  %v878_v33 = vpop.f32.mrb[1].mxu1  ;;  %v5149_v26 = vld [vmem:[#allocation3 + $0x2a4] ss:$16 sps:$4 sm:$0xff]  }
 0x11f   : > { %v1036_v50 = vmul.f32 0.01, %v686_v45  ;;  %v690_v51 = vadd.f32 %v689_v49, %v5643_v0  ;;  %v5667_v44 = vadd.f32 %v878_v33, %v5661_v18 }
 0x120   : > { %v1039_v52 = vmul.f32 0.01, %v688_v48  ;;  %v1163_v54 = vmax.f32 %v684_v43, %v1035_v47  ;;  %v5140_v43 = vld [vmem:[#allocation3 + $0x26c] ss:$16 sps:$4 sm:$0xff]   ;;  %v1037_v49 = vmul.f32 0.01, %v877_v32 }
 0x121   : > { %v1040_v53 = vmul.f32 0.01, %v690_v51  ;;  %v1164_v56 = vmax.f32 %v686_v45, %v1036_v50  ;;  %v880_v45 = vpop.f32.mrb[2].mxu1 }
 0x122   : > { %v1167_v55 = vmax.f32 %v688_v48, %v1039_v52  ;;  %v881_v50 = vadd.f32 %v880_v45, %v5657_v14 }
 0x123   : > { %v1168_v57 = vmax.f32 %v690_v51, %v1040_v53  ;;  %v693_v58 = vpop.f32.mrb[4].mxu0  ;;  %v882_v51 = vpop.f32.mrb[3].mxu1 }
 0x124   : > { %v1291_v59 = vpack.c.bf16 %v1167_v55, %v1163_v54  ;;  %v694_v60 = vadd.f32 %v693_v58, %v5639_v41  ;;  %v695_v61 = vpop.f32.mrb[5].mxu0  ;;  %v5673_v54 = vmul.f32 0.01, %v5667_v44  ;;  %v5676_v55 = vadd.f32 %v882_v51, %v5661_v18  ;;  %v5150_v51 = vld [vmem:[#allocation3 + $0x2a8] ss:$16 sps:$4 sm:$0xff]  }
 0x125   : > { %v696_v1 = vadd.f32 %v695_v61, %v5643_v0  ;;  %v697_v2 = vpop.f32.mrb[6].mxu0  ;;  %v1292_v3 = vpack.c.bf16 %v1168_v57, %v1164_v56  ;;  %v5135_v57 = vld [vmem:[#allocation3 + $0x260] ss:$16 sps:$4 sm:$0xff]   ;;  %v1165_v58 = vmax.f32 %v877_v32, %v1037_v49  ;;  %v5138_v61 = vld [vmem:[#allocation3 + $0x268] ss:$16 sps:$4 sm:$0xff]  }
 0x126   : > { %v1043_v7 = vmul.f32 0.01, %v694_v60  ;;  %v698_v8 = vadd.f32 %v697_v2, %v5639_v41  ;;  %v699_v9 = vpop.f32.mrb[7].mxu0 }
 0x127   : > { %v1044_v11 = vmul.f32 0.01, %v696_v1  ;;  %v700_v12 = vadd.f32 %v699_v9, %v5643_v0  ;;  %2177 = vmatprep.mubr.bf16.mxu0 %v1292_v3  ;;  %2563 = vmatprep.mubr.bf16.mxu1 %v1292_v3  ;;  %v5143_v3 = vld [vmem:[#allocation3 + $0x284] ss:$16 sps:$4 sm:$0xff]  }
 0x128   : > { %v1047_v13 = vmul.f32 0.01, %v698_v8  ;;  %2178 = vmatmul.mubr.bf16.vlgmr.msra.gmra.mrb[64].mxu0 %v1291_v59  ;;  %2564 = vmatmul.mubr.bf16.vlgmr.msra.gmra.mrb[64].mxu1 %v1291_v59  ;;  %v1171_v19 = vmax.f32 %v694_v60, %v1043_v7  ;;  %v1041_v59 = vmul.f32 0.01, %v881_v50 }
 0x129   : > { %v1048_v15 = vmul.f32 0.01, %v700_v12  ;;  %2339 = vmatpush1.bf16.msra.mxu0 %v5117_v62  ;;  %2725 = vmatpush1.bf16.msra.mxu1 %v5120_v4  ;;  %v1172_v23 = vmax.f32 %v696_v1, %v1044_v11  ;;  %v5679_v62 = vmul.f32 0.01, %v5676_v55  ;;  %v5146_v4 = vld [vmem:[#allocation3 + $0x28c] ss:$16 sps:$4 sm:$0xff]  }
 0x12a   : > { %v1175_v20 = vmax.f32 %v698_v8, %v1047_v13  ;;  %2340 = vmatprep.subr.bf16.mxu0 %v5125_v5  ;;  %2726 = vmatprep.subr.bf16.mxu1 %v5128_v10  ;;  %v1169_v5 = vmax.f32 %v881_v50, %v1041_v59  ;;  %v1166_v10 = vmax.f32 %v5667_v44, %v5673_v54  ;;  %v5155_v54 = vld [vmem:[#allocation3 + $0x2c4] ss:$16 sps:$4 sm:$0xff]  }
 0x12b   : > { %v1176_v24 = vmax.f32 %v700_v12, %v1048_v15  ;;  %v703_v25 = vpop.f32.mrb[8].mxu0  ;;  %v1170_v11 = vmax.f32 %v5676_v55, %v5679_v62  ;;  %v886_v12 = vpop.f32.mrb[4].mxu1  ;;  %v5158_v55 = vld [vmem:[#allocation3 + $0x2cc] ss:$16 sps:$4 sm:$0xff]  }
 0x12c   : > { %v704_v27 = vadd.f32 %v703_v25, %v5639_v41  ;;  %v705_v28 = vpop.f32.mrb[9].mxu0  ;;  %v1295_v29 = vpack.c.bf16 %v1175_v20, %v1171_v19  ;;  %v5144_v19 = vld [vmem:[#allocation3 + $0x288] ss:$16 sps:$4 sm:$0xff]   ;;  %v5686_v20 = vpack.c.bf16 %v1169_v5, %v1165_v58  ;;  %v5153_v5 = vld [vmem:[#allocation3 + $0x2c0] ss:$16 sps:$4 sm:$0xff]  }
 0x12d   : > { %v706_v34 = vadd.f32 %v705_v28, %v5643_v0  ;;  %v707_v35 = vpop.f32.mrb[10].mxu0  ;;  %v1296_v39 = vpack.c.bf16 %v1176_v24, %v1172_v23  ;;  %2341 = vmatpush1.bf16.msra.mxu0 %v5123_v16  ;;  %2727 = vmatpush1.bf16.msra.mxu1 %v5126_v17  ;;  %v5141_v17 = vld [vmem:[#allocation3 + $0x280] ss:$16 sps:$4 sm:$0xff]  }
 0x12e   : > { %v1051_v46 = vmul.f32 0.01, %v704_v27  ;;  %v708_v47 = vadd.f32 %v707_v35, %v5639_v41  ;;  %v709_v48 = vpop.f32.mrb[11].mxu0  ;;  %2342 = vmatprep.subr.bf16.mxu0 %v5131_v21  ;;  %2728 = vmatprep.subr.bf16.mxu1 %v5134_v22  ;;  %v887_v21 = vadd.f32 %v886_v12, %v5657_v14  ;;  %v888_v22 = vpop.f32.mrb[5].mxu1 }
 0x12f   : > { %v1052_v52 = vmul.f32 0.01, %v706_v34  ;;  %v710_v53 = vadd.f32 %v709_v48, %v5643_v0  ;;  %2187 = vmatprep.mubr.bf16.mxu0 %v1296_v39  ;;  %2573 = vmatprep.mubr.bf16.mxu1 %v1296_v39  ;;  %v5691_v28 = vadd.f32 %v888_v22, %v5661_v18 }
 0x130   : > { %v1055_v56 = vmul.f32 0.01, %v708_v47  ;;  %2188 = vmatmul.mubr.bf16.gmra.mrb[68].mxu0 %v1295_v29  ;;  %2574 = vmatmul.mubr.bf16.gmra.mrb[68].mxu1 %v1295_v29  ;;  %v1179_v1 = vmax.f32 %v704_v27, %v1051_v46  ;;  %v5152_v27 = vld [vmem:[#allocation3 + $0x2ac] ss:$16 sps:$4 sm:$0xff]   ;;  %v890_v29 = vpop.f32.mrb[6].mxu1 }
 0x131   : > { %v1056_v60 = vmul.f32 0.01, %v710_v53  ;;  %2343 = vmatpush1.bf16.msra.mxu0 %v5129_v30  ;;  %2729 = vmatpush1.bf16.msra.mxu1 %v5132_v31  ;;  %v1180_v7 = vmax.f32 %v706_v34, %v1052_v52  ;;  %v1045_v33 = vmul.f32 0.01, %v887_v21  ;;  %v891_v34 = vadd.f32 %v890_v29, %v5657_v14  ;;  %v892_v35 = vpop.f32.mrb[7].mxu1 }
 0x132   : > { %v1183_v2 = vmax.f32 %v708_v47, %v1055_v56  ;;  %2344 = vmatprep.subr.bf16.mxu0 %v5137_v42  ;;  %2730 = vmatprep.subr.bf16.mxu1 %v5140_v43  ;;  %v5697_v43 = vmul.f32 0.01, %v5691_v28  ;;  %v5700_v44 = vadd.f32 %v892_v35, %v5661_v18  ;;  %v5147_v46 = vld [vmem:[#allocation3 + $0x2a0] ss:$16 sps:$4 sm:$0xff]  }
 0x133   : > { %v1184_v8 = vmax.f32 %v710_v53, %v1056_v60  ;;  %v713_v9 = vpop.f32.mrb[12].mxu0  ;;  %v1173_v47 = vmax.f32 %v887_v21, %v1045_v33  ;;  %v1049_v48 = vmul.f32 0.01, %v891_v34 }
 0x134   : > { %v714_v13 = vadd.f32 %v713_v9, %v5639_v41  ;;  %v715_v15 = vpop.f32.mrb[13].mxu0  ;;  %v1299_v16 = vpack.c.bf16 %v1183_v2, %v1179_v1  ;;  %v5703_v52 = vmul.f32 0.01, %v5700_v44  ;;  %v896_v1 = vpop.f32.mrb[8].mxu1 }
 0x135   : > { %v716_v23 = vadd.f32 %v715_v15, %v5643_v0  ;;  %v717_v24 = vpop.f32.mrb[14].mxu0  ;;  %v1300_v25 = vpack.c.bf16 %v1184_v8, %v1180_v7  ;;  %2345 = vmatpush1.bf16.msra.mxu0 %v5135_v57  ;;  %2731 = vmatpush1.bf16.msra.mxu1 %v5138_v61  ;;  %v1177_v56 = vmax.f32 %v891_v34, %v1049_v48  ;;  %v5156_v7 = vld [vmem:[#allocation3 + $0x2c8] ss:$16 sps:$4 sm:$0xff]   ;;  %v898_v9 = vpop.f32.mrb[9].mxu1  ;;  %v5161_v15 = vld [vmem:[#allocation3 + $0x2e4] ss:$16 sps:$4 sm:$0xff]  }
 0x136   : > { %v1059_v30 = vmul.f32 0.01, %v714_v13  ;;  %v718_v31 = vadd.f32 %v717_v24, %v5639_v41  ;;  %v719_v32 = vpop.f32.mrb[15].mxu0  ;;  %2346 = vmatprep.subr.bf16.mxu0 %v5143_v3  ;;  %2732 = vmatprep.subr.bf16.mxu1 %v5146_v4  ;;  %v5705_v57 = vpack.c.bf16 %v1170_v11, %v1166_v10  ;;  %v1174_v61 = vmax.f32 %v5691_v28, %v5697_v43 }
 0x137   : > { %v1060_v39 = vmul.f32 0.01, %v716_v23  ;;  %v720_v42 = vadd.f32 %v719_v32, %v5643_v0  ;;  %2197 = vmatprep.mubr.bf16.mxu0 %v1300_v25  ;;  %2583 = vmatprep.mubr.bf16.mxu1 %v1300_v25  ;;  %v1178_v62 = vmax.f32 %v5700_v44, %v5703_v52  ;;  %v897_v8 = vadd.f32 %v896_v1, %v5657_v14  ;;  %v5159_v32 = vld [vmem:[#allocation3 + $0x2e0] ss:$16 sps:$4 sm:$0xff]  }
 0x138   : > { %v1063_v45 = vmul.f32 0.01, %v718_v31  ;;  %2198 = vmatmul.mubr.bf16.gmra.mrb[72].mxu0 %v1299_v16  ;;  %2584 = vmatmul.mubr.bf16.gmra.mrb[72].mxu1 %v1299_v16  ;;  %v1187_v49 = vmax.f32 %v714_v13, %v1059_v30  ;;  %v5713_v10 = vpack.c.bf16 %v1177_v56, %v1173_v47  ;;  %v5164_v16 = vld [vmem:[#allocation3 + $0x2ec] ss:$16 sps:$4 sm:$0xff]  }
 0x139   : > { %v1064_v50 = vmul.f32 0.01, %v720_v42  ;;  %2347 = vmatpush1.bf16.msra.mxu0 %v5141_v17  ;;  %2733 = vmatpush1.bf16.msra.mxu1 %v5144_v19  ;;  %v1188_v58 = vmax.f32 %v716_v23, %v1060_v39  ;;  %v5717_v17 = vadd.f32 %v898_v9, %v5661_v18  ;;  %v900_v19 = vpop.f32.mrb[10].mxu1  ;;  %v1053_v24 = vmul.f32 0.01, %v897_v8 }
 0x13a   : > { %v1191_v53 = vmax.f32 %v718_v31, %v1063_v45  ;;  %2348 = vmatprep.subr.bf16.mxu0 %v5149_v26  ;;  %2734 = vmatprep.subr.bf16.mxu1 %v5152_v27  ;;  %v901_v25 = vadd.f32 %v900_v19, %v5657_v14  ;;  %v902_v26 = vpop.f32.mrb[11].mxu1  ;;  %v5167_v45 = vld [vmem:[#allocation3 + $0x304] ss:$16 sps:$4 sm:$0xff]   ;;  %v5731_v48 = vpack.c.bf16 %v1178_v62, %v1174_v61 }
 0x13b   : > { %v1192_v59 = vmax.f32 %v720_v42, %v1064_v50  ;;  %v723_v60 = vpop.f32.mrb[16].mxu0  ;;  %v5723_v29 = vmul.f32 0.01, %v5717_v17  ;;  %v5726_v30 = vadd.f32 %v902_v26, %v5661_v18  ;;  %v1181_v33 = vmax.f32 %v897_v8, %v1053_v24  ;;  %v5162_v42 = vld [vmem:[#allocation3 + $0x2e8] ss:$16 sps:$4 sm:$0xff]  }
 0x13c   : > { %v724_v2 = vadd.f32 %v723_v60, %v5639_v41  ;;  %v725_v3 = vpop.f32.mrb[17].mxu0  ;;  %v1303_v4 = vpack.c.bf16 %v1191_v53, %v1187_v49  ;;  %v1057_v34 = vmul.f32 0.01, %v901_v25  ;;  %v5168_v60 = vld [vmem:[#allocation3 + $0x308] ss:$16 sps:$4 sm:$0xff]  }
 0x13d   : > { %v726_v11 = vadd.f32 %v725_v3, %v5643_v0  ;;  %v727_v12 = vpop.f32.mrb[18].mxu0  ;;  %v1304_v13 = vpack.c.bf16 %v1192_v59, %v1188_v58  ;;  %2349 = vmatpush1.bf16.msra.mxu0 %v5147_v46  ;;  %2735 = vmatpush1.bf16.msra.mxu1 %v5150_v51  ;;  %v5729_v43 = vmul.f32 0.01, %v5726_v30  ;;  %v5170_v46 = vld [vmem:[#allocation3 + $0x30c] ss:$16 sps:$4 sm:$0xff]   ;;  %v1182_v52 = vmax.f32 %v5717_v17, %v5723_v29 }
 0x13e   : > { %v1067_v21 = vmul.f32 0.01, %v724_v2  ;;  %v728_v22 = vadd.f32 %v727_v12, %v5639_v41  ;;  %v729_v23 = vpop.f32.mrb[19].mxu0  ;;  %2350 = vmatprep.subr.bf16.mxu0 %v5155_v54  ;;  %2736 = vmatprep.subr.bf16.mxu1 %v5158_v55  ;;  %v1185_v47 = vmax.f32 %v901_v25, %v1057_v34  ;;  %v906_v54 = vpop.f32.mrb[12].mxu1  ;;  %v5165_v59 = vld [vmem:[#allocation3 + $0x300] ss:$16 sps:$4 sm:$0xff]  }
 0x13f   : > { %v1068_v27 = vmul.f32 0.01, %v726_v11  ;;  %v730_v28 = vadd.f32 %v729_v23, %v5643_v0  ;;  %2207 = vmatprep.mubr.bf16.mxu0 %v1304_v13  ;;  %2593 = vmatprep.mubr.bf16.mxu1 %v1304_v13  ;;  %v1186_v53 = vmax.f32 %v5726_v30, %v5729_v43  ;;  %v907_v1 = vadd.f32 %v906_v54, %v5657_v14  ;;  %v908_v61 = vpop.f32.mrb[13].mxu1  ;;  %v5171_v25 = vld [vmem:[#allocation3 + $0x320] ss:$16 sps:$4 sm:$0xff]  }
 0x140   : > { %v1071_v31 = vmul.f32 0.01, %v728_v22  ;;  %2208 = vmatmul.mubr.bf16.gmra.mrb[76].mxu0 %v1303_v4  ;;  %2594 = vmatmul.mubr.bf16.gmra.mrb[76].mxu1 %v1303_v4  ;;  %v1195_v35 = vmax.f32 %v724_v2, %v1067_v21  ;;  %v5739_v62 = vpack.c.bf16 %v1185_v47, %v1181_v33  ;;  %v5743_v8 = vadd.f32 %v908_v61, %v5661_v18  ;;  %v910_v9 = vpop.f32.mrb[14].mxu1  ;;  %v5174_v30 = vld [vmem:[#allocation3 + $0x328] ss:$16 sps:$4 sm:$0xff]  }
 0x141   : > { %v1072_v39 = vmul.f32 0.01, %v730_v28  ;;  %2351 = vmatpush1.bf16.msra.mxu0 %v5153_v5  ;;  %2737 = vmatpush1.bf16.msra.mxu1 %v5156_v7  ;;  %v1196_v49 = vmax.f32 %v726_v11, %v1068_v27  ;;  %v5173_v5 = vld [vmem:[#allocation3 + $0x324] ss:$16 sps:$4 sm:$0xff]   ;;  %v5176_v7 = vld [vmem:[#allocation3 + $0x32c] ss:$16 sps:$4 sm:$0xff]  }
 0x142   : > { %v1199_v44 = vmax.f32 %v728_v22, %v1071_v31  ;;  %2352 = vmatprep.subr.bf16.mxu0 %v5161_v15  ;;  %2738 = vmatprep.subr.bf16.mxu1 %v5164_v16  ;;  %v1061_v15 = vmul.f32 0.01, %v907_v1  ;;  %v911_v16 = vadd.f32 %v910_v9, %v5657_v14  ;;  %v912_v17 = vpop.f32.mrb[15].mxu1  ;;  %v5749_v22 = vmul.f32 0.01, %v5743_v8 }
 0x143   : > { %v1200_v50 = vmax.f32 %v730_v28, %v1072_v39  ;;  %v733_v51 = vpop.f32.mrb[20].mxu0  ;;  %v5752_v23 = vadd.f32 %v912_v17, %v5661_v18  ;;  %v5179_v33 = vld [vmem:[#allocation3 + $0x344] ss:$16 sps:$4 sm:$0xff]   ;;  %v5182_v34 = vld [vmem:[#allocation3 + $0x34c] ss:$16 sps:$4 sm:$0xff]   ;;  %v5757_v39 = vpack.c.bf16 %v1186_v53, %v1182_v52  ;;  %v916_v47 = vpop.f32.mrb[16].mxu1 }
 0x144   : > { %v734_v55 = vadd.f32 %v733_v51, %v5639_v41  ;;  %v735_v56 = vpop.f32.mrb[21].mxu0  ;;  %v1307_v58 = vpack.c.bf16 %v1199_v44, %v1195_v35  ;;  %v1189_v26 = vmax.f32 %v907_v1, %v1061_v15  ;;  %v1065_v27 = vmul.f32 0.01, %v911_v16  ;;  %v5177_v54 = vld [vmem:[#allocation3 + $0x340] ss:$16 sps:$4 sm:$0xff]   ;;  %v918_v52 = vpop.f32.mrb[17].mxu1 }
 0x145   : > { %v736_v2 = vadd.f32 %v735_v56, %v5643_v0  ;;  %v737_v3 = vpop.f32.mrb[22].mxu0  ;;  %v1308_v4 = vpack.c.bf16 %v1200_v50, %v1196_v49  ;;  %2353 = vmatpush1.bf16.msra.mxu0 %v5159_v32  ;;  %2739 = vmatpush1.bf16.msra.mxu1 %v5162_v42  ;;  %v5755_v31 = vmul.f32 0.01, %v5752_v23  ;;  %v917_v56 = vadd.f32 %v916_v47, %v5657_v14  ;;  %v5185_v1 = vld [vmem:[#allocation3 + $0x364] ss:$16 sps:$4 sm:$0xff]  }
 0x146   : > { %v1075_v11 = vmul.f32 0.01, %v734_v55  ;;  %v738_v12 = vadd.f32 %v737_v3, %v5639_v41  ;;  %v739_v13 = vpop.f32.mrb[23].mxu0  ;;  %2354 = vmatprep.subr.bf16.mxu0 %v5167_v45  ;;  %2740 = vmatprep.subr.bf16.mxu1 %v5170_v46  ;;  %v1193_v35 = vmax.f32 %v911_v16, %v1065_v27  ;;  %v1190_v45 = vmax.f32 %v5743_v8, %v5749_v22  ;;  %v5188_v61 = vld [vmem:[#allocation3 + $0x36c] ss:$16 sps:$4 sm:$0xff]   ;;  %v920_v3 = vpop.f32.mrb[18].mxu1 }
 0x147   : > { %v1076_v19 = vmul.f32 0.01, %v736_v2  ;;  %v740_v21 = vadd.f32 %v739_v13, %v5643_v0  ;;  %2217 = vmatprep.mubr.bf16.mxu0 %v1308_v4  ;;  %2603 = vmatprep.mubr.bf16.mxu1 %v1308_v4  ;;  %v1194_v46 = vmax.f32 %v5752_v23, %v5755_v31  ;;  %v1069_v8 = vmul.f32 0.01, %v917_v56 }
 0x148   : > { %v1079_v24 = vmul.f32 0.01, %v738_v12  ;;  %2218 = vmatmul.mubr.bf16.gmra.mrb[80].mxu0 %v1307_v58  ;;  %2604 = vmatmul.mubr.bf16.gmra.mrb[80].mxu1 %v1307_v58  ;;  %v1203_v28 = vmax.f32 %v734_v55, %v1075_v11  ;;  %v5180_v55 = vld [vmem:[#allocation3 + $0x348] ss:$16 sps:$4 sm:$0xff]   ;;  %v5765_v53 = vpack.c.bf16 %v1193_v35, %v1189_v26  ;;  %v921_v9 = vadd.f32 %v920_v3, %v5657_v14  ;;  %v922_v11 = vpop.f32.mrb[19].mxu1 }
 0x149   : > { %v1080_v29 = vmul.f32 0.01, %v740_v21  ;;  %2355 = vmatpush1.bf16.msra.mxu0 %v5165_v59  ;;  %2741 = vmatpush1.bf16.msra.mxu1 %v5168_v60  ;;  %v1204_v42 = vmax.f32 %v736_v2, %v1076_v19  ;;  %v5769_v2 = vadd.f32 %v918_v52, %v5661_v18  ;;  %v5778_v16 = vadd.f32 %v922_v11, %v5661_v18  ;;  %v5183_v19 = vld [vmem:[#allocation3 + $0x360] ss:$16 sps:$4 sm:$0xff]  }
 0x14a   : > { %v1207_v32 = vmax.f32 %v738_v12, %v1079_v24  ;;  %2356 = vmatprep.subr.bf16.mxu0 %v5173_v5  ;;  %2742 = vmatprep.subr.bf16.mxu1 %v5176_v7  ;;  %v1073_v22 = vmul.f32 0.01, %v921_v9  ;;  %v5783_v31 = vpack.c.bf16 %v1194_v46, %v1190_v45 }
 0x14b   : > { %v1208_v43 = vmax.f32 %v740_v21, %v1080_v29  ;;  %v743_v44 = vpop.f32.mrb[24].mxu0  ;;  %v5775_v15 = vmul.f32 0.01, %v5769_v2  ;;  %v1197_v21 = vmax.f32 %v917_v56, %v1069_v8  ;;  %v5781_v26 = vmul.f32 0.01, %v5778_v16 }
 0x14c   : > { %v744_v49 = vadd.f32 %v743_v44, %v5639_v41  ;;  %v745_v50 = vpop.f32.mrb[25].mxu0  ;;  %v1311_v51 = vpack.c.bf16 %v1207_v32, %v1203_v28  ;;  %v5191_v28 = vld [vmem:[#allocation3 + $0x384] ss:$16 sps:$4 sm:$0xff]   ;;  %v5194_v29 = vld [vmem:[#allocation3 + $0x38c] ss:$16 sps:$4 sm:$0xff]  }
 0x14d   : > { %v746_v58 = vadd.f32 %v745_v50, %v5643_v0  ;;  %v747_v59 = vpop.f32.mrb[26].mxu0  ;;  %v1312_v60 = vpack.c.bf16 %v1208_v43, %v1204_v42  ;;  %2357 = vmatpush1.bf16.msra.mxu0 %v5171_v25  ;;  %2743 = vmatpush1.bf16.msra.mxu1 %v5174_v30  ;;  %v5186_v25 = vld [vmem:[#allocation3 + $0x368] ss:$16 sps:$4 sm:$0xff]   ;;  %v1201_v30 = vmax.f32 %v921_v9, %v1073_v22  ;;  %v926_v43 = vpop.f32.mrb[20].mxu1  ;;  %v5189_v50 = vld [vmem:[#allocation3 + $0x380] ss:$16 sps:$4 sm:$0xff]  }
 0x14e   : > { %v1083_v4 = vmul.f32 0.01, %v744_v49  ;;  %v748_v5 = vadd.f32 %v747_v59, %v5639_v41  ;;  %v749_v7 = vpop.f32.mrb[27].mxu0  ;;  %2358 = vmatprep.subr.bf16.mxu0 %v5179_v33  ;;  %2744 = vmatprep.subr.bf16.mxu1 %v5182_v34  ;;  %v1198_v35 = vmax.f32 %v5769_v2, %v5775_v15  ;;  %v1202_v42 = vmax.f32 %v5778_v16, %v5781_v26  ;;  %v928_v45 = vpop.f32.mrb[21].mxu1  ;;  %v5200_v59 = vld [vmem:[#allocation3 + $0x3ac] ss:$16 sps:$4 sm:$0xff]  }
 0x14f   : > { %v1084_v12 = vmul.f32 0.01, %v746_v58  ;;  %v750_v13 = vadd.f32 %v749_v7, %v5643_v0  ;;  %2227 = vmatprep.mubr.bf16.mxu0 %v1312_v60  ;;  %2613 = vmatprep.mubr.bf16.mxu1 %v1312_v60  ;;  %v5791_v46 = vpack.c.bf16 %v1201_v30, %v1197_v21  ;;  %v5795_v60 = vadd.f32 %v928_v45, %v5661_v18  ;;  %v5195_v15 = vld [vmem:[#allocation3 + $0x3a0] ss:$16 sps:$4 sm:$0xff]   ;;  %v5198_v22 = vld [vmem:[#allocation3 + $0x3a8] ss:$16 sps:$4 sm:$0xff]  }
 0x150   : > { %v1087_v17 = vmul.f32 0.01, %v748_v5  ;;  %2228 = vmatmul.mubr.bf16.gmra.mrb[84].mxu0 %v1311_v51  ;;  %2614 = vmatmul.mubr.bf16.gmra.mrb[84].mxu1 %v1311_v51  ;;  %v1211_v23 = vmax.f32 %v744_v49, %v1083_v4  ;;  %v5192_v51 = vld [vmem:[#allocation3 + $0x388] ss:$16 sps:$4 sm:$0xff]   ;;  %v5206_v26 = vld [vmem:[#allocation3 + $0x3cc] ss:$16 sps:$4 sm:$0xff]  }
 0x151   : > { %v1088_v24 = vmul.f32 0.01, %v750_v13  ;;  %2359 = vmatpush1.bf16.msra.mxu0 %v5177_v54  ;;  %2745 = vmatpush1.bf16.msra.mxu1 %v5180_v55  ;;  %v1212_v32 = vmax.f32 %v746_v58, %v1084_v12  ;;  %v927_v54 = vadd.f32 %v926_v43, %v5657_v14  ;;  %v5197_v58 = vld [vmem:[#allocation3 + $0x3a4] ss:$16 sps:$4 sm:$0xff]   ;;  %v5801_v11 = vmul.f32 0.01, %v5795_v60 }
 0x152   : > { %v1215_v27 = vmax.f32 %v748_v5, %v1087_v17  ;;  %2360 = vmatprep.subr.bf16.mxu0 %v5185_v1  ;;  %2746 = vmatprep.subr.bf16.mxu1 %v5188_v61  ;;  %v930_v1 = vpop.f32.mrb[22].mxu1 }
 0x153   : > { %v1216_v33 = vmax.f32 %v750_v13, %v1088_v24  ;;  %v753_v34 = vpop.f32.mrb[28].mxu0  ;;  %v1077_v4 = vmul.f32 0.01, %v927_v54  ;;  %v931_v5 = vadd.f32 %v930_v1, %v5657_v14  ;;  %v932_v7 = vpop.f32.mrb[23].mxu1 }
 0x154   : > { %v754_v44 = vadd.f32 %v753_v34, %v5639_v41  ;;  %v755_v47 = vpop.f32.mrb[29].mxu0  ;;  %v1315_v49 = vpack.c.bf16 %v1215_v27, %v1211_v23  ;;  %v5804_v12 = vadd.f32 %v932_v7, %v5661_v18  ;;  %v936_v43 = vpop.f32.mrb[24].mxu1 }
 0x155   : > { %v756_v55 = vadd.f32 %v755_v47, %v5643_v0  ;;  %v757_v56 = vpop.f32.mrb[30].mxu0  ;;  %v1316_v52 = vpack.c.bf16 %v1216_v33, %v1212_v32  ;;  %2361 = vmatpush1.bf16.msra.mxu0 %v5183_v19  ;;  %2747 = vmatpush1.bf16.msra.mxu1 %v5186_v25  ;;  %v1205_v16 = vmax.f32 %v927_v54, %v1077_v4  ;;  %v1081_v17 = vmul.f32 0.01, %v931_v5  ;;  %v5203_v25 = vld [vmem:[#allocation3 + $0x3c4] ss:$16 sps:$4 sm:$0xff]   ;;  %v938_v45 = vpop.f32.mrb[25].mxu1 }
 0x156   : > { %v1091_v61 = vmul.f32 0.01, %v754_v44  ;;  %v758_v2 = vadd.f32 %v757_v56, %v5639_v41  ;;  %v759_v3 = vpop.f32.mrb[31].mxu0  ;;  %2362 = vmatprep.subr.bf16.mxu0 %v5191_v28  ;;  %2748 = vmatprep.subr.bf16.mxu1 %v5194_v29  ;;  %v1082_v23 = vmul.f32 0.01, %v5804_v12  ;;  %v5807_v28 = vpack.c.bf16 %v1202_v42, %v1198_v35 }
 0x157   : > { %v1092_v8 = vmul.f32 0.01, %v756_v55  ;;  %v760_v9 = vadd.f32 %v759_v3, %v5643_v0  ;;  %2237 = vmatprep.mubr.bf16.mxu0 %v1316_v52  ;;  %2623 = vmatprep.mubr.bf16.mxu1 %v1316_v52  ;;  %v1209_v27 = vmax.f32 %v931_v5, %v1081_v17  ;;  %v1206_v33 = vmax.f32 %v5795_v60, %v5801_v11  ;;  %v5209_v52 = vld [vmem:[#allocation3 + $0x3e4] ss:$16 sps:$4 sm:$0xff]   ;;  %v940_v60 = vpop.f32.mrb[26].mxu1 }
 0x158   : > { %v1095_v13 = vmul.f32 0.01, %v758_v2  ;;  %2238 = vmatmul.mubr.bf16.gmra.mrb[88].mxu0 %v1315_v49  ;;  %2624 = vmatmul.mubr.bf16.gmra.mrb[88].mxu1 %v1315_v49  ;;  %v1219_v19 = vmax.f32 %v754_v44, %v1091_v61  ;;  %v1210_v34 = vmax.f32 %v5804_v12, %v1082_v23  ;;  %v937_v54 = vadd.f32 %v936_v43, %v5657_v14  ;;  %v942_v5 = vpop.f32.mrb[27].mxu1 }
 0x159   : > { %v1096_v21 = vmul.f32 0.01, %v760_v9  ;;  %2363 = vmatpush1.bf16.msra.mxu0 %v5189_v50  ;;  %2749 = vmatpush1.bf16.msra.mxu1 %v5192_v51  ;;  %v1220_v29 = vmax.f32 %v756_v55, %v1092_v8  ;;  %v5201_v50 = vld [vmem:[#allocation3 + $0x3c0] ss:$16 sps:$4 sm:$0xff]   ;;  %v5204_v51 = vld [vmem:[#allocation3 + $0x3c8] ss:$16 sps:$4 sm:$0xff]   ;;  %v5814_v35 = vpack.c.bf16 %v1209_v27, %v1205_v16  ;;  %v941_v4 = vadd.f32 %v940_v60, %v5657_v14 }
 0x15a   : > { %v1223_v24 = vmax.f32 %v758_v2, %v1095_v13  ;;  %2364 = vmatprep.subr.bf16.mxu0 %v5197_v58  ;;  %2750 = vmatprep.subr.bf16.mxu1 %v5200_v59  ;;  %v5212_v58 = vld [vmem:[#allocation3 + $0x3ec] ss:$16 sps:$4 sm:$0xff]   ;;  %v5818_v59 = vadd.f32 %v938_v45, %v5661_v18  ;;  %v1085_v3 = vmul.f32 0.01, %v937_v54  ;;  %v943_v11 = vadd.f32 %v942_v5, %v5661_v18  ;;  %v5207_v13 = vld [vmem:[#allocation3 + $0x3e0] ss:$16 sps:$4 sm:$0xff]  }
 0x15b   : > { %v1224_v30 = vmax.f32 %v760_v9, %v1096_v21  ;;  %v763_v32 = vpop.f32.mrb[32].mxu0  ;;  %v1089_v16 = vmul.f32 0.01, %v941_v4  ;;  %v5210_v21 = vld [vmem:[#allocation3 + $0x3e8] ss:$16 sps:$4 sm:$0xff]   ;;  %v946_v43 = vpop.f32.mrb[28].mxu1 }
 0x15c   : > { %v764_v44 = vadd.f32 %v763_v32, %v5639_v41  ;;  %v765_v47 = vpop.f32.mrb[33].mxu0  ;;  %v1319_v49 = vpack.c.bf16 %v1223_v24, %v1219_v19  ;;  %v1086_v9 = vmul.f32 0.01, %v5818_v59 }
 0x15d   : > { %v766_v42 = vadd.f32 %v765_v47, %v5643_v0  ;;  %v767_v55 = vpop.f32.mrb[34].mxu0  ;;  %v1320_v56 = vpack.c.bf16 %v1224_v30, %v1220_v29  ;;  %2365 = vmatpush1.bf16.msra.mxu0 %v5195_v15  ;;  %2751 = vmatpush1.bf16.msra.mxu1 %v5198_v22  ;;  %v1213_v15 = vmax.f32 %v937_v54, %v1085_v3  ;;  %v1090_v22 = vmul.f32 0.01, %v943_v11 }
 0x15e   : > { %v1099_v1 = vmul.f32 0.01, %v764_v44  ;;  %v768_v61 = vadd.f32 %v767_v55, %v5639_v41  ;;  %v769_v2 = vpop.f32.mrb[35].mxu0  ;;  %2366 = vmatprep.subr.bf16.mxu0 %v5203_v25  ;;  %2752 = vmatprep.subr.bf16.mxu1 %v5206_v26  ;;  %v1217_v24 = vmax.f32 %v941_v4, %v1089_v16  ;;  %v5825_v25 = vpack.c.bf16 %v1210_v34, %v1206_v33 }
 0x15f   : > { %v1100_v7 = vmul.f32 0.01, %v766_v42  ;;  %v770_v8 = vadd.f32 %v769_v2, %v5643_v0  ;;  %2247 = vmatprep.mubr.bf16.mxu0 %v1320_v56  ;;  %2633 = vmatprep.mubr.bf16.mxu1 %v1320_v56  ;;  %v1214_v30 = vmax.f32 %v5818_v59, %v1086_v9  ;;  %v1218_v32 = vmax.f32 %v943_v11, %v1090_v22 }
 0x160   : > { %v1103_v12 = vmul.f32 0.01, %v768_v61  ;;  %2248 = vmatmul.mubr.bf16.gmra.mrb[92].mxu0 %v1319_v49  ;;  %2634 = vmatmul.mubr.bf16.gmra.mrb[92].mxu1 %v1319_v49  ;;  %v1227_v17 = vmax.f32 %v764_v44, %v1099_v1  ;;  %v5830_v54 = vpack.c.bf16 %v1217_v24, %v1213_v15 }
 0x161   : > { %v1104_v19 = vmul.f32 0.01, %v770_v8  ;;  %2367 = vmatpush1.bf16.msra.mxu0 %v5201_v50  ;;  %2753 = vmatpush1.bf16.msra.mxu1 %v5204_v51  ;;  %v1228_v26 = vmax.f32 %v766_v42, %v1100_v7  ;;  %v947_v50 = vadd.f32 %v946_v43, %v5657_v14  ;;  %v948_v51 = vpop.f32.mrb[29].mxu1 }
 0x162   : > { %v1231_v23 = vmax.f32 %v768_v61, %v1103_v12  ;;  %2368 = vmatprep.subr.bf16.mxu0 %v5209_v52  ;;  %2754 = vmatprep.subr.bf16.mxu1 %v5212_v58  ;;  %v949_v42 = vadd.f32 %v948_v51, %v5661_v18  ;;  %v950_v55 = vpop.f32.mrb[30].mxu1 }
 0x163   : > { %v1232_v27 = vmax.f32 %v770_v8, %v1104_v19  ;;  %v773_v29 = vpop.f32.mrb[36].mxu0  ;;  %v1093_v59 = vmul.f32 0.01, %v947_v50  ;;  %v951_v60 = vadd.f32 %v950_v55, %v5657_v14  ;;  %v952_v1 = vpop.f32.mrb[31].mxu1 }
 0x164   : > { %v774_v44 = vadd.f32 %v773_v29, %v5639_v41  ;;  %v775_v47 = vpop.f32.mrb[37].mxu0  ;;  %v1323_v49 = vpack.c.bf16 %v1231_v23, %v1227_v17  ;;  %v1094_v3 = vmul.f32 0.01, %v949_v42  ;;  %v953_v4 = vadd.f32 %v952_v1, %v5661_v18  ;;  %v956_v24 = vpop.f32.mrb[32].mxu1 }
 0x165   : > { %v776_v45 = vadd.f32 %v775_v47, %v5643_v0  ;;  %v777_v33 = vpop.f32.mrb[38].mxu0  ;;  %v1324_v34 = vpack.c.bf16 %v1232_v27, %v1228_v26  ;;  %2369 = vmatpush1.bf16.msra.mxu0 %v5207_v13  ;;  %2755 = vmatpush1.bf16.msra.mxu1 %v5210_v21  ;;  %v1221_v7 = vmax.f32 %v947_v50, %v1093_v59  ;;  %v1097_v8 = vmul.f32 0.01, %v951_v60  ;;  %v958_v47 = vpop.f32.mrb[33].mxu1 }
 0x166   : > { %v1107_v56 = vmul.f32 0.01, %v774_v44  ;;  %v778_v52 = vadd.f32 %v777_v33, %v5639_v41  ;;  %v779_v58 = vpop.f32.mrb[39].mxu0  ;;  %v1222_v11 = vmax.f32 %v949_v42, %v1094_v3  ;;  %v1098_v12 = vmul.f32 0.01, %v953_v4 }
 0x167   : > { %v1108_v61 = vmul.f32 0.01, %v776_v45  ;;  %v780_v2 = vadd.f32 %v779_v58, %v5643_v0  ;;  %2257 = vmatprep.mubr.bf16.mxu0 %v1324_v34  ;;  %2643 = vmatprep.mubr.bf16.mxu1 %v1324_v34  ;;  %v1225_v16 = vmax.f32 %v951_v60, %v1097_v8  ;;  %v5838_v17 = vpack.c.bf16 %v1218_v32, %v1214_v30  ;;  %v960_v32 = vpop.f32.mrb[34].mxu1 }
 0x168   : > { %v1111_v5 = vmul.f32 0.01, %v778_v52  ;;  %2258 = vmatmul.mubr.bf16.gmra.mrb[96].mxu0 %v1323_v49  ;;  %2644 = vmatmul.mubr.bf16.gmra.mrb[96].mxu1 %v1323_v49  ;;  %v1235_v13 = vmax.f32 %v774_v44, %v1107_v56  ;;  %v1226_v23 = vmax.f32 %v953_v4, %v1098_v12  ;;  %v957_v43 = vadd.f32 %v956_v24, %v5657_v14 }
 0x169   : > { %v1112_v9 = vmul.f32 0.01, %v780_v2  ;;  %v1236_v19 = vmax.f32 %v776_v45, %v1108_v61  ;;  %v5842_v49 = vpack.c.bf16 %v1225_v16, %v1221_v7  ;;  %v959_v30 = vadd.f32 %v958_v47, %v5661_v18 }
 0x16a   : > { %v1239_v15 = vmax.f32 %v778_v52, %v1111_v5  ;;  %v5846_v45 = vpack.c.bf16 %v1226_v23, %v1222_v11  ;;  %v1101_v55 = vmul.f32 0.01, %v957_v43  ;;  %v961_v56 = vadd.f32 %v960_v32, %v5657_v14  ;;  %v962_v52 = vpop.f32.mrb[35].mxu1 }
 0x16b   : > { %v1240_v21 = vmax.f32 %v780_v2, %v1112_v9  ;;  %v783_v22 = vpop.f32.mrb[40].mxu0  ;;  %v1102_v60 = vmul.f32 0.01, %v959_v30  ;;  %v963_v1 = vadd.f32 %v962_v52, %v5661_v18 }
 0x16c   : > { %v784_v26 = vadd.f32 %v783_v22, %v5639_v41  ;;  %v785_v27 = vpop.f32.mrb[41].mxu0  ;;  %v1327_v29 = vpack.c.bf16 %v1239_v15, %v1235_v13  ;;  %v1229_v2 = vmax.f32 %v957_v43, %v1101_v55  ;;  %v1105_v3 = vmul.f32 0.01, %v961_v56 }
 0x16d   : > { %v786_v44 = vadd.f32 %v785_v27, %v5643_v0  ;;  %v787_v50 = vpop.f32.mrb[42].mxu0  ;;  %v1328_v51 = vpack.c.bf16 %v1240_v21, %v1236_v19  ;;  %v1230_v5 = vmax.f32 %v959_v30, %v1102_v60  ;;  %v1106_v7 = vmul.f32 0.01, %v963_v1  ;;  %v966_v19 = vpop.f32.mrb[36].mxu1 }
 0x16e   : > { %v1115_v33 = vmul.f32 0.01, %v784_v26  ;;  %v788_v34 = vadd.f32 %v787_v50, %v5639_v41  ;;  %v789_v42 = vpop.f32.mrb[43].mxu0  ;;  %v1233_v11 = vmax.f32 %v961_v56, %v1105_v3  ;;  %v967_v24 = vadd.f32 %v966_v19, %v5657_v14  ;;  %v968_v27 = vpop.f32.mrb[37].mxu1 }
 0x16f   : > { %v1116_v58 = vmul.f32 0.01, %v786_v44  ;;  %v790_v59 = vadd.f32 %v789_v42, %v5643_v0  ;;  %2267 = vmatprep.mubr.bf16.mxu0 %v1328_v51  ;;  %2653 = vmatprep.mubr.bf16.mxu1 %v1328_v51  ;;  %v1234_v16 = vmax.f32 %v963_v1, %v1106_v7  ;;  %v969_v50 = vadd.f32 %v968_v27, %v5661_v18 }
 0x170   : > { %v1119_v61 = vmul.f32 0.01, %v788_v34  ;;  %2268 = vmatmul.mubr.bf16.gmra.mrb[100].mxu0 %v1327_v29  ;;  %2654 = vmatmul.mubr.bf16.gmra.mrb[100].mxu1 %v1327_v29  ;;  %v1243_v8 = vmax.f32 %v784_v26, %v1115_v33  ;;  %v5854_v29 = vpack.c.bf16 %v1233_v11, %v1229_v2 }
 0x171   : > { %v1120_v4 = vmul.f32 0.01, %v790_v59  ;;  %v1244_v12 = vmax.f32 %v786_v44, %v1116_v58  ;;  %v970_v44 = vpop.f32.mrb[38].mxu1  ;;  %v5858_v51 = vpack.c.bf16 %v1234_v16, %v1230_v5  ;;  %v1110_v58 = vmul.f32 0.01, %v969_v50 }
 0x172   : > { %v1247_v9 = vmax.f32 %v788_v34, %v1119_v61  ;;  %v1109_v34 = vmul.f32 0.01, %v967_v24  ;;  %v971_v42 = vadd.f32 %v970_v44, %v5657_v14  ;;  %v972_v55 = vpop.f32.mrb[39].mxu1 }
 0x173   : > { %v1248_v13 = vmax.f32 %v790_v59, %v1120_v4  ;;  %v793_v15 = vpop.f32.mrb[44].mxu0  ;;  %v973_v59 = vadd.f32 %v972_v55, %v5661_v18  ;;  %v1238_v3 = vmax.f32 %v969_v50, %v1110_v58 }
 0x174   : > { %v794_v21 = vadd.f32 %v793_v15, %v5639_v41  ;;  %v795_v22 = vpop.f32.mrb[45].mxu0  ;;  %v1331_v23 = vpack.c.bf16 %v1247_v9, %v1243_v8  ;;  %v1237_v1 = vmax.f32 %v967_v24, %v1109_v34  ;;  %v1113_v61 = vmul.f32 0.01, %v971_v42  ;;  %v976_v15 = vpop.f32.mrb[40].mxu1 }
 0x175   : > { %v796_v43 = vadd.f32 %v795_v22, %v5643_v0  ;;  %v797_v47 = vpop.f32.mrb[46].mxu0  ;;  %v1332_v26 = vpack.c.bf16 %v1248_v13, %v1244_v12  ;;  %v1114_v4 = vmul.f32 0.01, %v973_v59  ;;  %v977_v27 = vadd.f32 %v976_v15, %v5657_v14 }
 0x176   : > { %v1123_v30 = vmul.f32 0.01, %v794_v21  ;;  %v798_v32 = vadd.f32 %v797_v47, %v5639_v41  ;;  %v799_v33 = vpop.f32.mrb[47].mxu0  ;;  %v1241_v8 = vmax.f32 %v971_v42, %v1113_v61 }
 0x177   : > { %v1124_v56 = vmul.f32 0.01, %v796_v43  ;;  %v800_v52 = vadd.f32 %v799_v33, %v5643_v0  ;;  %2277 = vmatprep.mubr.bf16.mxu0 %v1332_v26  ;;  %2663 = vmatprep.mubr.bf16.mxu1 %v1332_v26  ;;  %v1242_v13 = vmax.f32 %v973_v59, %v1114_v4  ;;  %v1117_v34 = vmul.f32 0.01, %v977_v27 }
 0x178   : > { %v1127_v60 = vmul.f32 0.01, %v798_v32  ;;  %2278 = vmatmul.mubr.bf16.gmra.mrb[104].mxu0 %v1331_v23  ;;  %2664 = vmatmul.mubr.bf16.gmra.mrb[104].mxu1 %v1331_v23  ;;  %v1251_v5 = vmax.f32 %v794_v21, %v1123_v30  ;;  %v978_v23 = vpop.f32.mrb[41].mxu1  ;;  %v5866_v24 = vpack.c.bf16 %v1241_v8, %v1237_v1 }
 0x179   : > { %v1128_v2 = vmul.f32 0.01, %v800_v52  ;;  %v1252_v9 = vmax.f32 %v796_v43, %v1124_v56  ;;  %v979_v50 = vadd.f32 %v978_v23, %v5661_v18  ;;  %v980_v43 = vpop.f32.mrb[42].mxu1  ;;  %v5870_v44 = vpack.c.bf16 %v1242_v13, %v1238_v3 }
 0x17a   : > { %v1255_v7 = vmax.f32 %v798_v32, %v1127_v60  ;;  %v981_v42 = vadd.f32 %v980_v43, %v5657_v14  ;;  %v982_v55 = vpop.f32.mrb[43].mxu1  ;;  %v1245_v1 = vmax.f32 %v977_v27, %v1117_v34 }
 0x17b   : > { %v1256_v11 = vmax.f32 %v800_v52, %v1128_v2  ;;  %v803_v12 = vpop.f32.mrb[48].mxu0  ;;  %v1118_v58 = vmul.f32 0.01, %v979_v50  ;;  %v983_v59 = vadd.f32 %v982_v55, %v5661_v18 }
 0x17c   : > { %v804_v16 = vadd.f32 %v803_v12, %v5639_v41  ;;  %v805_v19 = vpop.f32.mrb[49].mxu0  ;;  %v1335_v22 = vpack.c.bf16 %v1255_v7, %v1251_v5  ;;  %v1121_v61 = vmul.f32 0.01, %v981_v42  ;;  %v5213_v5 = vld [vmem:[%s6401_s5 + $0x40] sm:$0xff]  }
 0x17d   : > { %v806_v47 = vadd.f32 %v805_v19, %v5643_v0  ;;  %v807_v26 = vpop.f32.mrb[50].mxu0  ;;  %v1336_v21 = vpack.c.bf16 %v1256_v11, %v1252_v9  ;;  %v1246_v3 = vmax.f32 %v979_v50, %v1118_v58  ;;  %v1122_v4 = vmul.f32 0.01, %v983_v59  ;;  %v986_v19 = vpop.f32.mrb[44].mxu1  ;;  %4447 = vmatprep.subr.bf16.mxu0 %v5213_v5 }
 0x17e   : > { %v1131_v30 = vmul.f32 0.01, %v804_v16  ;;  %v808_v32 = vadd.f32 %v807_v26, %v5639_v41  ;;  %v809_v33 = vpop.f32.mrb[51].mxu0  ;;  %v1249_v9 = vmax.f32 %v981_v42, %v1121_v61  ;;  %v987_v26 = vadd.f32 %v986_v19, %v5657_v14 }
 0x17f   : > { %v1132_v56 = vmul.f32 0.01, %v806_v47  ;;  %v810_v52 = vadd.f32 %v809_v33, %v5643_v0  ;;  %2287 = vmatprep.mubr.bf16.mxu0 %v1336_v21  ;;  %2673 = vmatprep.mubr.bf16.mxu1 %v1336_v21  ;;  %v1250_v15 = vmax.f32 %v983_v59, %v1122_v4  ;;  %v988_v21 = vpop.f32.mrb[45].mxu1 }
 0x180   : > { %v1135_v60 = vmul.f32 0.01, %v808_v32  ;;  %2288 = vmatmul.mubr.bf16.gmra.mrb[108].mxu0 %v1335_v22  ;;  %2674 = vmatmul.mubr.bf16.gmra.mrb[108].mxu1 %v1335_v22  ;;  %v1259_v7 = vmax.f32 %v804_v16, %v1131_v30  ;;  %v5881_v50 = vpack.c.bf16 %v1249_v9, %v1245_v1  ;;  %v5215_v9 = vld [vmem:[%s6401_s5 + $0xc0] sm:$0xff]  }
 0x181   : > { %v1136_v2 = vmul.f32 0.01, %v810_v52  ;;  %v1260_v11 = vmax.f32 %v806_v47, %v1132_v56  ;;  %v989_v47 = vadd.f32 %v988_v21, %v5661_v18  ;;  %v5885_v33 = vpack.c.bf16 %v1250_v15, %v1246_v3  ;;  %4559 = vmatprep.subr.bf16.mxu1 %v5215_v9 }
 0x182   : > { %v1263_v8 = vmax.f32 %v808_v32, %v1135_v60  ;;  %v990_v32 = vpop.f32.mrb[46].mxu1  ;;  %v1125_v56 = vmul.f32 0.01, %v987_v26 }
 0x183   : > { %v1264_v12 = vmax.f32 %v810_v52, %v1136_v2  ;;  %v813_v13 = vpop.f32.mrb[52].mxu0  ;;  %v991_v52 = vadd.f32 %v990_v32, %v5657_v14  ;;  %v992_v58 = vpop.f32.mrb[47].mxu1  ;;  %v1126_v1 = vmul.f32 0.01, %v989_v47 }
 0x184   : > { %v814_v22 = vadd.f32 %v813_v13, %v5639_v41  ;;  %v815_v27 = vpop.f32.mrb[53].mxu0  ;;  %v1339_v23 = vpack.c.bf16 %v1263_v8, %v1259_v7  ;;  %v993_v61 = vadd.f32 %v992_v58, %v5661_v18  ;;  %v1253_v3 = vmax.f32 %v987_v26, %v1125_v56 }
 0x185   : > { %v816_v43 = vadd.f32 %v815_v27, %v5643_v0  ;;  %v817_v16 = vpop.f32.mrb[54].mxu0  ;;  %v1340_v30 = vpack.c.bf16 %v1264_v12, %v1260_v11  ;;  %v1129_v4 = vmul.f32 0.01, %v991_v52  ;;  %v1254_v7 = vmax.f32 %v989_v47, %v1126_v1 }
 0x186   : > { %v1139_v34 = vmul.f32 0.01, %v814_v22  ;;  %v818_v42 = vadd.f32 %v817_v16, %v5639_v41  ;;  %v819_v55 = vpop.f32.mrb[55].mxu0  ;;  %v1130_v8 = vmul.f32 0.01, %v993_v61  ;;  %v996_v16 = vpop.f32.mrb[48].mxu1 }
 0x187   : > { %v1140_v59 = vmul.f32 0.01, %v816_v43  ;;  %v820_v60 = vadd.f32 %v819_v55, %v5643_v0  ;;  %2297 = vmatprep.mubr.bf16.mxu0 %v1340_v30  ;;  %2683 = vmatprep.mubr.bf16.mxu1 %v1340_v30  ;;  %v1257_v13 = vmax.f32 %v991_v52, %v1129_v4  ;;  %v997_v47 = vadd.f32 %v996_v16, %v5657_v14  ;;  %v998_v32 = vpop.f32.mrb[49].mxu1 }
 0x188   : > { %v1143_v2 = vmul.f32 0.01, %v818_v42  ;;  %2298 = vmatmul.mubr.bf16.gmra.mrb[112].mxu0 %v1339_v23  ;;  %2684 = vmatmul.mubr.bf16.gmra.mrb[112].mxu1 %v1339_v23  ;;  %v1267_v11 = vmax.f32 %v814_v22, %v1139_v34  ;;  %v1258_v21 = vmax.f32 %v993_v61, %v1130_v8 }
 0x189   : > { %v1144_v5 = vmul.f32 0.01, %v820_v60  ;;  %v1268_v15 = vmax.f32 %v816_v43, %v1140_v59  ;;  %v5896_v55 = vpack.c.bf16 %v1257_v13, %v1253_v3  ;;  %v999_v43 = vadd.f32 %v998_v32, %v5661_v18 }
 0x18a   : > { %v1271_v12 = vmax.f32 %v818_v42, %v1143_v2  ;;  %v1000_v42 = vpop.f32.mrb[50].mxu1  ;;  %v5900_v52 = vpack.c.bf16 %v1258_v21, %v1254_v7  ;;  %v1133_v1 = vmul.f32 0.01, %v997_v47 }
 0x18b   : > { %v1272_v19 = vmax.f32 %v820_v60, %v1144_v5  ;;  %v823_v27 = vpop.f32.mrb[56].mxu0  ;;  %v1001_v61 = vadd.f32 %v1000_v42, %v5657_v14  ;;  %v1002_v2 = vpop.f32.mrb[51].mxu1  ;;  %v1134_v5 = vmul.f32 0.01, %v999_v43 }
 0x18c   : > { %v824_v23 = vadd.f32 %v823_v27, %v5639_v41  ;;  %v825_v26 = vpop.f32.mrb[57].mxu0  ;;  %v1343_v30 = vpack.c.bf16 %v1271_v12, %v1267_v11  ;;  %v1003_v8 = vadd.f32 %v1002_v2, %v5661_v18  ;;  %v1261_v7 = vmax.f32 %v997_v47, %v1133_v1  ;;  %v1006_v42 = vpop.f32.mrb[52].mxu1 }
 0x18d   : > { %v826_v56 = vadd.f32 %v825_v26, %v5643_v0  ;;  %v827_v22 = vpop.f32.mrb[58].mxu0  ;;  %v1344_v34 = vpack.c.bf16 %v1272_v19, %v1268_v15  ;;  %v1137_v11 = vmul.f32 0.01, %v1001_v61  ;;  %v1262_v13 = vmax.f32 %v999_v43, %v1134_v5 }
 0x18e   : > { %v1147_v58 = vmul.f32 0.01, %v824_v23  ;;  %v828_v59 = vadd.f32 %v827_v22, %v5639_v41  ;;  %v829_v60 = vpop.f32.mrb[59].mxu0  ;;  %v1138_v15 = vmul.f32 0.01, %v1003_v8  ;;  %v1007_v36 = vadd.f32 %v1006_v42, %v5657_v14 }
 0x18f   : > { %v1148_v4 = vmul.f32 0.01, %v826_v56  ;;  %v830_v3 = vadd.f32 %v829_v60, %v5643_v0  ;;  %2307 = vmatprep.mubr.bf16.mxu0 %v1344_v34  ;;  %2693 = vmatprep.mubr.bf16.mxu1 %v1344_v34  ;;  %v1265_v21 = vmax.f32 %v1001_v61, %v1137_v11 }
 0x190   : > { %v1151_v9 = vmul.f32 0.01, %v828_v59  ;;  %2308 = vmatmul.mubr.bf16.gmra.mrb[116].mxu0 %v1343_v30  ;;  %2694 = vmatmul.mubr.bf16.gmra.mrb[116].mxu1 %v1343_v30  ;;  %v1275_v19 = vmax.f32 %v824_v23, %v1147_v58  ;;  %v1266_v22 = vmax.f32 %v1003_v8, %v1138_v15  ;;  %v1008_v30 = vpop.f32.mrb[53].mxu1  ;;  %v1141_v5 = vmul.f32 0.01, %v1007_v36 }
 0x191   : > { %v1152_v12 = vmul.f32 0.01, %v830_v3  ;;  %v1276_v16 = vmax.f32 %v826_v56, %v1148_v4  ;;  %v5908_v47 = vpack.c.bf16 %v1265_v21, %v1261_v7  ;;  %v1009_v58 = vadd.f32 %v1008_v30, %v5661_v18  ;;  %v1010_v56 = vpop.f32.mrb[54].mxu1 }
 0x192   : > { %v1279_v27 = vmax.f32 %v828_v59, %v1151_v9  ;;  %v5912_v59 = vpack.c.bf16 %v1266_v22, %v1262_v13  ;;  %v1011_v8 = vadd.f32 %v1010_v56, %v5657_v14  ;;  %v1012_v9 = vpop.f32.mrb[55].mxu1  ;;  %v1269_v13 = vmax.f32 %v1007_v36, %v1141_v5 }
 0x193   : > { %v1280_v26 = vmax.f32 %v830_v3, %v1152_v12  ;;  %v833_v32 = vpop.f32.mrb[60].mxu0  ;;  %v1142_v12 = vmul.f32 0.01, %v1009_v58  ;;  %v1013_v15 = vadd.f32 %v1012_v9, %v5661_v18 }
 0x194   : > { %v834_v34 = vadd.f32 %v833_v32, %v5639_v41  ;;  %v835_v60 = vpop.f32.mrb[61].mxu0  ;;  %v1347_v2 = vpack.c.bf16 %v1279_v27, %v1275_v19  ;;  %v1145_v27 = vmul.f32 0.01, %v1011_v8 }
 0x195   : > { %v836_v43 = vadd.f32 %v835_v60, %v5643_v0  ;;  %v837_v1 = vpop.f32.mrb[62].mxu0  ;;  %v1348_v23 = vpack.c.bf16 %v1280_v26, %v1276_v16  ;;  %v1146_v16 = vmul.f32 0.01, %v1013_v15 }
 0x196   : > { %v1155_v61 = vmul.f32 0.01, %v834_v34  ;;  %v838_v4 = vadd.f32 %v837_v1, %v5639_v41  ;;  %v839_v3 = vpop.f32.mrb[63].mxu0  ;;  %v1270_v41 = vmax.f32 %v1009_v58, %v1142_v12  ;;  %v1273_v22 = vmax.f32 %v1011_v8, %v1145_v27 }
 0x197   : > { %v1156_v11 = vmul.f32 0.01, %v836_v43  ;;  %v840_v7 = vadd.f32 %v839_v3, %v5643_v0  ;;  %2317 = vmatprep.mubr.bf16.mxu0 %v1348_v23  ;;  %2703 = vmatprep.mubr.bf16.mxu1 %v1348_v23  ;;  %v1274_v30 = vmax.f32 %v1013_v15, %v1146_v16  ;;  %v1016_v0 = vpop.f32.mrb[56].mxu1 }
 0x198   : > { %v1159_v19 = vmul.f32 0.01, %v838_v4  ;;  %2318 = vmatmul.mubr.bf16.gmra.mrb[120].mxu0 %v1347_v2  ;;  %2704 = vmatmul.mubr.bf16.gmra.mrb[120].mxu1 %v1347_v2  ;;  %v1283_v26 = vmax.f32 %v834_v34, %v1155_v61  ;;  %v1017_v23 = vadd.f32 %v1016_v0, %v5657_v14  ;;  %v1018_v56 = vpop.f32.mrb[57].mxu1  ;;  %v5919_v3 = vpack.c.bf16 %v1273_v22, %v1269_v13 }
 0x199   : > { %v1160_v21 = vmul.f32 0.01, %v840_v7  ;;  %v1284_v42 = vmax.f32 %v836_v43, %v1156_v11  ;;  %v1019_v36 = vadd.f32 %v1018_v56, %v5661_v18  ;;  %v1020_v2 = vpop.f32.mrb[58].mxu1  ;;  %v5922_v5 = vpack.c.bf16 %v1274_v30, %v1270_v41  ;;  %v5216_v30 = vld [vmem:[%s6401_s5 + $0x80] sm:$0xff]  }
 0x19a   : > { %v1287_v32 = vmax.f32 %v838_v4, %v1159_v19  ;;  %v1149_v58 = vmul.f32 0.01, %v1017_v23  ;;  %v1021_v34 = vadd.f32 %v1020_v2, %v5657_v14  ;;  %v1022_v61 = vpop.f32.mrb[59].mxu1 }
 0x19b   : > { %v1288_v60 = vmax.f32 %v840_v7, %v1160_v21  ;;  %v1150_v43 = vmul.f32 0.01, %v1019_v36  ;;  %v1023_v4 = vadd.f32 %v1022_v61, %v5661_v18  ;;  %v1026_v13 = vpop.f32.mrb[60].mxu1  ;;  %v5223_v61 = vld [vmem:[%s6401_s5 + $0xd0] sm:$0xff]  }
 0x19c   : > { %v1351_v1 = vpack.c.bf16 %v1287_v32, %v1283_v26  ;;  %v1277_v8 = vmax.f32 %v1017_v23, %v1149_v58  ;;  %v1153_v11 = vmul.f32 0.01, %v1021_v34  ;;  %v1027_v27 = vadd.f32 %v1026_v13, %v5657_v14  ;;  %v1028_v21 = vpop.f32.mrb[61].mxu1  ;;  %v5217_v23 = vld [vmem:[%s6401_s5 + $0x48] sm:$0xff]   ;;  %v5230_v13 = vld [vmem:[%s6401_s5 + $0x20] sm:$0xff]  }
 0x19d   : > { %v1352_v9 = vpack.c.bf16 %v1288_v60, %v1284_v42  ;;  %v1278_v7 = vmax.f32 %v1019_v36, %v1150_v43  ;;  %v1154_v12 = vmul.f32 0.01, %v1023_v4  ;;  %v1029_v16 = vadd.f32 %v1028_v21, %v5661_v18  ;;  %v1030_v26 = vpop.f32.mrb[62].mxu1  ;;  %v5218_v58 = vld [vmem:[%s6401_s5 + $0x8] sm:$0xff]  }
 0x19e   : > { %v1281_v15 = vmax.f32 %v1021_v34, %v1153_v11  ;;  %v1157_v22 = vmul.f32 0.01, %v1027_v27  ;;  %v1031_v42 = vadd.f32 %v1030_v26, %v5657_v14  ;;  %v1032_v60 = vpop.f32.mrb[63].mxu1  ;;  %v5219_v14 = vld [vmem:[%s6401_s5 + $0xc8] sm:$0xff]   ;;  %v5224_v11 = vld [vmem:[%s6401_s5 + $0x90] sm:$0xff]  }
 0x19f   : > { %2327 = vmatprep.mubr.bf16.mxu0 %v1352_v9  ;;  %2713 = vmatprep.mubr.bf16.mxu1 %v1352_v9  ;;  %v1282_v19 = vmax.f32 %v1023_v4, %v1154_v12  ;;  %v1158_v0 = vmul.f32 0.01, %v1029_v16  ;;  %v5220_v34 = vld [vmem:[%s6401_s5 + $0x88] sm:$0xff]   ;;  %v5227_v12 = vld [vmem:[%s6401_s5 + $0xd8] sm:$0xff]  }
 0x1a0   : > { %2328 = vmatmul.mubr.bf16.gmra.mrb[124].mxu0 %v1351_v1  ;;  %2714 = vmatmul.mubr.bf16.gmra.mrb[124].mxu1 %v1351_v1  ;;  %v5929_v41 = vpack.c.bf16 %v1281_v15, %v1277_v8  ;;  %v1033_v1 = vadd.f32 %v1032_v60, %v5661_v18  ;;  %v1285_v56 = vmax.f32 %v1027_v27, %v1157_v22  ;;  %v1161_v9 = vmul.f32 0.01, %v1031_v42  ;;  %v5222_v8 = vld [vmem:[%s6401_s5 + $0x10] sm:$0xff]   ;;  %v5226_v15 = vld [vmem:[%s6401_s5 + $0x18] sm:$0xff]   ;;  %v5232_v27 = vld [vmem:[%s6401_s5 + $0xa0] sm:$0xff]  }
 0x1a1   : > { %2370 = vmatprep.mubr.bf16.mxu0 %v5705_v57  ;;  %2756 = vmatprep.mubr.bf16.mxu1 %v5705_v57  ;;  %v5932_v32 = vpack.c.bf16 %v1282_v19, %v1278_v7  ;;  %v5214_v57 = vld [vmem:[%s6401_s5] sm:$0xff]   ;;  %v1286_v36 = vmax.f32 %v1029_v16, %v1158_v0  ;;  %v5225_v7 = vld [vmem:[%s6401_s5 + $0x58] sm:$0xff]   ;;  %v5233_v21 = vld [vmem:[%s6401_s5 + $0x68] sm:$0xff]  }
 0x1a2   : > { %v1162_v18 = vmul.f32 0.01, %v1033_v1  ;;  %v1289_v2 = vmax.f32 %v1031_v42, %v1161_v9  ;;  %v5228_v19 = vld [vmem:[%s6401_s5 + $0x98] sm:$0xff]   ;;  %v5235_v16 = vld [vmem:[%s6401_s5 + $0xe8] sm:$0xff]   ;;  %v5238_v42 = vld [vmem:[%s6401_s5 + $0x30] sm:$0xff]  }
 0x1a3   : > { %v5234_v26 = vld [vmem:[%s6401_s5 + $0x28] sm:$0xff]   ;;  %v5240_v60 = vld [vmem:[%s6401_s5 + $0xb0] sm:$0xff]   ;;  %v5242_v0 = vld [vmem:[%s6401_s5 + $0x38] sm:$0xff]  }
 0x1a4   : > { %v5964_v43 = vpack.c.bf16 %v1289_v2, %v1285_v56  ;;  %v5236_v22 = vld [vmem:[%s6401_s5 + $0xa8] sm:$0xff]  }
 0x1a8   : > { %2371 = vmatmul.mubr.bf16.vlgmr.msra.gmra.mrb[64].mxu0 %v5686_v20  ;;  %2757 = vmatmul.mubr.bf16.vlgmr.msra.gmra.mrb[64].mxu1 %v5686_v20  ;;  %v1290_v20 = vmax.f32 %v1033_v1, %v1162_v18  ;;  %v5244_v1 = vld [vmem:[%s6401_s5 + $0xb8] sm:$0xff]  }
 0x1a9   : > { %2380 = vmatprep.mubr.bf16.mxu0 %v5731_v48  ;;  %2766 = vmatprep.mubr.bf16.mxu1 %v5731_v48  ;;  %v5221_v48 = vld [vmem:[%s6401_s5 + $0x50] sm:$0xff]  }
 0x1aa   : > { %4448 = vmatpush3.bf16.msra.mxu0 %v5214_v57  ;;  %4560 = vmatpush3.bf16.msra.mxu1 %v5216_v30  ;;  %v5966_v4 = vpack.c.bf16 %v1290_v20, %v1286_v36  ;;  %v5241_v57 = vld [vmem:[%s6401_s5 + $0x78] sm:$0xff]  }
 0x1ab   : > { %4449 = vmatprep.subr.bf16.mxu0 %v5217_v23  ;;  %4561 = vmatprep.subr.bf16.mxu1 %v5219_v14  ;;  %v5243_v30 = vld [vmem:[%s6401_s5 + $0xf8] sm:$0xff]  }
 0x1ae   : > { %4450 = vmatpush3.bf16.msra.mxu0 %v5218_v58  ;;  %4562 = vmatpush3.bf16.msra.mxu1 %v5220_v34 }
 0x1af   : > { %4451 = vmatprep.subr.bf16.mxu0 %v5221_v48  ;;  %4563 = vmatprep.subr.bf16.mxu1 %v5223_v61 }
 0x1b0   : > { %2381 = vmatmul.mubr.bf16.gmra.mrb[68].mxu0 %v5713_v10  ;;  %2767 = vmatmul.mubr.bf16.gmra.mrb[68].mxu1 %v5713_v10  ;;  %v5229_v10 = vld [vmem:[%s6401_s5 + $0x60] sm:$0xff]  }
 0x1b1   : > { %2390 = vmatprep.mubr.bf16.mxu0 %v5757_v39  ;;  %2776 = vmatprep.mubr.bf16.mxu1 %v5757_v39  ;;  %v5231_v39 = vld [vmem:[%s6401_s5 + $0xe0] sm:$0xff]  }
 0x1b2   : > { %4452 = vmatpush3.bf16.msra.mxu0 %v5222_v8  ;;  %4564 = vmatpush3.bf16.msra.mxu1 %v5224_v11 }
 0x1b3   : > { %4453 = vmatprep.subr.bf16.mxu0 %v5225_v7  ;;  %4565 = vmatprep.subr.bf16.mxu1 %v5227_v12 }
 0x1b6   : > { %4454 = vmatpush3.bf16.msra.mxu0 %v5226_v15  ;;  %4566 = vmatpush3.bf16.msra.mxu1 %v5228_v19 }
 0x1b7   : > { %4455 = vmatprep.subr.bf16.mxu0 %v5229_v10  ;;  %4567 = vmatprep.subr.bf16.mxu1 %v5231_v39 }
 0x1b8   : > { %2391 = vmatmul.mubr.bf16.gmra.mrb[72].mxu0 %v5739_v62  ;;  %2777 = vmatmul.mubr.bf16.gmra.mrb[72].mxu1 %v5739_v62  ;;  %v5237_v62 = vld [vmem:[%s6401_s5 + $0x70] sm:$0xff]  }
 0x1b9   : > { %2400 = vmatprep.mubr.bf16.mxu0 %v5783_v31  ;;  %2786 = vmatprep.mubr.bf16.mxu1 %v5783_v31  ;;  %v5239_v31 = vld [vmem:[%s6401_s5 + $0xf0] sm:$0xff]  }
 0x1ba   : > { %4456 = vmatpush3.bf16.msra.mxu0 %v5230_v13  ;;  %4568 = vmatpush3.bf16.msra.mxu1 %v5232_v27 }
 0x1bb   : > { %4457 = vmatprep.subr.bf16.mxu0 %v5233_v21  ;;  %4569 = vmatprep.subr.bf16.mxu1 %v5235_v16 }
 0x1be   : > { %4458 = vmatpush3.bf16.msra.mxu0 %v5234_v26  ;;  %4570 = vmatpush3.bf16.msra.mxu1 %v5236_v22 }
 0x1bf   : > { %4459 = vmatprep.subr.bf16.mxu0 %v5237_v62  ;;  %4571 = vmatprep.subr.bf16.mxu1 %v5239_v31 }
 0x1c0   : > { %2401 = vmatmul.mubr.bf16.gmra.mrb[76].mxu0 %v5765_v53  ;;  %2787 = vmatmul.mubr.bf16.gmra.mrb[76].mxu1 %v5765_v53  ;;  %v1483_v53 = vld [vmem:[%s6400_s4] sm:$0xf] }
 0x1c1   : > { %2410 = vmatprep.mubr.bf16.mxu0 %v5807_v28  ;;  %2796 = vmatprep.mubr.bf16.mxu1 %v5807_v28  ;;  %v6101_v28 = vrot.slane %v1483_v53, %v430_v63 }
 0x1c2   : > { %4460 = vmatpush3.bf16.msra.mxu0 %v5238_v42  ;;  %4572 = vmatpush3.bf16.msra.mxu1 %v5240_v60 }
 0x1c3   : > { %4461 = vmatprep.subr.bf16.mxu0 %v5241_v57  ;;  %4573 = vmatprep.subr.bf16.mxu1 %v5243_v30 }
 0x1c6   : > { %4462 = vmatpush3.bf16.msra.mxu0 %v5242_v0  ;;  %4574 = vmatpush3.bf16.msra.mxu1 %v5244_v1 }
 0x1c8   : > { %2411 = vmatmul.mubr.bf16.gmra.mrb[80].mxu0 %v5791_v46  ;;  %2797 = vmatmul.mubr.bf16.gmra.mrb[80].mxu1 %v5791_v46  ;;  %v6097_v46 = vrot.slane %v1483_v53, %v422_v38 }
 0x1c9   : > { %2420 = vmatprep.mubr.bf16.mxu0 %v5825_v25  ;;  %2806 = vmatprep.mubr.bf16.mxu1 %v5825_v25  ;;  %v6109_v25 = vrot.slane %v1483_v53, %v434_v6 }
 0x1d0   : > { %2421 = vmatmul.mubr.bf16.gmra.mrb[84].mxu0 %v5814_v35  ;;  %2807 = vmatmul.mubr.bf16.gmra.mrb[84].mxu1 %v5814_v35  ;;  %v6105_v35 = vrot.slane %v1483_v53, %v426_v40 }
 0x1d1   : > { %2430 = vmatprep.mubr.bf16.mxu0 %v5838_v17  ;;  %2816 = vmatprep.mubr.bf16.mxu1 %v5838_v17 }
 0x1d8   : > { %2431 = vmatmul.mubr.bf16.gmra.mrb[88].mxu0 %v5830_v54  ;;  %2817 = vmatmul.mubr.bf16.gmra.mrb[88].mxu1 %v5830_v54 }
 0x1d9   : > { %2440 = vmatprep.mubr.bf16.mxu0 %v5846_v45  ;;  %2826 = vmatprep.mubr.bf16.mxu1 %v5846_v45 }
 0x1e0   : > { %2441 = vmatmul.mubr.bf16.gmra.mrb[92].mxu0 %v5842_v49  ;;  %2827 = vmatmul.mubr.bf16.gmra.mrb[92].mxu1 %v5842_v49 }
 0x1e1   : > { %2450 = vmatprep.mubr.bf16.mxu0 %v5858_v51  ;;  %2836 = vmatprep.mubr.bf16.mxu1 %v5858_v51 }
 0x1e8   : > { %2451 = vmatmul.mubr.bf16.gmra.mrb[96].mxu0 %v5854_v29  ;;  %2837 = vmatmul.mubr.bf16.gmra.mrb[96].mxu1 %v5854_v29 }
 0x1e9   : > { %2460 = vmatprep.mubr.bf16.mxu0 %v5870_v44  ;;  %2846 = vmatprep.mubr.bf16.mxu1 %v5870_v44 }
 0x1f0   : > { %2461 = vmatmul.mubr.bf16.gmra.mrb[100].mxu0 %v5866_v24  ;;  %2847 = vmatmul.mubr.bf16.gmra.mrb[100].mxu1 %v5866_v24 }
 0x1f1   : > { %2470 = vmatprep.mubr.bf16.mxu0 %v5885_v33  ;;  %2856 = vmatprep.mubr.bf16.mxu1 %v5885_v33 }
 0x1f8   : > { %2471 = vmatmul.mubr.bf16.gmra.mrb[104].mxu0 %v5881_v50  ;;  %2857 = vmatmul.mubr.bf16.gmra.mrb[104].mxu1 %v5881_v50 }
 0x1f9   : > { %2480 = vmatprep.mubr.bf16.mxu0 %v5900_v52  ;;  %2866 = vmatprep.mubr.bf16.mxu1 %v5900_v52 }
 0x200   : > { %2481 = vmatmul.mubr.bf16.gmra.mrb[108].mxu0 %v5896_v55  ;;  %2867 = vmatmul.mubr.bf16.gmra.mrb[108].mxu1 %v5896_v55 }
 0x201   : > { %2490 = vmatprep.mubr.bf16.mxu0 %v5912_v59  ;;  %2876 = vmatprep.mubr.bf16.mxu1 %v5912_v59 }
 0x208   : > { %2491 = vmatmul.mubr.bf16.gmra.mrb[112].mxu0 %v5908_v47  ;;  %2877 = vmatmul.mubr.bf16.gmra.mrb[112].mxu1 %v5908_v47 }
 0x209   : > { %2500 = vmatprep.mubr.bf16.mxu0 %v5922_v5  ;;  %2886 = vmatprep.mubr.bf16.mxu1 %v5922_v5 }
 0x210   : > { %2501 = vmatmul.mubr.bf16.gmra.mrb[116].mxu0 %v5919_v3  ;;  %2887 = vmatmul.mubr.bf16.gmra.mrb[116].mxu1 %v5919_v3 }
 0x211   : > { %2510 = vmatprep.mubr.bf16.mxu0 %v5932_v32  ;;  %2896 = vmatprep.mubr.bf16.mxu1 %v5932_v32 }
 0x218   : > { %2511 = vmatmul.mubr.bf16.gmra.mrb[120].mxu0 %v5929_v41  ;;  %2897 = vmatmul.mubr.bf16.gmra.mrb[120].mxu1 %v5929_v41 }
 0x219   : > { %2520 = vmatprep.mubr.bf16.mxu0 %v5966_v4  ;;  %2906 = vmatprep.mubr.bf16.mxu1 %v5966_v4 }
 0x220   : > { %2521 = vmatmul.mubr.bf16.gmra.mrb[124].mxu0 %v5964_v43  ;;  %2907 = vmatmul.mubr.bf16.gmra.mrb[124].mxu1 %v5964_v43 }
 0x27b   : > { %v2372_v54 = vpop.f32.mrb[64].mxu0  ;;  %v2758_v17 = vpop.f32.mrb[64].mxu1 }
 0x27c   : > { %v4671_v49 = vadd.f32 %v2372_v54, %v6097_v46  ;;  %v4735_v45 = vadd.f32 %v2758_v17, %v6101_v28  ;;  %v2374_v38 = vpop.f32.mrb[65].mxu0  ;;  %v2760_v29 = vpop.f32.mrb[65].mxu1 }
 0x27d   : > { %v4672_v51 = vadd.f32 %v2374_v38, %v6105_v35  ;;  %v4736_v63 = vadd.f32 %v2760_v29, %v6109_v25  ;;  %v2376_v24 = vpop.f32.mrb[66].mxu0  ;;  %v2762_v44 = vpop.f32.mrb[66].mxu1 }
 0x27e   : > { %v2917_v40 = vmul.f32 0.01, %v4671_v49  ;;  %v2919_v50 = vmul.f32 0.01, %v4735_v45  ;;  %v4673_v33 = vadd.f32 %v2376_v24, %v6097_v46  ;;  %v4737_v6 = vadd.f32 %v2762_v44, %v6101_v28  ;;  %v2378_v55 = vpop.f32.mrb[67].mxu0  ;;  %v2764_v52 = vpop.f32.mrb[67].mxu1 }
 0x27f   : > { %v2918_v47 = vmul.f32 0.01, %v4672_v51  ;;  %v2920_v59 = vmul.f32 0.01, %v4736_v63  ;;  %v4674_v3 = vadd.f32 %v2378_v55, %v6105_v35  ;;  %v4738_v5 = vadd.f32 %v2764_v52, %v6109_v25 }
 0x280   : > { %v2921_v41 = vmul.f32 0.01, %v4673_v33  ;;  %v2923_v32 = vmul.f32 0.01, %v4737_v6  ;;  %v3045_v56 = vmax.f32 %v4671_v49, %v2917_v40  ;;  %v3047_v9 = vmax.f32 %v4735_v45, %v2919_v50 }
 0x281   : > { %v2922_v23 = vmul.f32 0.01, %v4674_v3  ;;  %v2924_v14 = vmul.f32 0.01, %v4738_v5  ;;  %v3046_v2 = vmax.f32 %v4672_v51, %v2918_v47  ;;  %v3048_v58 = vmax.f32 %v4736_v63, %v2920_v59 }
 0x282   : > { %v3049_v36 = vmax.f32 %v4673_v33, %v2921_v41  ;;  %v3051_v18 = vmax.f32 %v4737_v6, %v2923_v32 }
 0x283   : > { %v3050_v34 = vmax.f32 %v4674_v3, %v2922_v23  ;;  %v3052_v20 = vmax.f32 %v4738_v5, %v2924_v14  ;;  %v2382_v48 = vpop.f32.mrb[68].mxu0  ;;  %v2768_v61 = vpop.f32.mrb[68].mxu1 }
 0x284   : > { %v3173_v43 = vpack.c.bf16 %v3049_v36, %v3045_v56  ;;  %v3175_v4 = vpack.c.bf16 %v3051_v18, %v3047_v9  ;;  %v4675_v8 = vadd.f32 %v2382_v48, %v6097_v46  ;;  %v4739_v11 = vadd.f32 %v2768_v61, %v6101_v28  ;;  %v2384_v7 = vpop.f32.mrb[69].mxu0  ;;  %v2770_v12 = vpop.f32.mrb[69].mxu1 }
 0x285   : > { %v4676_v15 = vadd.f32 %v2384_v7, %v6105_v35  ;;  %v4740_v19 = vadd.f32 %v2770_v12, %v6109_v25  ;;  %v2386_v10 = vpop.f32.mrb[70].mxu0  ;;  %v2772_v39 = vpop.f32.mrb[70].mxu1  ;;  %v3174_v13 = vpack.c.bf16 %v3050_v34, %v3046_v2  ;;  %v3176_v27 = vpack.c.bf16 %v3052_v20, %v3048_v58 }
 0x286   : > { %v2925_v21 = vmul.f32 0.01, %v4675_v8  ;;  %v2927_v16 = vmul.f32 0.01, %v4739_v11  ;;  %v4677_v26 = vadd.f32 %v2386_v10, %v6097_v46  ;;  %v4741_v22 = vadd.f32 %v2772_v39, %v6101_v28  ;;  %v2388_v62 = vpop.f32.mrb[71].mxu0  ;;  %v2774_v31 = vpop.f32.mrb[71].mxu1 }
 0x287   : > { %v2926_v42 = vmul.f32 0.01, %v4676_v15  ;;  %v2928_v60 = vmul.f32 0.01, %v4740_v19  ;;  %v4678_v57 = vadd.f32 %v2388_v62, %v6105_v35  ;;  %v4742_v30 = vadd.f32 %v2774_v31, %v6109_v25  ;;  %3532 = vmatprep.mubr.bf16.mxu0 %v3174_v13  ;;  %3693 = vmatprep.mubr.bf16.mxu1 %v3176_v27 }
 0x288   : > { %v2929_v0 = vmul.f32 0.01, %v4677_v26  ;;  %v2931_v1 = vmul.f32 0.01, %v4741_v22  ;;  %3533 = vmatmul.mubr.bf16.vlgmr.msra.gmra.mrb[128].mxu0 %v3173_v43  ;;  %3694 = vmatmul.mubr.bf16.vlgmr.msra.gmra.mrb[128].mxu1 %v3175_v4  ;;  %v3053_v17 = vmax.f32 %v4675_v8, %v2925_v21  ;;  %v3055_v49 = vmax.f32 %v4739_v11, %v2927_v16 }
 0x289   : > { %v2930_v53 = vmul.f32 0.01, %v4678_v57  ;;  %v2932_v54 = vmul.f32 0.01, %v4742_v30  ;;  %v3054_v29 = vmax.f32 %v4676_v15, %v2926_v42  ;;  %v3056_v51 = vmax.f32 %v4740_v19, %v2928_v60 }
 0x28a   : > { %v3057_v45 = vmax.f32 %v4677_v26, %v2929_v0  ;;  %v3059_v38 = vmax.f32 %v4741_v22, %v2931_v1 }
 0x28b   : > { %v3058_v63 = vmax.f32 %v4678_v57, %v2930_v53  ;;  %v3060_v24 = vmax.f32 %v4742_v30, %v2932_v54  ;;  %v2392_v44 = vpop.f32.mrb[72].mxu0  ;;  %v2778_v40 = vpop.f32.mrb[72].mxu1 }
 0x28c   : > { %v4679_v50 = vadd.f32 %v2392_v44, %v6097_v46  ;;  %v4743_v33 = vadd.f32 %v2778_v40, %v6101_v28  ;;  %v2394_v6 = vpop.f32.mrb[73].mxu0  ;;  %v2780_v55 = vpop.f32.mrb[73].mxu1  ;;  %v3177_v52 = vpack.c.bf16 %v3057_v45, %v3053_v17  ;;  %v3179_v47 = vpack.c.bf16 %v3059_v38, %v3055_v49 }
 0x28d   : > { %v4680_v59 = vadd.f32 %v2394_v6, %v6105_v35  ;;  %v4744_v3 = vadd.f32 %v2780_v55, %v6109_v25  ;;  %v2396_v5 = vpop.f32.mrb[74].mxu0  ;;  %v2782_v41 = vpop.f32.mrb[74].mxu1  ;;  %v3178_v32 = vpack.c.bf16 %v3058_v63, %v3054_v29  ;;  %v3180_v23 = vpack.c.bf16 %v3060_v24, %v3056_v51 }
 0x28e   : > { %v2933_v14 = vmul.f32 0.01, %v4679_v50  ;;  %v2935_v56 = vmul.f32 0.01, %v4743_v33  ;;  %v4681_v9 = vadd.f32 %v2396_v5, %v6097_v46  ;;  %v4745_v36 = vadd.f32 %v2782_v41, %v6101_v28  ;;  %v2398_v18 = vpop.f32.mrb[75].mxu0  ;;  %v2784_v2 = vpop.f32.mrb[75].mxu1 }
 0x28f   : > { %v2934_v58 = vmul.f32 0.01, %v4680_v59  ;;  %v2936_v34 = vmul.f32 0.01, %v4744_v3  ;;  %v4682_v20 = vadd.f32 %v2398_v18, %v6105_v35  ;;  %v4746_v48 = vadd.f32 %v2784_v2, %v6109_v25  ;;  %3540 = vmatprep.mubr.bf16.mxu0 %v3178_v32  ;;  %3701 = vmatprep.mubr.bf16.mxu1 %v3180_v23 }
 0x290   : > { %v2937_v61 = vmul.f32 0.01, %v4681_v9  ;;  %v2939_v43 = vmul.f32 0.01, %v4745_v36  ;;  %3541 = vmatmul.mubr.bf16.gmra.mrb[132].mxu0 %v3177_v52  ;;  %3702 = vmatmul.mubr.bf16.gmra.mrb[132].mxu1 %v3179_v47  ;;  %v3061_v11 = vmax.f32 %v4679_v50, %v2933_v14  ;;  %v3063_v7 = vmax.f32 %v4743_v33, %v2935_v56 }
 0x291   : > { %v2938_v4 = vmul.f32 0.01, %v4682_v20  ;;  %v2940_v8 = vmul.f32 0.01, %v4746_v48  ;;  %v3062_v19 = vmax.f32 %v4680_v59, %v2934_v58  ;;  %v3064_v10 = vmax.f32 %v4744_v3, %v2936_v34 }
 0x292   : > { %v3065_v12 = vmax.f32 %v4681_v9, %v2937_v61  ;;  %v3067_v15 = vmax.f32 %v4745_v36, %v2939_v43 }
 0x293   : > { %v3066_v39 = vmax.f32 %v4682_v20, %v2938_v4  ;;  %v3068_v13 = vmax.f32 %v4746_v48, %v2940_v8  ;;  %v2402_v27 = vpop.f32.mrb[76].mxu0  ;;  %v2788_v21 = vpop.f32.mrb[76].mxu1 }
 0x294   : > { %v4683_v16 = vadd.f32 %v2402_v27, %v6097_v46  ;;  %v4747_v26 = vadd.f32 %v2788_v21, %v6101_v28  ;;  %v2404_v22 = vpop.f32.mrb[77].mxu0  ;;  %v2790_v62 = vpop.f32.mrb[77].mxu1  ;;  %v3181_v31 = vpack.c.bf16 %v3065_v12, %v3061_v11  ;;  %v3183_v42 = vpack.c.bf16 %v3067_v15, %v3063_v7 }
 0x295   : > { %v4684_v60 = vadd.f32 %v2404_v22, %v6105_v35  ;;  %v4748_v57 = vadd.f32 %v2790_v62, %v6109_v25  ;;  %v2406_v30 = vpop.f32.mrb[78].mxu0  ;;  %v2792_v0 = vpop.f32.mrb[78].mxu1  ;;  %v3182_v1 = vpack.c.bf16 %v3066_v39, %v3062_v19  ;;  %v3184_v53 = vpack.c.bf16 %v3068_v13, %v3064_v10 }
 0x296   : > { %v2941_v54 = vmul.f32 0.01, %v4683_v16  ;;  %v2943_v17 = vmul.f32 0.01, %v4747_v26  ;;  %v4685_v49 = vadd.f32 %v2406_v30, %v6097_v46  ;;  %v4749_v45 = vadd.f32 %v2792_v0, %v6101_v28  ;;  %v2408_v38 = vpop.f32.mrb[79].mxu0  ;;  %v2794_v29 = vpop.f32.mrb[79].mxu1 }
 0x297   : > { %v2942_v51 = vmul.f32 0.01, %v4684_v60  ;;  %v2944_v63 = vmul.f32 0.01, %v4748_v57  ;;  %v4686_v24 = vadd.f32 %v2408_v38, %v6105_v35  ;;  %v4750_v44 = vadd.f32 %v2794_v29, %v6109_v25  ;;  %3548 = vmatprep.mubr.bf16.mxu0 %v3182_v1  ;;  %3709 = vmatprep.mubr.bf16.mxu1 %v3184_v53 }
 0x298   : > { %v2945_v40 = vmul.f32 0.01, %v4685_v49  ;;  %v2947_v50 = vmul.f32 0.01, %v4749_v45  ;;  %3549 = vmatmul.mubr.bf16.gmra.mrb[136].mxu0 %v3181_v31  ;;  %3710 = vmatmul.mubr.bf16.gmra.mrb[136].mxu1 %v3183_v42  ;;  %v3069_v55 = vmax.f32 %v4683_v16, %v2941_v54  ;;  %v3071_v52 = vmax.f32 %v4747_v26, %v2943_v17 }
 0x299   : > { %v2946_v33 = vmul.f32 0.01, %v4686_v24  ;;  %v2948_v6 = vmul.f32 0.01, %v4750_v44  ;;  %v3070_v3 = vmax.f32 %v4684_v60, %v2942_v51  ;;  %v3072_v5 = vmax.f32 %v4748_v57, %v2944_v63 }
 0x29a   : > { %v3073_v47 = vmax.f32 %v4685_v49, %v2945_v40  ;;  %v3075_v59 = vmax.f32 %v4749_v45, %v2947_v50 }
 0x29b   : > { %v3074_v41 = vmax.f32 %v4686_v24, %v2946_v33  ;;  %v3076_v32 = vmax.f32 %v4750_v44, %v2948_v6  ;;  %v2412_v23 = vpop.f32.mrb[80].mxu0  ;;  %v2798_v14 = vpop.f32.mrb[80].mxu1 }
 0x29c   : > { %v4687_v56 = vadd.f32 %v2412_v23, %v6097_v46  ;;  %v4751_v9 = vadd.f32 %v2798_v14, %v6101_v28  ;;  %v2414_v36 = vpop.f32.mrb[81].mxu0  ;;  %v2800_v18 = vpop.f32.mrb[81].mxu1  ;;  %v3185_v2 = vpack.c.bf16 %v3073_v47, %v3069_v55  ;;  %v3187_v58 = vpack.c.bf16 %v3075_v59, %v3071_v52 }
 0x29d   : > { %v4688_v34 = vadd.f32 %v2414_v36, %v6105_v35  ;;  %v4752_v20 = vadd.f32 %v2800_v18, %v6109_v25  ;;  %v2416_v48 = vpop.f32.mrb[82].mxu0  ;;  %v2802_v61 = vpop.f32.mrb[82].mxu1  ;;  %v3186_v43 = vpack.c.bf16 %v3074_v41, %v3070_v3  ;;  %v3188_v4 = vpack.c.bf16 %v3076_v32, %v3072_v5 }
 0x29e   : > { %v2949_v8 = vmul.f32 0.01, %v4687_v56  ;;  %v2951_v11 = vmul.f32 0.01, %v4751_v9  ;;  %v4689_v7 = vadd.f32 %v2416_v48, %v6097_v46  ;;  %v4753_v12 = vadd.f32 %v2802_v61, %v6101_v28  ;;  %v2418_v15 = vpop.f32.mrb[83].mxu0  ;;  %v2804_v19 = vpop.f32.mrb[83].mxu1 }
 0x29f   : > { %v2950_v10 = vmul.f32 0.01, %v4688_v34  ;;  %v2952_v39 = vmul.f32 0.01, %v4752_v20  ;;  %v4690_v13 = vadd.f32 %v2418_v15, %v6105_v35  ;;  %v4754_v27 = vadd.f32 %v2804_v19, %v6109_v25  ;;  %3556 = vmatprep.mubr.bf16.mxu0 %v3186_v43  ;;  %3717 = vmatprep.mubr.bf16.mxu1 %v3188_v4 }
 0x2a0   : > { %v2953_v21 = vmul.f32 0.01, %v4689_v7  ;;  %v2955_v16 = vmul.f32 0.01, %v4753_v12  ;;  %3557 = vmatmul.mubr.bf16.gmra.mrb[140].mxu0 %v3185_v2  ;;  %3718 = vmatmul.mubr.bf16.gmra.mrb[140].mxu1 %v3187_v58  ;;  %v3077_v62 = vmax.f32 %v4687_v56, %v2949_v8  ;;  %v3079_v31 = vmax.f32 %v4751_v9, %v2951_v11 }
 0x2a1   : > { %v2954_v26 = vmul.f32 0.01, %v4690_v13  ;;  %v2956_v22 = vmul.f32 0.01, %v4754_v27  ;;  %v3078_v57 = vmax.f32 %v4688_v34, %v2950_v10  ;;  %v3080_v30 = vmax.f32 %v4752_v20, %v2952_v39 }
 0x2a2   : > { %v3081_v42 = vmax.f32 %v4689_v7, %v2953_v21  ;;  %v3083_v60 = vmax.f32 %v4753_v12, %v2955_v16 }
 0x2a3   : > { %v3082_v0 = vmax.f32 %v4690_v13, %v2954_v26  ;;  %v3084_v1 = vmax.f32 %v4754_v27, %v2956_v22  ;;  %v2422_v53 = vpop.f32.mrb[84].mxu0  ;;  %v2808_v54 = vpop.f32.mrb[84].mxu1 }
 0x2a4   : > { %v4691_v17 = vadd.f32 %v2422_v53, %v6097_v46  ;;  %v4755_v49 = vadd.f32 %v2808_v54, %v6101_v28  ;;  %v2424_v45 = vpop.f32.mrb[85].mxu0  ;;  %v2810_v38 = vpop.f32.mrb[85].mxu1  ;;  %v3189_v29 = vpack.c.bf16 %v3081_v42, %v3077_v62  ;;  %v3191_v51 = vpack.c.bf16 %v3083_v60, %v3079_v31 }
 0x2a5   : > { %v4692_v63 = vadd.f32 %v2424_v45, %v6105_v35  ;;  %v4756_v24 = vadd.f32 %v2810_v38, %v6109_v25  ;;  %v2426_v44 = vpop.f32.mrb[86].mxu0  ;;  %v2812_v40 = vpop.f32.mrb[86].mxu1  ;;  %v3190_v50 = vpack.c.bf16 %v3082_v0, %v3078_v57  ;;  %v3192_v33 = vpack.c.bf16 %v3084_v1, %v3080_v30 }
 0x2a6   : > { %v2957_v6 = vmul.f32 0.01, %v4691_v17  ;;  %v2959_v55 = vmul.f32 0.01, %v4755_v49  ;;  %v4693_v52 = vadd.f32 %v2426_v44, %v6097_v46  ;;  %v4757_v47 = vadd.f32 %v2812_v40, %v6101_v28  ;;  %v2428_v59 = vpop.f32.mrb[87].mxu0  ;;  %v2814_v3 = vpop.f32.mrb[87].mxu1 }
 0x2a7   : > { %v2958_v5 = vmul.f32 0.01, %v4692_v63  ;;  %v2960_v41 = vmul.f32 0.01, %v4756_v24  ;;  %v4694_v32 = vadd.f32 %v2428_v59, %v6105_v35  ;;  %v4758_v23 = vadd.f32 %v2814_v3, %v6109_v25  ;;  %3564 = vmatprep.mubr.bf16.mxu0 %v3190_v50  ;;  %3725 = vmatprep.mubr.bf16.mxu1 %v3192_v33 }
 0x2a8   : > { %v2961_v14 = vmul.f32 0.01, %v4693_v52  ;;  %v2963_v56 = vmul.f32 0.01, %v4757_v47  ;;  %3565 = vmatmul.mubr.bf16.gmra.mrb[144].mxu0 %v3189_v29  ;;  %3726 = vmatmul.mubr.bf16.gmra.mrb[144].mxu1 %v3191_v51  ;;  %v3085_v18 = vmax.f32 %v4691_v17, %v2957_v6  ;;  %v3087_v2 = vmax.f32 %v4755_v49, %v2959_v55 }
 0x2a9   : > { %v2962_v9 = vmul.f32 0.01, %v4694_v32  ;;  %v2964_v36 = vmul.f32 0.01, %v4758_v23  ;;  %v3086_v20 = vmax.f32 %v4692_v63, %v2958_v5  ;;  %v3088_v48 = vmax.f32 %v4756_v24, %v2960_v41 }
 0x2aa   : > { %v3089_v58 = vmax.f32 %v4693_v52, %v2961_v14  ;;  %v3091_v34 = vmax.f32 %v4757_v47, %v2963_v56 }
 0x2ab   : > { %v3090_v61 = vmax.f32 %v4694_v32, %v2962_v9  ;;  %v3092_v43 = vmax.f32 %v4758_v23, %v2964_v36  ;;  %v2432_v4 = vpop.f32.mrb[88].mxu0  ;;  %v2818_v8 = vpop.f32.mrb[88].mxu1 }
 0x2ac   : > { %v4695_v11 = vadd.f32 %v2432_v4, %v6097_v46  ;;  %v4759_v7 = vadd.f32 %v2818_v8, %v6101_v28  ;;  %v2434_v12 = vpop.f32.mrb[89].mxu0  ;;  %v2820_v15 = vpop.f32.mrb[89].mxu1  ;;  %v3193_v19 = vpack.c.bf16 %v3089_v58, %v3085_v18  ;;  %v3195_v10 = vpack.c.bf16 %v3091_v34, %v3087_v2 }
 0x2ad   : > { %v4696_v39 = vadd.f32 %v2434_v12, %v6105_v35  ;;  %v4760_v13 = vadd.f32 %v2820_v15, %v6109_v25  ;;  %v2436_v27 = vpop.f32.mrb[90].mxu0  ;;  %v2822_v21 = vpop.f32.mrb[90].mxu1  ;;  %v3194_v16 = vpack.c.bf16 %v3090_v61, %v3086_v20  ;;  %v3196_v26 = vpack.c.bf16 %v3092_v43, %v3088_v48 }
 0x2ae   : > { %v2965_v22 = vmul.f32 0.01, %v4695_v11  ;;  %v2967_v62 = vmul.f32 0.01, %v4759_v7  ;;  %v4697_v31 = vadd.f32 %v2436_v27, %v6097_v46  ;;  %v4761_v42 = vadd.f32 %v2822_v21, %v6101_v28  ;;  %v2438_v60 = vpop.f32.mrb[91].mxu0  ;;  %v2824_v57 = vpop.f32.mrb[91].mxu1 }
 0x2af   : > { %v2966_v30 = vmul.f32 0.01, %v4696_v39  ;;  %v2968_v0 = vmul.f32 0.01, %v4760_v13  ;;  %v4698_v1 = vadd.f32 %v2438_v60, %v6105_v35  ;;  %v4762_v53 = vadd.f32 %v2824_v57, %v6109_v25  ;;  %3572 = vmatprep.mubr.bf16.mxu0 %v3194_v16  ;;  %3733 = vmatprep.mubr.bf16.mxu1 %v3196_v26 }
 0x2b0   : > { %v2969_v54 = vmul.f32 0.01, %v4697_v31  ;;  %v2971_v17 = vmul.f32 0.01, %v4761_v42  ;;  %3573 = vmatmul.mubr.bf16.gmra.mrb[148].mxu0 %v3193_v19  ;;  %3734 = vmatmul.mubr.bf16.gmra.mrb[148].mxu1 %v3195_v10  ;;  %v3093_v38 = vmax.f32 %v4695_v11, %v2965_v22  ;;  %v3095_v29 = vmax.f32 %v4759_v7, %v2967_v62 }
 0x2b1   : > { %v2970_v49 = vmul.f32 0.01, %v4698_v1  ;;  %v2972_v45 = vmul.f32 0.01, %v4762_v53  ;;  %v3094_v24 = vmax.f32 %v4696_v39, %v2966_v30  ;;  %v3096_v44 = vmax.f32 %v4760_v13, %v2968_v0 }
 0x2b2   : > { %v3097_v51 = vmax.f32 %v4697_v31, %v2969_v54  ;;  %v3099_v63 = vmax.f32 %v4761_v42, %v2971_v17 }
 0x2b3   : > { %v3098_v40 = vmax.f32 %v4698_v1, %v2970_v49  ;;  %v3100_v50 = vmax.f32 %v4762_v53, %v2972_v45  ;;  %v2442_v33 = vpop.f32.mrb[92].mxu0  ;;  %v2828_v6 = vpop.f32.mrb[92].mxu1 }
 0x2b4   : > { %v4699_v55 = vadd.f32 %v2442_v33, %v6097_v46  ;;  %v4763_v52 = vadd.f32 %v2828_v6, %v6101_v28  ;;  %v2444_v47 = vpop.f32.mrb[93].mxu0  ;;  %v2830_v59 = vpop.f32.mrb[93].mxu1  ;;  %v3197_v3 = vpack.c.bf16 %v3097_v51, %v3093_v38  ;;  %v3199_v5 = vpack.c.bf16 %v3099_v63, %v3095_v29 }
 0x2b5   : > { %v4700_v41 = vadd.f32 %v2444_v47, %v6105_v35  ;;  %v4764_v32 = vadd.f32 %v2830_v59, %v6109_v25  ;;  %v2446_v23 = vpop.f32.mrb[94].mxu0  ;;  %v2832_v14 = vpop.f32.mrb[94].mxu1  ;;  %v3198_v56 = vpack.c.bf16 %v3098_v40, %v3094_v24  ;;  %v3200_v9 = vpack.c.bf16 %v3100_v50, %v3096_v44 }
 0x2b6   : > { %v2973_v36 = vmul.f32 0.01, %v4699_v55  ;;  %v2975_v18 = vmul.f32 0.01, %v4763_v52  ;;  %v4701_v2 = vadd.f32 %v2446_v23, %v6097_v46  ;;  %v4765_v58 = vadd.f32 %v2832_v14, %v6101_v28  ;;  %v2448_v34 = vpop.f32.mrb[95].mxu0  ;;  %v2834_v20 = vpop.f32.mrb[95].mxu1 }
 0x2b7   : > { %v2974_v48 = vmul.f32 0.01, %v4700_v41  ;;  %v2976_v61 = vmul.f32 0.01, %v4764_v32  ;;  %v4702_v43 = vadd.f32 %v2448_v34, %v6105_v35  ;;  %v4766_v4 = vadd.f32 %v2834_v20, %v6109_v25  ;;  %3580 = vmatprep.mubr.bf16.mxu0 %v3198_v56  ;;  %3741 = vmatprep.mubr.bf16.mxu1 %v3200_v9 }
 0x2b8   : > { %v2977_v8 = vmul.f32 0.01, %v4701_v2  ;;  %v2979_v11 = vmul.f32 0.01, %v4765_v58  ;;  %3581 = vmatmul.mubr.bf16.gmra.mrb[152].mxu0 %v3197_v3  ;;  %3742 = vmatmul.mubr.bf16.gmra.mrb[152].mxu1 %v3199_v5  ;;  %v3101_v15 = vmax.f32 %v4699_v55, %v2973_v36  ;;  %v3103_v19 = vmax.f32 %v4763_v52, %v2975_v18 }
 0x2b9   : > { %v2978_v7 = vmul.f32 0.01, %v4702_v43  ;;  %v2980_v12 = vmul.f32 0.01, %v4766_v4  ;;  %v3102_v13 = vmax.f32 %v4700_v41, %v2974_v48  ;;  %v3104_v27 = vmax.f32 %v4764_v32, %v2976_v61 }
 0x2ba   : > { %v3105_v10 = vmax.f32 %v4701_v2, %v2977_v8  ;;  %v3107_v39 = vmax.f32 %v4765_v58, %v2979_v11 }
 0x2bb   : > { %v3106_v21 = vmax.f32 %v4702_v43, %v2978_v7  ;;  %v3108_v16 = vmax.f32 %v4766_v4, %v2980_v12  ;;  %v2452_v26 = vpop.f32.mrb[96].mxu0  ;;  %v2838_v22 = vpop.f32.mrb[96].mxu1 }
 0x2bc   : > { %v4703_v62 = vadd.f32 %v2452_v26, %v6097_v46  ;;  %v4767_v31 = vadd.f32 %v2838_v22, %v6101_v28  ;;  %v2454_v42 = vpop.f32.mrb[97].mxu0  ;;  %v2840_v60 = vpop.f32.mrb[97].mxu1  ;;  %v3201_v57 = vpack.c.bf16 %v3105_v10, %v3101_v15  ;;  %v3203_v30 = vpack.c.bf16 %v3107_v39, %v3103_v19 }
 0x2bd   : > { %v4704_v0 = vadd.f32 %v2454_v42, %v6105_v35  ;;  %v4768_v1 = vadd.f32 %v2840_v60, %v6109_v25  ;;  %v2456_v53 = vpop.f32.mrb[98].mxu0  ;;  %v2842_v54 = vpop.f32.mrb[98].mxu1  ;;  %v3202_v17 = vpack.c.bf16 %v3106_v21, %v3102_v13  ;;  %v3204_v49 = vpack.c.bf16 %v3108_v16, %v3104_v27 }
 0x2be   : > { %v2981_v45 = vmul.f32 0.01, %v4703_v62  ;;  %v2983_v38 = vmul.f32 0.01, %v4767_v31  ;;  %v4705_v29 = vadd.f32 %v2456_v53, %v6097_v46  ;;  %v4769_v51 = vadd.f32 %v2842_v54, %v6101_v28  ;;  %v2458_v63 = vpop.f32.mrb[99].mxu0  ;;  %v2844_v24 = vpop.f32.mrb[99].mxu1 }
 0x2bf   : > { %v2982_v44 = vmul.f32 0.01, %v4704_v0  ;;  %v2984_v40 = vmul.f32 0.01, %v4768_v1  ;;  %v4706_v50 = vadd.f32 %v2458_v63, %v6105_v35  ;;  %v4770_v33 = vadd.f32 %v2844_v24, %v6109_v25  ;;  %3588 = vmatprep.mubr.bf16.mxu0 %v3202_v17  ;;  %3749 = vmatprep.mubr.bf16.mxu1 %v3204_v49 }
 0x2c0   : > { %v2985_v6 = vmul.f32 0.01, %v4705_v29  ;;  %v2987_v55 = vmul.f32 0.01, %v4769_v51  ;;  %3589 = vmatmul.mubr.bf16.gmra.mrb[156].mxu0 %v3201_v57  ;;  %3750 = vmatmul.mubr.bf16.gmra.mrb[156].mxu1 %v3203_v30  ;;  %v3109_v59 = vmax.f32 %v4703_v62, %v2981_v45  ;;  %v3111_v3 = vmax.f32 %v4767_v31, %v2983_v38 }
 0x2c1   : > { %v2986_v52 = vmul.f32 0.01, %v4706_v50  ;;  %v2988_v47 = vmul.f32 0.01, %v4770_v33  ;;  %v3110_v32 = vmax.f32 %v4704_v0, %v2982_v44  ;;  %v3112_v23 = vmax.f32 %v4768_v1, %v2984_v40 }
 0x2c2   : > { %v3113_v5 = vmax.f32 %v4705_v29, %v2985_v6  ;;  %v3115_v41 = vmax.f32 %v4769_v51, %v2987_v55 }
 0x2c3   : > { %v3114_v14 = vmax.f32 %v4706_v50, %v2986_v52  ;;  %v3116_v56 = vmax.f32 %v4770_v33, %v2988_v47  ;;  %v2462_v9 = vpop.f32.mrb[100].mxu0  ;;  %v2848_v36 = vpop.f32.mrb[100].mxu1 }
 0x2c4   : > { %v4707_v18 = vadd.f32 %v2462_v9, %v6097_v46  ;;  %v4771_v2 = vadd.f32 %v2848_v36, %v6101_v28  ;;  %v2464_v58 = vpop.f32.mrb[101].mxu0  ;;  %v2850_v34 = vpop.f32.mrb[101].mxu1  ;;  %v3205_v20 = vpack.c.bf16 %v3113_v5, %v3109_v59  ;;  %v3207_v48 = vpack.c.bf16 %v3115_v41, %v3111_v3 }
 0x2c5   : > { %v4708_v61 = vadd.f32 %v2464_v58, %v6105_v35  ;;  %v4772_v43 = vadd.f32 %v2850_v34, %v6109_v25  ;;  %v2466_v4 = vpop.f32.mrb[102].mxu0  ;;  %v2852_v8 = vpop.f32.mrb[102].mxu1  ;;  %v3206_v11 = vpack.c.bf16 %v3114_v14, %v3110_v32  ;;  %v3208_v7 = vpack.c.bf16 %v3116_v56, %v3112_v23 }
 0x2c6   : > { %v2989_v12 = vmul.f32 0.01, %v4707_v18  ;;  %v2991_v15 = vmul.f32 0.01, %v4771_v2  ;;  %v4709_v19 = vadd.f32 %v2466_v4, %v6097_v46  ;;  %v4773_v10 = vadd.f32 %v2852_v8, %v6101_v28  ;;  %v2468_v39 = vpop.f32.mrb[103].mxu0  ;;  %v2854_v13 = vpop.f32.mrb[103].mxu1 }
 0x2c7   : > { %v2990_v27 = vmul.f32 0.01, %v4708_v61  ;;  %v2992_v21 = vmul.f32 0.01, %v4772_v43  ;;  %v4710_v16 = vadd.f32 %v2468_v39, %v6105_v35  ;;  %v4774_v26 = vadd.f32 %v2854_v13, %v6109_v25  ;;  %3596 = vmatprep.mubr.bf16.mxu0 %v3206_v11  ;;  %3757 = vmatprep.mubr.bf16.mxu1 %v3208_v7 }
 0x2c8   : > { %v2993_v22 = vmul.f32 0.01, %v4709_v19  ;;  %v2995_v62 = vmul.f32 0.01, %v4773_v10  ;;  %3597 = vmatmul.mubr.bf16.gmra.mrb[160].mxu0 %v3205_v20  ;;  %3758 = vmatmul.mubr.bf16.gmra.mrb[160].mxu1 %v3207_v48  ;;  %v3117_v60 = vmax.f32 %v4707_v18, %v2989_v12  ;;  %v3119_v57 = vmax.f32 %v4771_v2, %v2991_v15 }
 0x2c9   : > { %v2994_v31 = vmul.f32 0.01, %v4710_v16  ;;  %v2996_v42 = vmul.f32 0.01, %v4774_v26  ;;  %v3118_v1 = vmax.f32 %v4708_v61, %v2990_v27  ;;  %v3120_v53 = vmax.f32 %v4772_v43, %v2992_v21 }
 0x2ca   : > { %v3121_v30 = vmax.f32 %v4709_v19, %v2993_v22  ;;  %v3123_v0 = vmax.f32 %v4773_v10, %v2995_v62 }
 0x2cb   : > { %v3122_v54 = vmax.f32 %v4710_v16, %v2994_v31  ;;  %v3124_v17 = vmax.f32 %v4774_v26, %v2996_v42  ;;  %v2472_v49 = vpop.f32.mrb[104].mxu0  ;;  %v2858_v45 = vpop.f32.mrb[104].mxu1 }
 0x2cc   : > { %v4711_v38 = vadd.f32 %v2472_v49, %v6097_v46  ;;  %v4775_v29 = vadd.f32 %v2858_v45, %v6101_v28  ;;  %v2474_v51 = vpop.f32.mrb[105].mxu0  ;;  %v2860_v63 = vpop.f32.mrb[105].mxu1  ;;  %v3209_v24 = vpack.c.bf16 %v3121_v30, %v3117_v60  ;;  %v3211_v44 = vpack.c.bf16 %v3123_v0, %v3119_v57 }
 0x2cd   : > { %v4712_v40 = vadd.f32 %v2474_v51, %v6105_v35  ;;  %v4776_v50 = vadd.f32 %v2860_v63, %v6109_v25  ;;  %v2476_v33 = vpop.f32.mrb[106].mxu0  ;;  %v2862_v6 = vpop.f32.mrb[106].mxu1  ;;  %v3210_v55 = vpack.c.bf16 %v3122_v54, %v3118_v1  ;;  %v3212_v52 = vpack.c.bf16 %v3124_v17, %v3120_v53 }
 0x2ce   : > { %v2997_v47 = vmul.f32 0.01, %v4711_v38  ;;  %v2999_v59 = vmul.f32 0.01, %v4775_v29  ;;  %v4713_v3 = vadd.f32 %v2476_v33, %v6097_v46  ;;  %v4777_v5 = vadd.f32 %v2862_v6, %v6101_v28  ;;  %v2478_v41 = vpop.f32.mrb[107].mxu0  ;;  %v2864_v32 = vpop.f32.mrb[107].mxu1 }
 0x2cf   : > { %v2998_v23 = vmul.f32 0.01, %v4712_v40  ;;  %v3000_v14 = vmul.f32 0.01, %v4776_v50  ;;  %v4714_v56 = vadd.f32 %v2478_v41, %v6105_v35  ;;  %v4778_v9 = vadd.f32 %v2864_v32, %v6109_v25  ;;  %3604 = vmatprep.mubr.bf16.mxu0 %v3210_v55  ;;  %3765 = vmatprep.mubr.bf16.mxu1 %v3212_v52 }
 0x2d0   : > { %v3001_v36 = vmul.f32 0.01, %v4713_v3  ;;  %v3003_v18 = vmul.f32 0.01, %v4777_v5  ;;  %3605 = vmatmul.mubr.bf16.gmra.mrb[164].mxu0 %v3209_v24  ;;  %3766 = vmatmul.mubr.bf16.gmra.mrb[164].mxu1 %v3211_v44  ;;  %v3125_v34 = vmax.f32 %v4711_v38, %v2997_v47  ;;  %v3127_v20 = vmax.f32 %v4775_v29, %v2999_v59 }
 0x2d1   : > { %v3002_v2 = vmul.f32 0.01, %v4714_v56  ;;  %v3004_v58 = vmul.f32 0.01, %v4778_v9  ;;  %v3126_v43 = vmax.f32 %v4712_v40, %v2998_v23  ;;  %v3128_v4 = vmax.f32 %v4776_v50, %v3000_v14 }
 0x2d2   : > { %v3129_v48 = vmax.f32 %v4713_v3, %v3001_v36  ;;  %v3131_v61 = vmax.f32 %v4777_v5, %v3003_v18 }
 0x2d3   : > { %v3130_v8 = vmax.f32 %v4714_v56, %v3002_v2  ;;  %v3132_v11 = vmax.f32 %v4778_v9, %v3004_v58  ;;  %v2482_v7 = vpop.f32.mrb[108].mxu0  ;;  %v2868_v12 = vpop.f32.mrb[108].mxu1 }
 0x2d4   : > { %v4715_v15 = vadd.f32 %v2482_v7, %v6097_v46  ;;  %v4779_v19 = vadd.f32 %v2868_v12, %v6101_v28  ;;  %v2484_v10 = vpop.f32.mrb[109].mxu0  ;;  %v2870_v39 = vpop.f32.mrb[109].mxu1  ;;  %v3213_v13 = vpack.c.bf16 %v3129_v48, %v3125_v34  ;;  %v3215_v27 = vpack.c.bf16 %v3131_v61, %v3127_v20 }
 0x2d5   : > { %v4716_v21 = vadd.f32 %v2484_v10, %v6105_v35  ;;  %v4780_v16 = vadd.f32 %v2870_v39, %v6109_v25  ;;  %v2486_v26 = vpop.f32.mrb[110].mxu0  ;;  %v2872_v22 = vpop.f32.mrb[110].mxu1  ;;  %v3214_v62 = vpack.c.bf16 %v3130_v8, %v3126_v43  ;;  %v3216_v31 = vpack.c.bf16 %v3132_v11, %v3128_v4 }
 0x2d6   : > { %v3005_v42 = vmul.f32 0.01, %v4715_v15  ;;  %v3007_v60 = vmul.f32 0.01, %v4779_v19  ;;  %v4717_v57 = vadd.f32 %v2486_v26, %v6097_v46  ;;  %v4781_v30 = vadd.f32 %v2872_v22, %v6101_v28  ;;  %v2488_v0 = vpop.f32.mrb[111].mxu0  ;;  %v2874_v1 = vpop.f32.mrb[111].mxu1 }
 0x2d7   : > { %v3006_v53 = vmul.f32 0.01, %v4716_v21  ;;  %v3008_v54 = vmul.f32 0.01, %v4780_v16  ;;  %v4718_v17 = vadd.f32 %v2488_v0, %v6105_v35  ;;  %v4782_v49 = vadd.f32 %v2874_v1, %v6109_v25  ;;  %3612 = vmatprep.mubr.bf16.mxu0 %v3214_v62  ;;  %3773 = vmatprep.mubr.bf16.mxu1 %v3216_v31 }
 0x2d8   : > { %v3009_v45 = vmul.f32 0.01, %v4717_v57  ;;  %v3011_v38 = vmul.f32 0.01, %v4781_v30  ;;  %3613 = vmatmul.mubr.bf16.gmra.mrb[168].mxu0 %v3213_v13  ;;  %3774 = vmatmul.mubr.bf16.gmra.mrb[168].mxu1 %v3215_v27  ;;  %v3133_v63 = vmax.f32 %v4715_v15, %v3005_v42  ;;  %v3135_v24 = vmax.f32 %v4779_v19, %v3007_v60 }
 0x2d9   : > { %v3010_v29 = vmul.f32 0.01, %v4718_v17  ;;  %v3012_v51 = vmul.f32 0.01, %v4782_v49  ;;  %v3134_v50 = vmax.f32 %v4716_v21, %v3006_v53  ;;  %v3136_v33 = vmax.f32 %v4780_v16, %v3008_v54 }
 0x2da   : > { %v3137_v44 = vmax.f32 %v4717_v57, %v3009_v45  ;;  %v3139_v40 = vmax.f32 %v4781_v30, %v3011_v38 }
 0x2db   : > { %v3138_v6 = vmax.f32 %v4718_v17, %v3010_v29  ;;  %v3140_v55 = vmax.f32 %v4782_v49, %v3012_v51  ;;  %v2492_v52 = vpop.f32.mrb[112].mxu0  ;;  %v2878_v47 = vpop.f32.mrb[112].mxu1 }
 0x2dc   : > { %v4719_v59 = vadd.f32 %v2492_v52, %v6097_v46  ;;  %v4783_v3 = vadd.f32 %v2878_v47, %v6101_v28  ;;  %v2494_v5 = vpop.f32.mrb[113].mxu0  ;;  %v2880_v41 = vpop.f32.mrb[113].mxu1  ;;  %v3217_v32 = vpack.c.bf16 %v3137_v44, %v3133_v63  ;;  %v3219_v23 = vpack.c.bf16 %v3139_v40, %v3135_v24 }
 0x2dd   : > { %v4720_v14 = vadd.f32 %v2494_v5, %v6105_v35  ;;  %v4784_v56 = vadd.f32 %v2880_v41, %v6109_v25  ;;  %v2496_v9 = vpop.f32.mrb[114].mxu0  ;;  %v2882_v36 = vpop.f32.mrb[114].mxu1  ;;  %v3218_v18 = vpack.c.bf16 %v3138_v6, %v3134_v50  ;;  %v3220_v2 = vpack.c.bf16 %v3140_v55, %v3136_v33 }
 0x2de   : > { %v3013_v58 = vmul.f32 0.01, %v4719_v59  ;;  %v3015_v34 = vmul.f32 0.01, %v4783_v3  ;;  %v4721_v20 = vadd.f32 %v2496_v9, %v6097_v46  ;;  %v4785_v48 = vadd.f32 %v2882_v36, %v6101_v28  ;;  %v2498_v61 = vpop.f32.mrb[115].mxu0  ;;  %v2884_v43 = vpop.f32.mrb[115].mxu1 }
 0x2df   : > { %v3014_v4 = vmul.f32 0.01, %v4720_v14  ;;  %v3016_v8 = vmul.f32 0.01, %v4784_v56  ;;  %v4722_v11 = vadd.f32 %v2498_v61, %v6105_v35  ;;  %v4786_v7 = vadd.f32 %v2884_v43, %v6109_v25  ;;  %3620 = vmatprep.mubr.bf16.mxu0 %v3218_v18  ;;  %3781 = vmatprep.mubr.bf16.mxu1 %v3220_v2 }
 0x2e0   : > { %v3017_v12 = vmul.f32 0.01, %v4721_v20  ;;  %v3019_v15 = vmul.f32 0.01, %v4785_v48  ;;  %3621 = vmatmul.mubr.bf16.gmra.mrb[172].mxu0 %v3217_v32  ;;  %3782 = vmatmul.mubr.bf16.gmra.mrb[172].mxu1 %v3219_v23  ;;  %v3141_v39 = vmax.f32 %v4719_v59, %v3013_v58  ;;  %v3143_v13 = vmax.f32 %v4783_v3, %v3015_v34 }
 0x2e1   : > { %v3018_v19 = vmul.f32 0.01, %v4722_v11  ;;  %v3020_v10 = vmul.f32 0.01, %v4786_v7  ;;  %v3142_v16 = vmax.f32 %v4720_v14, %v3014_v4  ;;  %v3144_v26 = vmax.f32 %v4784_v56, %v3016_v8 }
 0x2e2   : > { %v3145_v27 = vmax.f32 %v4721_v20, %v3017_v12  ;;  %v3147_v21 = vmax.f32 %v4785_v48, %v3019_v15 }
 0x2e3   : > { %v3146_v22 = vmax.f32 %v4722_v11, %v3018_v19  ;;  %v3148_v62 = vmax.f32 %v4786_v7, %v3020_v10  ;;  %v2502_v31 = vpop.f32.mrb[116].mxu0  ;;  %v2888_v42 = vpop.f32.mrb[116].mxu1 }
 0x2e4   : > { %v4723_v60 = vadd.f32 %v2502_v31, %v6097_v46  ;;  %v4787_v57 = vadd.f32 %v2888_v42, %v6101_v28  ;;  %v2504_v30 = vpop.f32.mrb[117].mxu0  ;;  %v2890_v0 = vpop.f32.mrb[117].mxu1  ;;  %v3221_v1 = vpack.c.bf16 %v3145_v27, %v3141_v39  ;;  %v3223_v53 = vpack.c.bf16 %v3147_v21, %v3143_v13 }
 0x2e5   : > { %v4724_v54 = vadd.f32 %v2504_v30, %v6105_v35  ;;  %v4788_v17 = vadd.f32 %v2890_v0, %v6109_v25  ;;  %v2506_v49 = vpop.f32.mrb[118].mxu0  ;;  %v2892_v45 = vpop.f32.mrb[118].mxu1  ;;  %v3222_v38 = vpack.c.bf16 %v3146_v22, %v3142_v16  ;;  %v3224_v29 = vpack.c.bf16 %v3148_v62, %v3144_v26 }
 0x2e6   : > { %v3021_v51 = vmul.f32 0.01, %v4723_v60  ;;  %v3023_v63 = vmul.f32 0.01, %v4787_v57  ;;  %v4725_v24 = vadd.f32 %v2506_v49, %v6097_v46  ;;  %v4789_v44 = vadd.f32 %v2892_v45, %v6101_v28  ;;  %v2508_v40 = vpop.f32.mrb[119].mxu0  ;;  %v2894_v50 = vpop.f32.mrb[119].mxu1 }
 0x2e7   : > { %v3022_v33 = vmul.f32 0.01, %v4724_v54  ;;  %v3024_v6 = vmul.f32 0.01, %v4788_v17  ;;  %v4726_v55 = vadd.f32 %v2508_v40, %v6105_v35  ;;  %v4790_v52 = vadd.f32 %v2894_v50, %v6109_v25  ;;  %3628 = vmatprep.mubr.bf16.mxu0 %v3222_v38  ;;  %3789 = vmatprep.mubr.bf16.mxu1 %v3224_v29 }
 0x2e8   : > { %v3025_v47 = vmul.f32 0.01, %v4725_v24  ;;  %v3027_v59 = vmul.f32 0.01, %v4789_v44  ;;  %3629 = vmatmul.mubr.bf16.gmra.mrb[176].mxu0 %v3221_v1  ;;  %3790 = vmatmul.mubr.bf16.gmra.mrb[176].mxu1 %v3223_v53  ;;  %v3149_v41 = vmax.f32 %v4723_v60, %v3021_v51  ;;  %v3151_v32 = vmax.f32 %v4787_v57, %v3023_v63 }
 0x2e9   : > { %v3026_v3 = vmul.f32 0.01, %v4726_v55  ;;  %v3028_v5 = vmul.f32 0.01, %v4790_v52  ;;  %v3150_v56 = vmax.f32 %v4724_v54, %v3022_v33  ;;  %v3152_v9 = vmax.f32 %v4788_v17, %v3024_v6 }
 0x2ea   : > { %v3153_v23 = vmax.f32 %v4725_v24, %v3025_v47  ;;  %v3155_v14 = vmax.f32 %v4789_v44, %v3027_v59 }
 0x2eb   : > { %v3154_v36 = vmax.f32 %v4726_v55, %v3026_v3  ;;  %v3156_v18 = vmax.f32 %v4790_v52, %v3028_v5  ;;  %v2512_v2 = vpop.f32.mrb[120].mxu0  ;;  %v2898_v58 = vpop.f32.mrb[120].mxu1 }
 0x2ec   : > { %v4727_v34 = vadd.f32 %v2512_v2, %v6097_v46  ;;  %v4791_v20 = vadd.f32 %v2898_v58, %v6101_v28  ;;  %v2514_v48 = vpop.f32.mrb[121].mxu0  ;;  %v2900_v61 = vpop.f32.mrb[121].mxu1  ;;  %v3225_v43 = vpack.c.bf16 %v3153_v23, %v3149_v41  ;;  %v3227_v4 = vpack.c.bf16 %v3155_v14, %v3151_v32 }
 0x2ed   : > { %v4728_v8 = vadd.f32 %v2514_v48, %v6105_v35  ;;  %v4792_v11 = vadd.f32 %v2900_v61, %v6109_v25  ;;  %v2516_v7 = vpop.f32.mrb[122].mxu0  ;;  %v2902_v12 = vpop.f32.mrb[122].mxu1  ;;  %v3226_v15 = vpack.c.bf16 %v3154_v36, %v3150_v56  ;;  %v3228_v19 = vpack.c.bf16 %v3156_v18, %v3152_v9 }
 0x2ee   : > { %v3029_v10 = vmul.f32 0.01, %v4727_v34  ;;  %v3031_v39 = vmul.f32 0.01, %v4791_v20  ;;  %v4729_v13 = vadd.f32 %v2516_v7, %v6097_v46  ;;  %v4793_v27 = vadd.f32 %v2902_v12, %v6101_v28  ;;  %v2518_v21 = vpop.f32.mrb[123].mxu0  ;;  %v2904_v16 = vpop.f32.mrb[123].mxu1 }
 0x2ef   : > { %v3030_v26 = vmul.f32 0.01, %v4728_v8  ;;  %v3032_v22 = vmul.f32 0.01, %v4792_v11  ;;  %v4730_v62 = vadd.f32 %v2518_v21, %v6105_v35  ;;  %v4794_v31 = vadd.f32 %v2904_v16, %v6109_v25  ;;  %3636 = vmatprep.mubr.bf16.mxu0 %v3226_v15  ;;  %3797 = vmatprep.mubr.bf16.mxu1 %v3228_v19 }
 0x2f0   : > { %v3033_v42 = vmul.f32 0.01, %v4729_v13  ;;  %v3035_v60 = vmul.f32 0.01, %v4793_v27  ;;  %3637 = vmatmul.mubr.bf16.gmra.mrb[180].mxu0 %v3225_v43  ;;  %3798 = vmatmul.mubr.bf16.gmra.mrb[180].mxu1 %v3227_v4  ;;  %v3157_v0 = vmax.f32 %v4727_v34, %v3029_v10  ;;  %v3159_v1 = vmax.f32 %v4791_v20, %v3031_v39  ;;  %v6242_v39 = vld [vmem:[%s6402_s6] ss:$0 sm:$0xff] }
 0x2f1   : > { %v3034_v57 = vmul.f32 0.01, %v4730_v62  ;;  %v3036_v30 = vmul.f32 0.01, %v4794_v31  ;;  %v3158_v17 = vmax.f32 %v4728_v8, %v3030_v26  ;;  %v3160_v49 = vmax.f32 %v4792_v11, %v3032_v22 }
 0x2f2   : > { %v3161_v53 = vmax.f32 %v4729_v13, %v3033_v42  ;;  %v3163_v54 = vmax.f32 %v4793_v27, %v3035_v60 }
 0x2f3   : > { %v3162_v45 = vmax.f32 %v4730_v62, %v3034_v57  ;;  %v3164_v38 = vmax.f32 %v4794_v31, %v3036_v30  ;;  %v2522_v29 = vpop.f32.mrb[124].mxu0  ;;  %v2908_v51 = vpop.f32.mrb[124].mxu1 }
 0x2f4   : > { %v4731_v63 = vadd.f32 %v2522_v29, %v6097_v46  ;;  %v4795_v24 = vadd.f32 %v2908_v51, %v6101_v28  ;;  %v2524_v44 = vpop.f32.mrb[125].mxu0  ;;  %v2910_v40 = vpop.f32.mrb[125].mxu1  ;;  %v3229_v50 = vpack.c.bf16 %v3161_v53, %v3157_v0  ;;  %v3231_v33 = vpack.c.bf16 %v3163_v54, %v3159_v1 }
 0x2f5   : > { %v4732_v6 = vadd.f32 %v2524_v44, %v6105_v35  ;;  %v4796_v55 = vadd.f32 %v2910_v40, %v6109_v25  ;;  %v2526_v52 = vpop.f32.mrb[126].mxu0  ;;  %v2912_v47 = vpop.f32.mrb[126].mxu1  ;;  %v3230_v59 = vpack.c.bf16 %v3162_v45, %v3158_v17  ;;  %v3232_v3 = vpack.c.bf16 %v3164_v38, %v3160_v49  ;;  %v6249_v38 = vld [vmem:[%s6403_s7] ss:$0 sm:$0xff] }
 0x2f6   : > { %v3037_v5 = vmul.f32 0.01, %v4731_v63  ;;  %v3039_v41 = vmul.f32 0.01, %v4795_v24  ;;  %v4733_v32 = vadd.f32 %v2526_v52, %v6097_v46  ;;  %v4797_v23 = vadd.f32 %v2912_v47, %v6101_v28  ;;  %v2528_v14 = vpop.f32.mrb[127].mxu0  ;;  %v2914_v56 = vpop.f32.mrb[127].mxu1 }
 0x2f7   : > { %v3038_v9 = vmul.f32 0.01, %v4732_v6  ;;  %v3040_v36 = vmul.f32 0.01, %v4796_v55  ;;  %v4734_v18 = vadd.f32 %v2528_v14, %v6105_v35  ;;  %v4798_v2 = vadd.f32 %v2914_v56, %v6109_v25  ;;  %3644 = vmatprep.mubr.bf16.mxu0 %v3230_v59  ;;  %3805 = vmatprep.mubr.bf16.mxu1 %v3232_v3 }
 0x2f8   : > { %v3041_v58 = vmul.f32 0.01, %v4733_v32  ;;  %v3043_v34 = vmul.f32 0.01, %v4797_v23  ;;  %3645 = vmatmul.mubr.bf16.gmra.mrb[184].mxu0 %v3229_v50  ;;  %3806 = vmatmul.mubr.bf16.gmra.mrb[184].mxu1 %v3231_v33  ;;  %v3165_v61 = vmax.f32 %v4731_v63, %v3037_v5  ;;  %v3167_v46 = vmax.f32 %v4795_v24, %v3039_v41 }
 0x2f9   : > { %v3042_v20 = vmul.f32 0.01, %v4734_v18  ;;  %v3044_v48 = vmul.f32 0.01, %v4798_v2  ;;  %v3166_v4 = vmax.f32 %v4732_v6, %v3038_v9  ;;  %v3168_v8 = vmax.f32 %v4796_v55, %v3040_v36 }
 0x2fa   : > { %v3169_v43 = vmax.f32 %v4733_v32, %v3041_v58  ;;  %v3171_v28 = vmax.f32 %v4797_v23, %v3043_v34 }
 0x2fb   : > { %v3170_v11 = vmax.f32 %v4734_v18, %v3042_v20  ;;  %v3172_v7 = vmax.f32 %v4798_v2, %v3044_v48 }
 0x2fc   : > { %v3233_v12 = vpack.c.bf16 %v3169_v43, %v3165_v61  ;;  %v3235_v35 = vpack.c.bf16 %v3171_v28, %v3167_v46 }
 0x2fd   : > { %v3234_v15 = vpack.c.bf16 %v3170_v11, %v3166_v4  ;;  %v3236_v25 = vpack.c.bf16 %v3172_v7, %v3168_v8 }
 0x2ff   : > { %3652 = vmatprep.mubr.bf16.mxu0 %v3234_v15  ;;  %3813 = vmatprep.mubr.bf16.mxu1 %v3236_v25 }
 0x300   : > { %3653 = vmatmul.mubr.bf16.gmra.mrb[188].mxu0 %v3233_v12  ;;  %3814 = vmatmul.mubr.bf16.gmra.mrb[188].mxu1 %v3235_v35 }
 0x35b   : > { %v4463_v19 = vpop.f32.mrb[128].mxu0  ;;  %v4575_v10 = vpop.f32.mrb[128].mxu1 }
 0x35c   : > { %v4464_v13 = vpop.f32.mrb[129].mxu0  ;;  %v4576_v27 = vpop.f32.mrb[129].mxu1 }
 0x35d   : > { %v4465_v21 = vadd.f32 %v4464_v13, %v4463_v19  ;;  %v4577_v16 = vadd.f32 %v4576_v27, %v4575_v10  ;;  %v4466_v26 = vpop.f32.mrb[130].mxu0  ;;  %v4578_v22 = vpop.f32.mrb[130].mxu1 }
 0x35e   : > { %v4467_v62 = vpop.f32.mrb[131].mxu0  ;;  %v4579_v31 = vpop.f32.mrb[131].mxu1 }
 0x35f   : > { %v3535_v42 = vadd.f32 %v4465_v21, %v6242_v39  ;;  %v4468_v60 = vadd.f32 %v4467_v62, %v4466_v26  ;;  %v4580_v57 = vadd.f32 %v4579_v31, %v4578_v22 }
 0x361   : > { %v3696_v30 = vadd.f32 %v4577_v16, %v3535_v42  ;;  %v3538_v0 = vadd.f32 %v4468_v60, %v6242_v39 }
 0x363   : > { %v3699_v1 = vadd.f32 %v4580_v57, %v3538_v0  ;;  %v4469_v53 = vpop.f32.mrb[132].mxu0  ;;  %v4581_v54 = vpop.f32.mrb[132].mxu1  ;;  %v3822_v17 = vmul.f32 0.01, %v3696_v30 }
 0x364   : > { %v4470_v49 = vpop.f32.mrb[133].mxu0  ;;  %v4582_v45 = vpop.f32.mrb[133].mxu1 }
 0x365   : > { %v4471_v29 = vadd.f32 %v4470_v49, %v4469_v53  ;;  %v4583_v51 = vadd.f32 %v4582_v45, %v4581_v54  ;;  %v4472_v63 = vpop.f32.mrb[134].mxu0  ;;  %v4584_v24 = vpop.f32.mrb[134].mxu1  ;;  %v3854_v44 = vmax.f32 %v3696_v30, %v3822_v17  ;;  %v3823_v40 = vmul.f32 0.01, %v3699_v1 }
 0x366   : > { %v4473_v50 = vpop.f32.mrb[135].mxu0  ;;  %v4585_v33 = vpop.f32.mrb[135].mxu1 }
 0x367   : > { %v3543_v6 = vadd.f32 %v4471_v29, %v6242_v39  ;;  %v4474_v55 = vadd.f32 %v4473_v50, %v4472_v63  ;;  %v4586_v52 = vadd.f32 %v4585_v33, %v4584_v24  ;;  %v3893_v47 = vmul.f32 %v6249_v38, %v3854_v44 }
 0x368   : > { %v3855_v59 = vmax.f32 %v3699_v1, %v3823_v40 }
 0x369   : > { %v3704_v3 = vadd.f32 %v4583_v51, %v3543_v6  ;;  %v3546_v5 = vadd.f32 %v4474_v55, %v6242_v39  ;;  %3925 = vadd.xlane.f32.xlu0 %v3893_v47 }
 0x36a   : > { %v3894_v41 = vmul.f32 %v6249_v38, %v3855_v59 }
 0x36b   : > { %v3824_v32 = vmul.f32 0.01, %v3704_v3  ;;  %v3707_v23 = vadd.f32 %v4586_v52, %v3546_v5  ;;  %v4475_v14 = vpop.f32.mrb[136].mxu0  ;;  %v4587_v56 = vpop.f32.mrb[136].mxu1 }
 0x36c   : > { %3927 = vadd.xlane.f32.xlu1 %v3894_v41  ;;  %v4476_v9 = vpop.f32.mrb[137].mxu0  ;;  %v4588_v36 = vpop.f32.mrb[137].mxu1 }
 0x36d   : > { %v3825_v18 = vmul.f32 0.01, %v3707_v23  ;;  %v4477_v2 = vadd.f32 %v4476_v9, %v4475_v14  ;;  %v4589_v58 = vadd.f32 %v4588_v36, %v4587_v56  ;;  %v4478_v34 = vpop.f32.mrb[138].mxu0  ;;  %v4590_v20 = vpop.f32.mrb[138].mxu1  ;;  %v3856_v48 = vmax.f32 %v3704_v3, %v3824_v32 }
 0x36e   : > { %v4479_v61 = vpop.f32.mrb[139].mxu0  ;;  %v4591_v46 = vpop.f32.mrb[139].mxu1 }
 0x36f   : > { %v3551_v43 = vadd.f32 %v4477_v2, %v6242_v39  ;;  %v4480_v28 = vadd.f32 %v4479_v61, %v4478_v34  ;;  %v4592_v4 = vadd.f32 %v4591_v46, %v4590_v20  ;;  %v3895_v8 = vmul.f32 %v6249_v38, %v3856_v48 }
 0x370   : > { %v3857_v11 = vmax.f32 %v3707_v23, %v3825_v18 }
 0x371   : > { %v3712_v7 = vadd.f32 %v4589_v58, %v3551_v43  ;;  %v3554_v12 = vadd.f32 %v4480_v28, %v6242_v39  ;;  %3929 = vadd.xlane.f32.xlu0 %v3895_v8 }
 0x372   : > { %v3896_v10 = vmul.f32 %v6249_v38, %v3857_v11 }
 0x373   : > { %v3826_v35 = vmul.f32 0.01, %v3712_v7  ;;  %v3715_v15 = vadd.f32 %v4592_v4, %v3554_v12  ;;  %v4481_v25 = vpop.f32.mrb[140].mxu0  ;;  %v4593_v19 = vpop.f32.mrb[140].mxu1 }
 0x374   : > { %v4482_v13 = vpop.f32.mrb[141].mxu0  ;;  %v4594_v27 = vpop.f32.mrb[141].mxu1 }
 0x375   : > { %v3827_v21 = vmul.f32 0.01, %v3715_v15  ;;  %v4483_v16 = vadd.f32 %v4482_v13, %v4481_v25  ;;  %v4595_v26 = vadd.f32 %v4594_v27, %v4593_v19  ;;  %v4484_v22 = vpop.f32.mrb[142].mxu0  ;;  %v4596_v62 = vpop.f32.mrb[142].mxu1  ;;  %3931 = vadd.xlane.f32.xlu0 %v3896_v10  ;;  %v3858_v31 = vmax.f32 %v3712_v7, %v3826_v35 }
 0x376   : > { %v4485_v42 = vpop.f32.mrb[143].mxu0  ;;  %v4597_v60 = vpop.f32.mrb[143].mxu1 }
 0x377   : > { %v3559_v57 = vadd.f32 %v4483_v16, %v6242_v39  ;;  %v4486_v30 = vadd.f32 %v4485_v42, %v4484_v22  ;;  %v4598_v0 = vadd.f32 %v4597_v60, %v4596_v62  ;;  %v3897_v1 = vmul.f32 %v6249_v38, %v3858_v31 }
 0x378   : > { %v3859_v53 = vmax.f32 %v3715_v15, %v3827_v21 }
 0x379   : > { %v3720_v54 = vadd.f32 %v4595_v26, %v3559_v57  ;;  %v3562_v17 = vadd.f32 %v4486_v30, %v6242_v39  ;;  %3933 = vadd.xlane.f32.xlu0 %v3897_v1 }
 0x37a   : > { %v3898_v63 = vmul.f32 %v6249_v38, %v3859_v53 }
 0x37b   : > { %v3828_v49 = vmul.f32 0.01, %v3720_v54  ;;  %v3723_v45 = vadd.f32 %v4598_v0, %v3562_v17  ;;  %v4487_v29 = vpop.f32.mrb[144].mxu0  ;;  %v4599_v51 = vpop.f32.mrb[144].mxu1 }
 0x37c   : > { %v4488_v24 = vpop.f32.mrb[145].mxu0  ;;  %v4600_v44 = vpop.f32.mrb[145].mxu1 }
 0x37d   : > { %v3829_v40 = vmul.f32 0.01, %v3723_v45  ;;  %v4489_v50 = vadd.f32 %v4488_v24, %v4487_v29  ;;  %v4601_v33 = vadd.f32 %v4600_v44, %v4599_v51  ;;  %v4490_v6 = vpop.f32.mrb[146].mxu0  ;;  %v4602_v55 = vpop.f32.mrb[146].mxu1  ;;  %3935 = vadd.xlane.f32.xlu0 %v3898_v63  ;;  %v3860_v52 = vmax.f32 %v3720_v54, %v3828_v49 }
 0x37e   : > { %v4491_v47 = vpop.f32.mrb[147].mxu0  ;;  %v4603_v59 = vpop.f32.mrb[147].mxu1 }
 0x37f   : > { %v3567_v3 = vadd.f32 %v4489_v50, %v6242_v39  ;;  %v4492_v5 = vadd.f32 %v4491_v47, %v4490_v6  ;;  %v4604_v41 = vadd.f32 %v4603_v59, %v4602_v55  ;;  %v3899_v32 = vmul.f32 %v6249_v38, %v3860_v52 }
 0x380   : > { %v3861_v23 = vmax.f32 %v3723_v45, %v3829_v40 }
 0x381   : > { %v3728_v14 = vadd.f32 %v4601_v33, %v3567_v3  ;;  %v3570_v56 = vadd.f32 %v4492_v5, %v6242_v39  ;;  %3937 = vadd.xlane.f32.xlu0 %v3899_v32 }
 0x382   : > { %v3900_v58 = vmul.f32 %v6249_v38, %v3861_v23 }
 0x383   : > { %v3830_v9 = vmul.f32 0.01, %v3728_v14  ;;  %v3731_v36 = vadd.f32 %v4604_v41, %v3570_v56  ;;  %v4493_v18 = vpop.f32.mrb[148].mxu0  ;;  %v4605_v2 = vpop.f32.mrb[148].mxu1 }
 0x384   : > { %v4494_v34 = vpop.f32.mrb[149].mxu0  ;;  %v4606_v20 = vpop.f32.mrb[149].mxu1 }
 0x385   : > { %v3831_v48 = vmul.f32 0.01, %v3731_v36  ;;  %v4495_v61 = vadd.f32 %v4494_v34, %v4493_v18  ;;  %v4607_v46 = vadd.f32 %v4606_v20, %v4605_v2  ;;  %v4496_v43 = vpop.f32.mrb[150].mxu0  ;;  %v4608_v28 = vpop.f32.mrb[150].mxu1  ;;  %3939 = vadd.xlane.f32.xlu0 %v3900_v58  ;;  %v3862_v4 = vmax.f32 %v3728_v14, %v3830_v9 }
 0x386   : > { %v4497_v8 = vpop.f32.mrb[151].mxu0  ;;  %v4609_v11 = vpop.f32.mrb[151].mxu1 }
 0x387   : > { %v3575_v7 = vadd.f32 %v4495_v61, %v6242_v39  ;;  %v4498_v12 = vadd.f32 %v4497_v8, %v4496_v43  ;;  %v4610_v35 = vadd.f32 %v4609_v11, %v4608_v28  ;;  %v3901_v15 = vmul.f32 %v6249_v38, %v3862_v4 }
 0x388   : > { %v3863_v25 = vmax.f32 %v3731_v36, %v3831_v48 }
 0x389   : > { %v3736_v19 = vadd.f32 %v4607_v46, %v3575_v7  ;;  %v3578_v10 = vadd.f32 %v4498_v12, %v6242_v39  ;;  %3941 = vadd.xlane.f32.xlu0 %v3901_v15 }
 0x38a   : > { %v3902_v26 = vmul.f32 %v6249_v38, %v3863_v25 }
 0x38b   : > { %v3832_v13 = vmul.f32 0.01, %v3736_v19  ;;  %v3739_v27 = vadd.f32 %v4610_v35, %v3578_v10  ;;  %v4499_v21 = vpop.f32.mrb[152].mxu0  ;;  %v4611_v16 = vpop.f32.mrb[152].mxu1 }
 0x38c   : > { %v4500_v22 = vpop.f32.mrb[153].mxu0  ;;  %v4612_v62 = vpop.f32.mrb[153].mxu1 }
 0x38d   : > { %v3833_v31 = vmul.f32 0.01, %v3739_v27  ;;  %v4501_v42 = vadd.f32 %v4500_v22, %v4499_v21  ;;  %v4613_v60 = vadd.f32 %v4612_v62, %v4611_v16  ;;  %v4502_v57 = vpop.f32.mrb[154].mxu0  ;;  %v4614_v30 = vpop.f32.mrb[154].mxu1  ;;  %3943 = vadd.xlane.f32.xlu0 %v3902_v26  ;;  %v3864_v0 = vmax.f32 %v3736_v19, %v3832_v13 }
 0x38e   : > { %v4503_v1 = vpop.f32.mrb[155].mxu0  ;;  %v4615_v53 = vpop.f32.mrb[155].mxu1 }
 0x38f   : > { %v3583_v54 = vadd.f32 %v4501_v42, %v6242_v39  ;;  %v4504_v17 = vadd.f32 %v4503_v1, %v4502_v57  ;;  %v4616_v49 = vadd.f32 %v4615_v53, %v4614_v30  ;;  %v3903_v45 = vmul.f32 %v6249_v38, %v3864_v0 }
 0x390   : > { %v3865_v29 = vmax.f32 %v3739_v27, %v3833_v31 }
 0x391   : > { %v3744_v51 = vadd.f32 %v4613_v60, %v3583_v54  ;;  %v3586_v63 = vadd.f32 %v4504_v17, %v6242_v39  ;;  %3945 = vadd.xlane.f32.xlu0 %v3903_v45 }
 0x392   : > { %v3904_v33 = vmul.f32 %v6249_v38, %v3865_v29 }
 0x393   : > { %v3834_v24 = vmul.f32 0.01, %v3744_v51  ;;  %v3747_v44 = vadd.f32 %v4616_v49, %v3586_v63  ;;  %v4505_v40 = vpop.f32.mrb[156].mxu0  ;;  %v4617_v50 = vpop.f32.mrb[156].mxu1 }
 0x394   : > { %v4506_v6 = vpop.f32.mrb[157].mxu0  ;;  %v4618_v55 = vpop.f32.mrb[157].mxu1 }
 0x395   : > { %v3835_v52 = vmul.f32 0.01, %v3747_v44  ;;  %v4507_v47 = vadd.f32 %v4506_v6, %v4505_v40  ;;  %v4619_v59 = vadd.f32 %v4618_v55, %v4617_v50  ;;  %v4508_v3 = vpop.f32.mrb[158].mxu0  ;;  %v4620_v5 = vpop.f32.mrb[158].mxu1  ;;  %3947 = vadd.xlane.f32.xlu0 %v3904_v33  ;;  %v3866_v41 = vmax.f32 %v3744_v51, %v3834_v24 }
 0x396   : > { %v4509_v32 = vpop.f32.mrb[159].mxu0  ;;  %v4621_v23 = vpop.f32.mrb[159].mxu1 }
 0x397   : > { %v3591_v14 = vadd.f32 %v4507_v47, %v6242_v39  ;;  %v4510_v56 = vadd.f32 %v4509_v32, %v4508_v3  ;;  %v4622_v9 = vadd.f32 %v4621_v23, %v4620_v5  ;;  %v3905_v36 = vmul.f32 %v6249_v38, %v3866_v41 }
 0x398   : > { %v3867_v18 = vmax.f32 %v3747_v44, %v3835_v52 }
 0x399   : > { %v3752_v2 = vadd.f32 %v4619_v59, %v3591_v14  ;;  %v3594_v58 = vadd.f32 %v4510_v56, %v6242_v39  ;;  %3949 = vadd.xlane.f32.xlu0 %v3905_v36 }
 0x39a   : > { %v3906_v46 = vmul.f32 %v6249_v38, %v3867_v18 }
 0x39b   : > { %v3836_v34 = vmul.f32 0.01, %v3752_v2  ;;  %v3755_v20 = vadd.f32 %v4622_v9, %v3594_v58  ;;  %v4511_v48 = vpop.f32.mrb[160].mxu0  ;;  %v4623_v61 = vpop.f32.mrb[160].mxu1 }
 0x39c   : > { %v4512_v43 = vpop.f32.mrb[161].mxu0  ;;  %v4624_v28 = vpop.f32.mrb[161].mxu1 }
 0x39d   : > { %v3837_v4 = vmul.f32 0.01, %v3755_v20  ;;  %v4513_v8 = vadd.f32 %v4512_v43, %v4511_v48  ;;  %v4625_v11 = vadd.f32 %v4624_v28, %v4623_v61  ;;  %v4514_v7 = vpop.f32.mrb[162].mxu0  ;;  %v4626_v12 = vpop.f32.mrb[162].mxu1  ;;  %3951 = vadd.xlane.f32.xlu0 %v3906_v46  ;;  %v3868_v35 = vmax.f32 %v3752_v2, %v3836_v34 }
 0x39e   : > { %v4515_v15 = vpop.f32.mrb[163].mxu0  ;;  %v4627_v25 = vpop.f32.mrb[163].mxu1 }
 0x39f   : > { %v3599_v19 = vadd.f32 %v4513_v8, %v6242_v39  ;;  %v4516_v10 = vadd.f32 %v4515_v15, %v4514_v7  ;;  %v4628_v13 = vadd.f32 %v4627_v25, %v4626_v12  ;;  %v3907_v27 = vmul.f32 %v6249_v38, %v3868_v35 }
 0x3a0   : > { %v3869_v21 = vmax.f32 %v3755_v20, %v3837_v4 }
 0x3a1   : > { %v3760_v16 = vadd.f32 %v4625_v11, %v3599_v19  ;;  %v3602_v26 = vadd.f32 %v4516_v10, %v6242_v39  ;;  %3953 = vadd.xlane.f32.xlu0 %v3907_v27 }
 0x3a2   : > { %v3908_v60 = vmul.f32 %v6249_v38, %v3869_v21 }
 0x3a3   : > { %v3838_v22 = vmul.f32 0.01, %v3760_v16  ;;  %v3763_v62 = vadd.f32 %v4628_v13, %v3602_v26  ;;  %v4517_v31 = vpop.f32.mrb[164].mxu0  ;;  %v4629_v42 = vpop.f32.mrb[164].mxu1 }
 0x3a4   : > { %v4518_v57 = vpop.f32.mrb[165].mxu0  ;;  %v4630_v30 = vpop.f32.mrb[165].mxu1 }
 0x3a5   : > { %v3839_v0 = vmul.f32 0.01, %v3763_v62  ;;  %v4519_v1 = vadd.f32 %v4518_v57, %v4517_v31  ;;  %v4631_v53 = vadd.f32 %v4630_v30, %v4629_v42  ;;  %v4520_v54 = vpop.f32.mrb[166].mxu0  ;;  %v4632_v17 = vpop.f32.mrb[166].mxu1  ;;  %3955 = vadd.xlane.f32.xlu0 %v3908_v60  ;;  %v3870_v49 = vmax.f32 %v3760_v16, %v3838_v22 }
 0x3a6   : > { %v4521_v45 = vpop.f32.mrb[167].mxu0  ;;  %v4633_v29 = vpop.f32.mrb[167].mxu1 }
 0x3a7   : > { %v3607_v51 = vadd.f32 %v4519_v1, %v6242_v39  ;;  %v4522_v63 = vadd.f32 %v4521_v45, %v4520_v54  ;;  %v4634_v24 = vadd.f32 %v4633_v29, %v4632_v17  ;;  %v3909_v44 = vmul.f32 %v6249_v38, %v3870_v49 }
 0x3a8   : > { %v3871_v40 = vmax.f32 %v3763_v62, %v3839_v0 }
 0x3a9   : > { %v3768_v50 = vadd.f32 %v4631_v53, %v3607_v51  ;;  %v3610_v33 = vadd.f32 %v4522_v63, %v6242_v39  ;;  %3957 = vadd.xlane.f32.xlu0 %v3909_v44 }
 0x3aa   : > { %v3910_v6 = vmul.f32 %v6249_v38, %v3871_v40 }
 0x3ab   : > { %v3840_v55 = vmul.f32 0.01, %v3768_v50  ;;  %v3771_v52 = vadd.f32 %v4634_v24, %v3610_v33  ;;  %v4523_v47 = vpop.f32.mrb[168].mxu0  ;;  %v4635_v59 = vpop.f32.mrb[168].mxu1 }
 0x3ac   : > { %3959 = vadd.xlane.f32.xlu1 %v3910_v6  ;;  %v4524_v3 = vpop.f32.mrb[169].mxu0  ;;  %v4636_v5 = vpop.f32.mrb[169].mxu1 }
 0x3ad   : > { %v3841_v41 = vmul.f32 0.01, %v3771_v52  ;;  %v4525_v32 = vadd.f32 %v4524_v3, %v4523_v47  ;;  %v4637_v23 = vadd.f32 %v4636_v5, %v4635_v59  ;;  %v4526_v14 = vpop.f32.mrb[170].mxu0  ;;  %v4638_v56 = vpop.f32.mrb[170].mxu1  ;;  %v3872_v9 = vmax.f32 %v3768_v50, %v3840_v55 }
 0x3ae   : > { %v4527_v36 = vpop.f32.mrb[171].mxu0  ;;  %v4639_v18 = vpop.f32.mrb[171].mxu1 }
 0x3af   : > { %v3615_v2 = vadd.f32 %v4525_v32, %v6242_v39  ;;  %v4528_v58 = vadd.f32 %v4527_v36, %v4526_v14  ;;  %v4640_v34 = vadd.f32 %v4639_v18, %v4638_v56  ;;  %v3911_v20 = vmul.f32 %v6249_v38, %v3872_v9 }
 0x3b0   : > { %v3873_v48 = vmax.f32 %v3771_v52, %v3841_v41 }
 0x3b1   : > { %v3776_v61 = vadd.f32 %v4637_v23, %v3615_v2  ;;  %v3618_v46 = vadd.f32 %v4528_v58, %v6242_v39  ;;  %3961 = vadd.xlane.f32.xlu1 %v3911_v20 }
 0x3b2   : > { %v3912_v11 = vmul.f32 %v6249_v38, %v3873_v48 }
 0x3b3   : > { %v3842_v43 = vmul.f32 0.01, %v3776_v61  ;;  %v3779_v28 = vadd.f32 %v4640_v34, %v3618_v46  ;;  %v4529_v4 = vpop.f32.mrb[172].mxu0  ;;  %v4641_v8 = vpop.f32.mrb[172].mxu1 }
 0x3b4   : > { %v4530_v7 = vpop.f32.mrb[173].mxu0  ;;  %v4642_v12 = vpop.f32.mrb[173].mxu1 }
 0x3b5   : > { %v3843_v35 = vmul.f32 0.01, %v3779_v28  ;;  %v4531_v15 = vadd.f32 %v4530_v7, %v4529_v4  ;;  %v4643_v25 = vadd.f32 %v4642_v12, %v4641_v8  ;;  %v4532_v19 = vpop.f32.mrb[174].mxu0  ;;  %v4644_v10 = vpop.f32.mrb[174].mxu1  ;;  %3963 = vadd.xlane.f32.xlu1 %v3912_v11  ;;  %v3874_v13 = vmax.f32 %v3776_v61, %v3842_v43 }
 0x3b6   : > { %v4533_v27 = vpop.f32.mrb[175].mxu0  ;;  %v4645_v21 = vpop.f32.mrb[175].mxu1 }
 0x3b7   : > { %v3623_v16 = vadd.f32 %v4531_v15, %v6242_v39  ;;  %v4534_v26 = vadd.f32 %v4533_v27, %v4532_v19  ;;  %v4646_v22 = vadd.f32 %v4645_v21, %v4644_v10  ;;  %v3913_v62 = vmul.f32 %v6249_v38, %v3874_v13 }
 0x3b8   : > { %v3875_v31 = vmax.f32 %v3779_v28, %v3843_v35 }
 0x3b9   : > { %v3784_v42 = vadd.f32 %v4643_v25, %v3623_v16  ;;  %v3626_v60 = vadd.f32 %v4534_v26, %v6242_v39  ;;  %3965 = vadd.xlane.f32.xlu1 %v3913_v62 }
 0x3ba   : > { %v3914_v53 = vmul.f32 %v6249_v38, %v3875_v31 }
 0x3bb   : > { %v3844_v57 = vmul.f32 0.01, %v3784_v42  ;;  %v3787_v30 = vadd.f32 %v4646_v22, %v3626_v60  ;;  %v4535_v0 = vpop.f32.mrb[176].mxu0  ;;  %v4647_v1 = vpop.f32.mrb[176].mxu1 }
 0x3bc   : > { %v4536_v54 = vpop.f32.mrb[177].mxu0  ;;  %v4648_v17 = vpop.f32.mrb[177].mxu1 }
 0x3bd   : > { %v3845_v49 = vmul.f32 0.01, %v3787_v30  ;;  %v4537_v45 = vadd.f32 %v4536_v54, %v4535_v0  ;;  %v4649_v29 = vadd.f32 %v4648_v17, %v4647_v1  ;;  %v4538_v51 = vpop.f32.mrb[178].mxu0  ;;  %v4650_v63 = vpop.f32.mrb[178].mxu1  ;;  %3967 = vadd.xlane.f32.xlu1 %v3914_v53  ;;  %v3876_v24 = vmax.f32 %v3784_v42, %v3844_v57 }
 0x3be   : > { %v4539_v44 = vpop.f32.mrb[179].mxu0  ;;  %v4651_v40 = vpop.f32.mrb[179].mxu1 }
 0x3bf   : > { %v3631_v50 = vadd.f32 %v4537_v45, %v6242_v39  ;;  %v4540_v33 = vadd.f32 %v4539_v44, %v4538_v51  ;;  %v4652_v6 = vadd.f32 %v4651_v40, %v4650_v63  ;;  %v3915_v55 = vmul.f32 %v6249_v38, %v3876_v24 }
 0x3c0   : > { %v3877_v52 = vmax.f32 %v3787_v30, %v3845_v49 }
 0x3c1   : > { %v3792_v47 = vadd.f32 %v4649_v29, %v3631_v50  ;;  %v3634_v59 = vadd.f32 %v4540_v33, %v6242_v39  ;;  %3969 = vadd.xlane.f32.xlu1 %v3915_v55 }
 0x3c2   : > { %v3916_v23 = vmul.f32 %v6249_v38, %v3877_v52 }
 0x3c3   : > { %v3846_v3 = vmul.f32 0.01, %v3792_v47  ;;  %v3795_v5 = vadd.f32 %v4652_v6, %v3634_v59  ;;  %v4541_v41 = vpop.f32.mrb[180].mxu0  ;;  %v4653_v32 = vpop.f32.mrb[180].mxu1 }
 0x3c4   : > { %v4542_v14 = vpop.f32.mrb[181].mxu0  ;;  %v4654_v56 = vpop.f32.mrb[181].mxu1 }
 0x3c5   : > { %v3847_v9 = vmul.f32 0.01, %v3795_v5  ;;  %v4543_v36 = vadd.f32 %v4542_v14, %v4541_v41  ;;  %v4655_v18 = vadd.f32 %v4654_v56, %v4653_v32  ;;  %v4544_v2 = vpop.f32.mrb[182].mxu0  ;;  %v4656_v58 = vpop.f32.mrb[182].mxu1  ;;  %3971 = vadd.xlane.f32.xlu1 %v3916_v23  ;;  %v3878_v34 = vmax.f32 %v3792_v47, %v3846_v3 }
 0x3c6   : > { %v4545_v20 = vpop.f32.mrb[183].mxu0  ;;  %v4657_v48 = vpop.f32.mrb[183].mxu1 }
 0x3c7   : > { %v3639_v61 = vadd.f32 %v4543_v36, %v6242_v39  ;;  %v4546_v46 = vadd.f32 %v4545_v20, %v4544_v2  ;;  %v4658_v43 = vadd.f32 %v4657_v48, %v4656_v58  ;;  %v3917_v28 = vmul.f32 %v6249_v38, %v3878_v34 }
 0x3c8   : > { %v3879_v4 = vmax.f32 %v3795_v5, %v3847_v9  ;;  %v6313_v20 = vstv %s3989_s15 }
 0x3c9   : > { %v3800_v8 = vadd.f32 %v4655_v18, %v3639_v61  ;;  %v3642_v11 = vadd.f32 %v4546_v46, %v6242_v39  ;;  %3973 = vadd.xlane.f32.xlu1 %v3917_v28 }
 0x3ca   : > { %v3918_v25 = vmul.f32 %v6249_v38, %v3879_v4 }
 0x3cb   : > { %v3848_v7 = vmul.f32 0.01, %v3800_v8  ;;  %v3803_v12 = vadd.f32 %v4658_v43, %v3642_v11  ;;  %v4547_v35 = vpop.f32.mrb[184].mxu0  ;;  %v4659_v15 = vpop.f32.mrb[184].mxu1 }
 0x3cc   : > { %v4548_v19 = vpop.f32.mrb[185].mxu0  ;;  %v4660_v10 = vpop.f32.mrb[185].mxu1 }
 0x3cd   : > { %v3849_v13 = vmul.f32 0.01, %v3803_v12  ;;  %v4549_v27 = vadd.f32 %v4548_v19, %v4547_v35  ;;  %v4661_v21 = vadd.f32 %v4660_v10, %v4659_v15  ;;  %v4550_v16 = vpop.f32.mrb[186].mxu0  ;;  %v4662_v26 = vpop.f32.mrb[186].mxu1  ;;  %3975 = vadd.xlane.f32.xlu1 %v3918_v25  ;;  %v3880_v22 = vmax.f32 %v3800_v8, %v3848_v7 }
 0x3ce   : > { %v4551_v62 = vpop.f32.mrb[187].mxu0  ;;  %v4663_v31 = vpop.f32.mrb[187].mxu1 }
 0x3cf   : > { %v3647_v42 = vadd.f32 %v4549_v27, %v6242_v39  ;;  %v4552_v60 = vadd.f32 %v4551_v62, %v4550_v16  ;;  %v4664_v57 = vadd.f32 %v4663_v31, %v4662_v26  ;;  %v3919_v30 = vmul.f32 %v6249_v38, %v3880_v22 }
 0x3d0   : > { %v3881_v0 = vmax.f32 %v3803_v12, %v3849_v13 }
 0x3d1   : > { %v3808_v1 = vadd.f32 %v4661_v21, %v3647_v42  ;;  %v3650_v53 = vadd.f32 %v4552_v60, %v6242_v39  ;;  %3977 = vadd.xlane.f32.xlu1 %v3919_v30 }
 0x3d2   : > { %v3920_v29 = vmul.f32 %v6249_v38, %v3881_v0 }
 0x3d3   : > { %v3850_v54 = vmul.f32 0.01, %v3808_v1  ;;  %v3811_v17 = vadd.f32 %v4664_v57, %v3650_v53  ;;  %v4553_v49 = vpop.f32.mrb[188].mxu0  ;;  %v4665_v45 = vpop.f32.mrb[188].mxu1 }
 0x3d4   : > { %v4554_v51 = vpop.f32.mrb[189].mxu0  ;;  %v4666_v63 = vpop.f32.mrb[189].mxu1 }
 0x3d5   : > { %v3851_v24 = vmul.f32 0.01, %v3811_v17  ;;  %v4555_v44 = vadd.f32 %v4554_v51, %v4553_v49  ;;  %v4667_v40 = vadd.f32 %v4666_v63, %v4665_v45  ;;  %v4556_v50 = vpop.f32.mrb[190].mxu0  ;;  %v4668_v33 = vpop.f32.mrb[190].mxu1  ;;  %3979 = vadd.xlane.f32.xlu1 %v3920_v29  ;;  %v3882_v6 = vmax.f32 %v3808_v1, %v3850_v54 }
 0x3d6   : > { %v4557_v55 = vpop.f32.mrb[191].mxu0  ;;  %v4669_v52 = vpop.f32.mrb[191].mxu1 }
 0x3d7   : > { %v3655_v47 = vadd.f32 %v4555_v44, %v6242_v39  ;;  %v4558_v59 = vadd.f32 %v4557_v55, %v4556_v50  ;;  %v4670_v3 = vadd.f32 %v4669_v52, %v4668_v33  ;;  %v3921_v5 = vmul.f32 %v6249_v38, %v3882_v6 }
 0x3d8   : > { %v3883_v41 = vmax.f32 %v3811_v17, %v3851_v24 }
 0x3d9   : > { %v3816_v32 = vadd.f32 %v4667_v40, %v3655_v47  ;;  %v3658_v23 = vadd.f32 %v4558_v59, %v6242_v39  ;;  %3981 = vadd.xlane.f32.xlu1 %v3921_v5 }
 0x3da   : > { %v3922_v9 = vmul.f32 %v6249_v38, %v3883_v41 }
 0x3db   : > { %v3852_v14 = vmul.f32 0.01, %v3816_v32  ;;  %v3819_v56 = vadd.f32 %v4670_v3, %v3658_v23 }
 0x3dd   : > { %v3853_v36 = vmul.f32 0.01, %v3819_v56  ;;  %3983 = vadd.xlane.f32.xlu1 %v3922_v9  ;;  %v3884_v18 = vmax.f32 %v3816_v32, %v3852_v14 }
 0x3df   : > { %v3923_v2 = vmul.f32 %v6249_v38, %v3884_v18  ;;  %v3885_v58 = vmax.f32 %v3819_v56, %v3853_v36 }
 0x3e1   : > { %3985 = vadd.xlane.f32.xlu1 %v3923_v2  ;;  %v3924_v34 = vmul.f32 %v6249_v38, %v3885_v58 }
 0x3e5   : > { %3987 = vadd.xlane.f32.xlu1 %v3924_v34 }
 0x3f6   : > { %v3926_v48 = vpop.xlane.xlu0 %3925 }
 0x3f7   : > { %v3991_v39 = vadd.f32 %v6313_v20, %v3926_v48 }
 0x3f9   : > { %v3928_v61 = vpop.xlane.xlu1 %3927  ;;  %4023 = vxpose.xlu0.b32.start [1/16] (narrow) %v3991_v39, 8 }
 0x3fa   : > { %v3992_v46 = vadd.f32 %v6313_v20, %v3928_v61 }
 0x3fd   : > { %4024 = vxpose.xlu0.b32.cont [2/16] (narrow) %v3992_v46, 8 }
 0x3fe   : > { %v3930_v43 = vpop.xlane.xlu0 %3929 }
 0x3ff   : > { %v3993_v28 = vadd.f32 %v6313_v20, %v3930_v43 }
 0x401   : > { %4025 = vxpose.xlu0.b32.cont [3/16] (narrow) %v3993_v28, 8 }
 0x402   : > { %v3932_v4 = vpop.xlane.xlu0 %3931 }
 0x403   : > { %v3994_v8 = vadd.f32 %v6313_v20, %v3932_v4 }
 0x405   : > { %4026 = vxpose.xlu0.b32.cont [4/16] (narrow) %v3994_v8, 8 }
 0x406   : > { %v3934_v38 = vpop.xlane.xlu0 %3933 }
 0x407   : > { %v3995_v11 = vadd.f32 %v6313_v20, %v3934_v38 }
 0x409   : > { %4027 = vxpose.xlu0.b32.cont [5/16] (narrow) %v3995_v11, 8 }
 0x40a   : > { %v3936_v7 = vpop.xlane.xlu0 %3935 }
 0x40b   : > { %v3996_v12 = vadd.f32 %v6313_v20, %v3936_v7 }
 0x40d   : > { %4028 = vxpose.xlu0.b32.cont [6/16] (narrow) %v3996_v12, 8 }
 0x40e   : > { %v3938_v35 = vpop.xlane.xlu0 %3937 }
 0x40f   : > { %v3997_v15 = vadd.f32 %v6313_v20, %v3938_v35  ;;  %v5353_v35 = vmov 1966171168  }
 0x411   : > { %4029 = vxpose.xlu0.b32.cont [7/16] (narrow) %v3997_v15, 8  ;;  %v4101_v15 = vunpack.c.l.s4 %v5353_v35 }
 0x412   : > { %v3940_v25 = vpop.xlane.xlu0 %3939 }
 0x413   : > { %v3998_v19 = vadd.f32 %v6313_v20, %v3940_v25 }
 0x415   : > { %4030 = vxpose.xlu0.b32.cont [8/16] (narrow) %v3998_v19, 8 }
 0x416   : > { %v3942_v10 = vpop.xlane.xlu0 %3941 }
 0x417   : > { %v3999_v13 = vadd.f32 %v6313_v20, %v3942_v10 }
 0x419   : > { %4031 = vxpose.xlu0.b32.cont [9/16] (narrow) %v3999_v13, 8 }
 0x41a   : > { %v3944_v27 = vpop.xlane.xlu0 %3943 }
 0x41b   : > { %v4000_v21 = vadd.f32 %v6313_v20, %v3944_v27 }
 0x41d   : > { %4032 = vxpose.xlu0.b32.cont [10/16] (narrow) %v4000_v21, 8  ;;  %v6417_v21 = vlaneseq }
 0x41e   : > { %v3946_v16 = vpop.xlane.xlu0 %3945 }
 0x41f   : > { %v4001_v26 = vadd.f32 %v6313_v20, %v3946_v16  ;;  %vm4117_vm1 = vcmp.lt.s32.totalorder %v6417_v21, 256 }
 0x421   : > { %4033 = vxpose.xlu0.b32.cont [11/16] (narrow) %v4001_v26, 8 }
 0x422   : > { %v3948_v22 = vpop.xlane.xlu0 %3947 }
 0x423   : > { %v4002_v62 = vadd.f32 %v6313_v20, %v3948_v22 }
 0x425   : > { %4034 = vxpose.xlu0.b32.cont [12/16] (narrow) %v4002_v62, 8 }
 0x426   : > { %v3950_v31 = vpop.xlane.xlu0 %3949 }
 0x427   : > { %v4003_v42 = vadd.f32 %v6313_v20, %v3950_v31 }
 0x429   : > { %4035 = vxpose.xlu0.b32.cont [13/16] (narrow) %v4003_v42, 8 }
 0x42a   : > { %v3952_v60 = vpop.xlane.xlu0 %3951 }
 0x42b   : > { %v4004_v57 = vadd.f32 %v6313_v20, %v3952_v60 }
 0x42d   : > { %4036 = vxpose.xlu0.b32.cont [14/16] (narrow) %v4004_v57, 8 }
 0x42e   : > { %v3954_v30 = vpop.xlane.xlu0 %3953 }
 0x42f   : > { %v4005_v0 = vadd.f32 %v6313_v20, %v3954_v30 }
 0x431   : > { %4037 = vxpose.xlu0.b32.cont [15/16] (narrow) %v4005_v0, 8 }
 0x432   : > { %v3956_v1 = vpop.xlane.xlu0 %3955 }
 0x433   : > { %v4006_v53 = vadd.f32 %v6313_v20, %v3956_v1 }
 0x435   : > { %4038 = vxpose.xlu0.b32.end [16/16] (narrow) %v4006_v53, 8 }
 0x436   : > { %v3958_v54 = vpop.xlane.xlu0 %3957 }
 0x437   : > { %v4007_v17 = vadd.f32 %v6313_v20, %v3958_v54 }
 0x439   : > { %v3960_v49 = vpop.xlane.xlu1 %3959  ;;  %4055 = vxpose.xlu1.b32.start [1/16] (narrow) %v4007_v17, 8 }
 0x43a   : > { %v4008_v45 = vadd.f32 %v6313_v20, %v3960_v49 }
 0x43d   : > { %4056 = vxpose.xlu1.b32.cont [2/16] (narrow) %v4008_v45, 8 }
 0x43e   : > { %v3962_v29 = vpop.xlane.xlu1 %3961 }
 0x43f   : > { %v4009_v51 = vadd.f32 %v6313_v20, %v3962_v29 }
 0x441   : > { %4057 = vxpose.xlu1.b32.cont [3/16] (narrow) %v4009_v51, 8 }
 0x442   : > { %v3964_v63 = vpop.xlane.xlu1 %3963 }
 0x443   : > { %v4010_v24 = vadd.f32 %v6313_v20, %v3964_v63 }
 0x445   : > { %4058 = vxpose.xlu1.b32.cont [4/16] (narrow) %v4010_v24, 8 }
 0x446   : > { %v3966_v44 = vpop.xlane.xlu1 %3965 }
 0x447   : > { %v4011_v40 = vadd.f32 %v6313_v20, %v3966_v44 }
 0x449   : > { %4059 = vxpose.xlu1.b32.cont [5/16] (narrow) %v4011_v40, 8 }
 0x44a   : > { %v3968_v50 = vpop.xlane.xlu1 %3967 }
 0x44b   : > { %v4012_v33 = vadd.f32 %v6313_v20, %v3968_v50 }
 0x44d   : > { %4060 = vxpose.xlu1.b32.cont [6/16] (narrow) %v4012_v33, 8 }
 0x44e   : > { %v3970_v6 = vpop.xlane.xlu1 %3969 }
 0x44f   : > { %v4013_v55 = vadd.f32 %v6313_v20, %v3970_v6 }
 0x451   : > { %4061 = vxpose.xlu1.b32.cont [7/16] (narrow) %v4013_v55, 8 }
 0x452   : > { %v3972_v52 = vpop.xlane.xlu1 %3971 }
 0x453   : > { %v4014_v47 = vadd.f32 %v6313_v20, %v3972_v52 }
 0x455   : > { %4062 = vxpose.xlu1.b32.cont [8/16] (narrow) %v4014_v47, 8 }
 0x456   : > { %v3974_v59 = vpop.xlane.xlu1 %3973 }
 0x457   : > { %v4015_v3 = vadd.f32 %v6313_v20, %v3974_v59 }
 0x459   : > { %4063 = vxpose.xlu1.b32.cont [9/16] (narrow) %v4015_v3, 8 }
 0x45a   : > { %v3976_v5 = vpop.xlane.xlu1 %3975 }
 0x45b   : > { %v4016_v41 = vadd.f32 %v6313_v20, %v3976_v5 }
 0x45d   : > { %4064 = vxpose.xlu1.b32.cont [10/16] (narrow) %v4016_v41, 8 }
 0x45e   : > { %v3978_v32 = vpop.xlane.xlu1 %3977 }
 0x45f   : > { %v4017_v23 = vadd.f32 %v6313_v20, %v3978_v32 }
 0x461   : > { %4065 = vxpose.xlu1.b32.cont [11/16] (narrow) %v4017_v23, 8 }
 0x462   : > { %v3980_v14 = vpop.xlane.xlu1 %3979 }
 0x463   : > { %v4018_v56 = vadd.f32 %v6313_v20, %v3980_v14 }
 0x465   : > { %4066 = vxpose.xlu1.b32.cont [12/16] (narrow) %v4018_v56, 8 }
 0x466   : > { %v3982_v9 = vpop.xlane.xlu1 %3981 }
 0x467   : > { %v4019_v36 = vadd.f32 %v6313_v20, %v3982_v9 }
 0x469   : > { %4067 = vxpose.xlu1.b32.cont [13/16] (narrow) %v4019_v36, 8 }
 0x46a   : > { %v3984_v18 = vpop.xlane.xlu1 %3983 }
 0x46b   : > { %v4020_v2 = vadd.f32 %v6313_v20, %v3984_v18 }
 0x46d   : > { %4068 = vxpose.xlu1.b32.cont [14/16] (narrow) %v4020_v2, 8 }
 0x46e   : > { %v3986_v58 = vpop.xlane.xlu1 %3985 }
 0x46f   : > { %v4021_v34 = vadd.f32 %v6313_v20, %v3986_v58 }
 0x471   : > { %4069 = vxpose.xlu1.b32.cont [15/16] (narrow) %v4021_v34, 8 }
 0x472   : > { %v3988_v48 = vpop.xlane.xlu1 %3987 }
 0x473   : > { %v4022_v39 = vadd.f32 %v6313_v20, %v3988_v48  ;;  %v4102_v20 = vunpack.c.0.s8 %v4101_v15 }
 0x475   : > { %4070 = vxpose.xlu1.b32.end [16/16] (narrow) %v4022_v39, 8  ;;  %v4105_v19 = vsub.s32 %v4102_v20, %v5630_v37 }
 0x479   : > { %v4039_v61 = vpop.trf.xlu0 }
 0x47a   : > { %v4087_v46 = vsub.f32 0.0, %v4039_v61 }
 0x47c   : > { %v4089_v43 = vmul.f32 1.442695, %v4087_v46 }
 0x47e   : > { %5245 = vpow2.f32 %v4089_v43 }
 0x488   : > { %v5246_v38 = vpop.eup %5245 }
 0x489   : > { %v4093_v11 = vadd.f32 1.0, %v5246_v38 }
 0x4b9   : > { %v4071_v28 = vpop.trf.xlu1 }
 0x4ba   : > { %v4088_v4 = vsub.f32 0.0, %v4071_v28 }
 0x4bc   : > { %v4091_v8 = vmul.f32 1.442695, %v4088_v4 }
 0x4be   : > { %5247 = vpow2.f32 %v4091_v8 }
 0x4bf   : > { %5249 = vrcp.f32 %v4093_v11 }
 0x4c8   : > { %v5248_v7 = vpop.eup %5247 }
 0x4c9   : > { %v4094_v12 = vadd.f32 1.0, %v5248_v7  ;;  %v5250_v25 = vpop.eup %5249 }
 0x4cb   : > { %5251 = vrcp.f32 %v4094_v12 }
 0x4d5   : > { %v5252_v10 = vpop.eup %5251 }
 0x4d6   : > { %v4099_v13 = vcombine.low %v5250_v25, %v5252_v10 }
 0x4d8   : > { %v4106_v27 = vrot.slane %v4099_v13, %v4105_v19 }
 0x4da   : > { %v4113_v16 = vrot.slane %v4106_v27, %v4105_v19 }
 0x4dc   : > { %4119 = vst.msk [vmem:[%s354_s18] sm:$0x3] %vm4117_vm1, %v4113_v16 }
 0x4dd   : > { %5294 = shalt.err (!%p5291_p7)
}
 0x4de   : > { %s5295_s28 = scalar_lea.hbm %s6354_s25, 32  ;;  %s5299_s10 = scalar_lea.hbm %s6405_s9, 64 }
 0x4df   : > { %p5296_p8 = scmp.ne.s32.totalorder %s6354_s25, %s5295_s28  ;;  %p5300_p1 = scmp.lt.u32.totalorder %s6354_s25, %s6405_s9 }
 0x4e0   : > { %p5301_p0 = scmp.lt.u32.totalorder %s5299_s10, %s5295_s28  ;;  %p5303_p6 = scmp.lt.u32.totalorder %s5295_s28, %s6354_s25 }
 0x4e1   : > { %p5297_p11 = pnand %p5296_p8, %p6418_p9 }
 0x4e2   : > { %p5302_p5 = por %p5301_p0, %p5300_p1 }
 0x4e3   : > { %p5298_p13 = pneg %p5297_p11 }
 0x4e4   : > { %p5304_p10 = por %p5303_p6, %p5302_p5 }
 0x4e6   : > { %p5305_p12 = pnand %p5304_p10, %p5298_p13 }
 0x4e8   : > { %5308 = shalt.err (!%p5305_p12)
}
 0x4e9   : > { %4931 = dma.vmem_to_hbm [thread:$0]  (%p6418_p9), %s6356_s23, 32, %s6354_s25, %s4121_s22  }
 0x4ea PF: > { %p4943_p2 = scmp.ge.s32.totalorder %s5347_s14, 2  ;;  %s4147_s27 = sand.u32 1, %s5335_s11  }
 0x4eb   : > { %p6419_p3 = scmp.ne.s32.totalorder %s6411_s21, 0  ;;  %s4148_s24 = scalar_lea.sflag [#allocation5], %s4147_s27 }
 0x4ed   : > { %p4938_p4 = pnand %p4943_p2, %p6419_p3 }
 0x4ef   : > { %5330 = dma.done.wait (!%p4938_p4), %s4148_s24, 32  }
 0x4f0   : > { %5332 = vsyncadd (!%p4938_p4), %s4148_s24, 4294967264  ;;  %p21_p7 = scmp.ge.s32.totalorder %s5433_s16, 4   ;;  %s6420_s11 = smov %s5339_s12 }
 0x4f1   : > { %s6421_s12 = smov %s5343_s13  ;;  %s6422_s13 = smov %s5444_s19 }
 0x4f2   : > { %s6423_s14 = smov %s5433_s16  ;;  %23 = sbr.rel (!%p21_p7) target bundleno = 6 (0x6), region = 96 }
 0x4f9   :  { %4153 = vsyncpa [#allocation4], 1 }
 0x4fa   :  { %4155 = vsyncpa [#allocation4 + $0x1], 1 }
 0x4fb   :  { %4156 = vsyncpa [#allocation5], 1 }
 0x4fc   :  { %4158 = vsyncpa [#allocation5 + $0x1], 1 }

</bundles_post_ra>
